<compile_context>
chip_gen: v7x
topology: tpu7x:2x2x1
jax: 0.10.0
libtpu: 0.0.40
codegen_flags: <defaults>
</compile_context>

<pallas_src>
import functools

import jax
import jax.numpy as jnp
from jax import lax
from jax.experimental import pallas as pl
from jax.experimental.pallas import tpu as pltpu

EPS = 1e-5
_VMEM_LIMIT = 32 * 1024 * 1024  # explicit scoped-VMEM budget; safe on v5e/v6e/v7x


# --------------------------- kernels ---------------------------------------
def _conv_stage_kernel(x_ref, a_ref, c_ref, w_ref, b_ref,
                       z_ref, mean_ref, m2_ref, *, apply_bn_relu):
    """One tile (= one sample): [BN-affine + ReLU]? -> pad(1) -> 3x3 conv
    (single im2col matmul) -> +bias, plus per-tile centered BN statistics."""
    _, H, W, Ci = x_ref.shape
    Co = z_ref.shape[-1]

    x = x_ref[0].astype(jnp.float32)                       # (H, W, Ci), f32
    if apply_bn_relu:
        # previous BN folded to per-channel scale/shift; f32 on the VPU
        x = jnp.maximum(x * a_ref[...] + c_ref[...], 0.0)
    xb = x.astype(jnp.bfloat16)                            # bf16 only for the MXU

    # zero-pad H/W by 1 (no full-buffer zero fill, just two thin borders each)
    zrow = jnp.zeros((1, W, Ci), jnp.bfloat16)
    xb = jnp.concatenate([zrow, xb, zrow], axis=0)         # (H+2, W, Ci)
    zcol = jnp.zeros((H + 2, 1, Ci), jnp.bfloat16)
    xb = jnp.concatenate([zcol, xb, zcol], axis=1)         # (H+2, W+2, Ci)

    # im2col: build one (H*W, 9*Ci) slab and issue a SINGLE MXU matmul
    cols = [xb[dy:dy + H, dx:dx + W, :] for dy in range(3) for dx in range(3)]
    col = jnp.concatenate(cols, axis=-1).reshape(H * W, 9 * Ci)
    z = jnp.dot(col, w_ref[...], preferred_element_type=jnp.float32)
    z = z + b_ref[...]                                     # (H*W, Co), f32

    # centered per-tile statistics (globally combined in the wrapper)
    mean = jnp.mean(z, axis=0, keepdims=True)              # (1, Co)
    d = z - mean
    m2 = jnp.sum(d * d, axis=0, keepdims=True)             # (1, Co)

    z_ref[...] = z.reshape(1, H, W, Co)
    mean_ref[...] = mean.reshape(1, 1, Co)
    m2_ref[...] = m2.reshape(1, 1, Co)


def _bn_relu_kernel(z_ref, a_ref, c_ref, o_ref):
    z = z_ref[...].astype(jnp.float32)
    o_ref[...] = jnp.maximum(z * a_ref[...] + c_ref[...], 0.0).astype(o_ref.dtype)


# --------------------------- launchers --------------------------------------
def _conv_stage(x_nhwc, a_row, c_row, w_k, b_row, apply_bn_relu):
    N, H, W, Ci = x_nhwc.shape
    Co = w_k.shape[-1]
    kern = functools.partial(_conv_stage_kernel, apply_bn_relu=apply_bn_relu)
    return pl.pallas_call(
        kern,
        grid=(N,),
        in_specs=[pl.BlockSpec((1, H, W, Ci), lambda n: (n, 0, 0, 0)),
                  pl.BlockSpec((1, Ci), lambda n: (0, 0)),
                  pl.BlockSpec((1, Ci), lambda n: (0, 0)),
                  pl.BlockSpec((9 * Ci, Co), lambda n: (0, 0)),
                  pl.BlockSpec((1, Co), lambda n: (0, 0))],
        out_specs=(pl.BlockSpec((1, H, W, Co), lambda n: (n, 0, 0, 0)),
                   pl.BlockSpec((1, 1, Co), lambda n: (n, 0, 0)),
                   pl.BlockSpec((1, 1, Co), lambda n: (n, 0, 0))),
        out_shape=(jax.ShapeDtypeStruct((N, H, W, Co), jnp.float32),
                   jax.ShapeDtypeStruct((N, 1, Co), jnp.float32),
                   jax.ShapeDtypeStruct((N, 1, Co), jnp.float32)),
        compiler_params=pltpu.CompilerParams(
            dimension_semantics=("parallel",),
            vmem_limit_bytes=_VMEM_LIMIT),
    )(x_nhwc, a_row, c_row, w_k, b_row)


def _combine_stats(mean_p, m2_p, count_per_tile):
    """Exact combination of per-tile (mean, centered M2) -> global mean / biased var."""
    T, _, C = mean_p.shape
    mp = mean_p.reshape(T, C)
    sp = m2_p.reshape(T, C)
    gmean = jnp.mean(mp, axis=0)                                   # equal tile counts
    gss = jnp.sum(sp, axis=0) + count_per_tile * jnp.sum((mp - gmean) ** 2, axis=0)
    gvar = gss / (T * count_per_tile)                              # biased (BatchNorm)
    return gmean, gvar


@jax.jit
def double_conv(x_nchw, params):
    """x_nchw: (N, Cin, H, W) float32.  Returns (N, Cout, H, W) float32."""
    w1, b1, g1, be1, w2, b2, g2, be2 = params
    N, Cin, H, W = x_nchw.shape
    Cout = w1.shape[-1]

    # NCHW -> NHWC (lane dim = channels inside the kernels)
    x = jnp.transpose(x_nchw, (0, 2, 3, 1)).astype(jnp.float32)
    # TODO(synk): the NCHW<->NHWC transposes are left to XLA; fusing them into the
    # kernels would require an in-kernel relayout and is not worthwhile at Cin=4/Cout=8.

    w1k = w1.reshape(9 * Cin, Cout).astype(jnp.bfloat16)
    w2k = w2.reshape(9 * Cout, Cout).astype(jnp.bfloat16)
    row = lambda v: v.reshape(1, -1).astype(jnp.float32)

    # ---- pass 1: conv1 + bias, per-sample BN1 partial stats ----
    dummy = jnp.zeros((1, Cin), jnp.float32)
    z1, m1p, s1p = _conv_stage(x, dummy, dummy, w1k, row(b1), apply_bn_relu=False)
    mean1, var1 = _combine_stats(m1p, s1p, H * W)
    a1 = g1 * lax.rsqrt(var1 + EPS)
    c1 = be1 - mean1 * a1

    # ---- pass 2: BN1 + ReLU + conv2 + bias, per-sample BN2 partial stats ----
    z2, m2p, s2p = _conv_stage(z1, row(a1), row(c1), w2k, row(b2), apply_bn_relu=True)
    mean2, var2 = _combine_stats(m2p, s2p, H * W)
    a2 = g2 * lax.rsqrt(var2 + EPS)
    c2 = be2 - mean2 * a2

    # ---- pass 3: BN2 + ReLU, tiled over (N, H row blocks), fully parallel ----
    TH = 8 if H % 8 == 0 else H
    out_nhwc = pl.pallas_call(
        _bn_relu_kernel,
        grid=(N, H // TH),
        in_specs=[pl.BlockSpec((1, TH, W, Cout), lambda n, h: (n, h, 0, 0)),
                  pl.BlockSpec((1, Cout), lambda n, h: (0, 0)),
                  pl.BlockSpec((1, Cout), lambda n, h: (0, 0))],
        out_specs=pl.BlockSpec((1, TH, W, Cout), lambda n, h: (n, h, 0, 0)),
        out_shape=jax.ShapeDtypeStruct((N, H, W, Cout), jnp.float32),
        compiler_params=pltpu.CompilerParams(
            dimension_semantics=("parallel", "parallel"),
            vmem_limit_bytes=_VMEM_LIMIT),
    )(z2, row(a2), row(c2))

    return jnp.transpose(out_nhwc, (0, 3, 1, 2))                   # NCHW


# ---------------- pure-JAX f32 reference (for correctness check) ------------
def reference(x_nchw, params):
    w1, b1, g1, be1, w2, b2, g2, be2 = params
    x = jnp.transpose(x_nchw, (0, 2, 3, 1)).astype(jnp.float32)
    dn = ('NHWC', 'HWIO', 'NHWC')

    def bn_relu(y, g, b):
        mean = jnp.mean(y, axis=(0, 1, 2), keepdims=True)
        var = jnp.mean((y - mean) ** 2, axis=(0, 1, 2), keepdims=True)
        return jnp.maximum((y - mean) * lax.rsqrt(var + EPS) * g + b, 0.0)

    y = lax.conv_general_dilated(x, w1, (1, 1), 'SAME', dimension_numbers=dn) + b1
    y = bn_relu(y, g1, be1)
    y = lax.conv_general_dilated(y, w2, (1, 1), 'SAME', dimension_numbers=dn) + b2
    y = bn_relu(y, g2, be2)
    return jnp.transpose(y, (0, 3, 1, 2))


def init_params(key, cin, cout):
    k1, k2, k3, k4 = jax.random.split(key, 4)
    w1 = 0.1 * jax.random.normal(k1, (3, 3, cin, cout), jnp.float32)   # HWIO
    b1 = 0.1 * jax.random.normal(k2, (cout,), jnp.float32)
    w2 = 0.1 * jax.random.normal(k3, (3, 3, cout, cout), jnp.float32)
    b2 = 0.1 * jax.random.normal(k4, (cout,), jnp.float32)
    g1 = jnp.ones((cout,), jnp.float32)
    be1 = jnp.zeros((cout,), jnp.float32)
    g2 = jnp.ones((cout,), jnp.float32)
    be2 = jnp.zeros((cout,), jnp.float32)
    return (w1, b1, g1, be1, w2, b2, g2, be2)


if __name__ == "__main__":
    key = jax.random.PRNGKey(0)
    kx, kp = jax.random.split(key)

    N, Cin, Cout, H, W = 2, 4, 8, 16, 16
    x = jax.random.normal(kx, (N, Cin, H, W), jnp.float32)
    params = init_params(kp, Cin, Cout)

    out = jax.block_until_ready(double_conv(x, params))
    ref = jax.block_until_ready(reference(x, params))

    assert out.shape == (N, Cout, H, W)
    # bf16 MXU matmuls with f32 accumulation / f32 BN, compared against a pure-f32
    # reference -> tolerance reflects bf16 operand rounding.
    assert jnp.allclose(out, ref, rtol=2e-2, atol=2e-2), (
        f"mismatch vs reference (max abs err {jnp.max(jnp.abs(out - ref)):.3e})")

    print("KERNEL_OK")
</pallas_src>

<mosaic_0001>
module attributes {stable_mosaic.version = 11 : i64} {
  func.func @_conv_stage_kernel(%arg0: i32, %arg1: memref<1x16x16x4xf32, #tpu.memory_space<vmem>>, %arg2: memref<1x4xf32, #tpu.memory_space<vmem>>, %arg3: memref<1x4xf32, #tpu.memory_space<vmem>>, %arg4: memref<36x8xbf16, #tpu.memory_space<vmem>>, %arg5: memref<1x8xf32, #tpu.memory_space<vmem>>, %arg6: memref<1x16x16x8xf32, #tpu.memory_space<vmem>>, %arg7: memref<1x1x8xf32, #tpu.memory_space<vmem>>, %arg8: memref<1x1x8xf32, #tpu.memory_space<vmem>>) attributes {dimension_semantics = [#tpu.dimension_semantics<parallel>], iteration_bounds = array<i64: 2>, scalar_prefetch = 0 : i64, scratch_operands = 0 : i64, tpu.core_type = #tpu.core_type<tc>, window_params = [{transform_indices = @transform_0, window_bounds = array<i64: 1, 16, 16, 4>}, {pipeline_mode = #tpu.pipeline_mode<synchronous>, transform_indices = @transform_1, window_bounds = array<i64: 1, 4>}, {pipeline_mode = #tpu.pipeline_mode<synchronous>, transform_indices = @transform_2, window_bounds = array<i64: 1, 4>}, {pipeline_mode = #tpu.pipeline_mode<synchronous>, transform_indices = @transform_3, window_bounds = array<i64: 36, 8>}, {pipeline_mode = #tpu.pipeline_mode<synchronous>, transform_indices = @transform_4, window_bounds = array<i64: 1, 8>}, {transform_indices = @transform_5, window_bounds = array<i64: 1, 16, 16, 8>}, {transform_indices = @transform_6, window_bounds = array<i64: 1, 1, 8>}, {transform_indices = @transform_7, window_bounds = array<i64: 1, 1, 8>}]} {
    %c0 = arith.constant 0 : index
    %c0_0 = arith.constant 0 : index
    %c0_1 = arith.constant 0 : index
    %c0_2 = arith.constant 0 : index
    %0 = vector.load %arg1[%c0, %c0_0, %c0_1, %c0_2] : memref<1x16x16x4xf32, #tpu.memory_space<vmem>>, vector<1x16x16x4xf32>
    %1 = vector.shape_cast %0 : vector<1x16x16x4xf32> to vector<16x16x4xf32>
    %2 = arith.truncf %1 : vector<16x16x4xf32> to vector<16x16x4xbf16>
    %cst = arith.constant 0.000000e+00 : bf16
    %3 = vector.broadcast %cst : bf16 to vector<1x16x4xbf16>
    %4 = tpu.concatenate %3, %2, %3 in 0 : vector<1x16x4xbf16>, vector<16x16x4xbf16>, vector<1x16x4xbf16> -> vector<18x16x4xbf16>
    %cst_3 = arith.constant 0.000000e+00 : bf16
    %5 = vector.broadcast %cst_3 : bf16 to vector<18x1x4xbf16>
    %6 = tpu.concatenate %5, %4, %5 in 1 : vector<18x1x4xbf16>, vector<18x16x4xbf16>, vector<18x1x4xbf16> -> vector<18x18x4xbf16>
    %7 = vector.extract_strided_slice %6 {offsets = [0, 0, 0], sizes = [16, 16, 4], strides = [1, 1, 1]} : vector<18x18x4xbf16> to vector<16x16x4xbf16>
    %8 = vector.extract_strided_slice %6 {offsets = [0, 1, 0], sizes = [16, 16, 4], strides = [1, 1, 1]} : vector<18x18x4xbf16> to vector<16x16x4xbf16>
    %9 = vector.extract_strided_slice %6 {offsets = [0, 2, 0], sizes = [16, 16, 4], strides = [1, 1, 1]} : vector<18x18x4xbf16> to vector<16x16x4xbf16>
    %10 = vector.extract_strided_slice %6 {offsets = [1, 0, 0], sizes = [16, 16, 4], strides = [1, 1, 1]} : vector<18x18x4xbf16> to vector<16x16x4xbf16>
    %11 = vector.extract_strided_slice %6 {offsets = [1, 1, 0], sizes = [16, 16, 4], strides = [1, 1, 1]} : vector<18x18x4xbf16> to vector<16x16x4xbf16>
    %12 = vector.extract_strided_slice %6 {offsets = [1, 2, 0], sizes = [16, 16, 4], strides = [1, 1, 1]} : vector<18x18x4xbf16> to vector<16x16x4xbf16>
    %13 = vector.extract_strided_slice %6 {offsets = [2, 0, 0], sizes = [16, 16, 4], strides = [1, 1, 1]} : vector<18x18x4xbf16> to vector<16x16x4xbf16>
    %14 = vector.extract_strided_slice %6 {offsets = [2, 1, 0], sizes = [16, 16, 4], strides = [1, 1, 1]} : vector<18x18x4xbf16> to vector<16x16x4xbf16>
    %15 = vector.extract_strided_slice %6 {offsets = [2, 2, 0], sizes = [16, 16, 4], strides = [1, 1, 1]} : vector<18x18x4xbf16> to vector<16x16x4xbf16>
    %16 = tpu.concatenate %7, %8, %9, %10, %11, %12, %13, %14, %15 in 2 : vector<16x16x4xbf16>, vector<16x16x4xbf16>, vector<16x16x4xbf16>, vector<16x16x4xbf16>, vector<16x16x4xbf16>, vector<16x16x4xbf16>, vector<16x16x4xbf16>, vector<16x16x4xbf16>, vector<16x16x4xbf16> -> vector<16x16x36xbf16>
    %17 = vector.shape_cast %16 : vector<16x16x36xbf16> to vector<256x36xbf16>
    %c0_4 = arith.constant 0 : index
    %c0_5 = arith.constant 0 : index
    %18 = vector.load %arg4[%c0_4, %c0_5] : memref<36x8xbf16, #tpu.memory_space<vmem>>, vector<36x8xbf16>
    %cst_6 = arith.constant dense<0.000000e+00> : vector<256x8xf32>
    %19 = tpu.matmul %17, %18, %cst_6 {dimension_numbers = #tpu.dot_dimension_numbers<[1], [0], [0], [1], [0, 0, 1, 1], [], []>} : vector<256x36xbf16>, vector<36x8xbf16>, vector<256x8xf32> -> vector<256x8xf32>
    %c0_7 = arith.constant 0 : index
    %c0_8 = arith.constant 0 : index
    %20 = vector.load %arg5[%c0_7, %c0_8] : memref<1x8xf32, #tpu.memory_space<vmem>>, vector<1x8xf32>
    %21 = vector.broadcast %20 : vector<1x8xf32> to vector<256x8xf32>
    %22 = arith.addf %19, %21 : vector<256x8xf32>
    %cst_9 = arith.constant dense<0.000000e+00> : vector<8xf32>
    %23 = vector.multi_reduction <add>, %22, %cst_9 [0] : vector<256x8xf32> to vector<8xf32>
    %24 = vector.shape_cast %23 : vector<8xf32> to vector<1x8xf32>
    %cst_10 = arith.constant 2.560000e+02 : f32
    %25 = vector.broadcast %cst_10 : f32 to vector<1x8xf32>
    %26 = arith.divf %24, %25 : vector<1x8xf32>
    %27 = vector.broadcast %26 : vector<1x8xf32> to vector<256x8xf32>
    %28 = arith.subf %22, %27 : vector<256x8xf32>
    %29 = arith.mulf %28, %28 : vector<256x8xf32>
    %cst_11 = arith.constant dense<0.000000e+00> : vector<8xf32>
    %30 = vector.multi_reduction <add>, %29, %cst_11 [0] : vector<256x8xf32> to vector<8xf32>
    %31 = vector.shape_cast %30 : vector<8xf32> to vector<1x8xf32>
    %32 = vector.shape_cast %22 : vector<256x8xf32> to vector<1x16x16x8xf32>
    %c0_12 = arith.constant 0 : index
    %c0_13 = arith.constant 0 : index
    %c0_14 = arith.constant 0 : index
    %c0_15 = arith.constant 0 : index
    %33 = vector.load %arg6[%c0_12, %c0_13, %c0_14, %c0_15] : memref<1x16x16x8xf32, #tpu.memory_space<vmem>>, vector<1x16x16x8xf32>
    tpu.vector_store %arg6[%c0_12, %c0_13, %c0_14, %c0_15], %32 {strides = array<i32>} : memref<1x16x16x8xf32, #tpu.memory_space<vmem>>, vector<1x16x16x8xf32>,
    %34 = vector.shape_cast %26 : vector<1x8xf32> to vector<1x1x8xf32>
    %c0_16 = arith.constant 0 : index
    %c0_17 = arith.constant 0 : index
    %c0_18 = arith.constant 0 : index
    %35 = vector.load %arg7[%c0_16, %c0_17, %c0_18] : memref<1x1x8xf32, #tpu.memory_space<vmem>>, vector<1x1x8xf32>
    tpu.vector_store %arg7[%c0_16, %c0_17, %c0_18], %34 {strides = array<i32>} : memref<1x1x8xf32, #tpu.memory_space<vmem>>, vector<1x1x8xf32>,
    %36 = vector.shape_cast %31 : vector<1x8xf32> to vector<1x1x8xf32>
    %c0_19 = arith.constant 0 : index
    %c0_20 = arith.constant 0 : index
    %c0_21 = arith.constant 0 : index
    %37 = vector.load %arg8[%c0_19, %c0_20, %c0_21] : memref<1x1x8xf32, #tpu.memory_space<vmem>>, vector<1x1x8xf32>
    tpu.vector_store %arg8[%c0_19, %c0_20, %c0_21], %36 {strides = array<i32>} : memref<1x1x8xf32, #tpu.memory_space<vmem>>, vector<1x1x8xf32>,
    return
  }
  func.func @transform_0(%arg0: i32) -> (i32, i32, i32, i32) {
    %c0_i32 = arith.constant 0 : i32
    %c0_i32_0 = arith.constant 0 : i32
    %c0_i32_1 = arith.constant 0 : i32
    %c0_i32_2 = arith.constant 0 : i32
    return %arg0, %c0_i32, %c0_i32_0, %c0_i32_1 : i32, i32, i32, i32
  }
  func.func @transform_1(%arg0: i32) -> (i32, i32) {
    %c0_i32 = arith.constant 0 : i32
    %c0_i32_0 = arith.constant 0 : i32
    %c0_i32_1 = arith.constant 0 : i32
    return %c0_i32, %c0_i32_0 : i32, i32
  }
  func.func @transform_2(%arg0: i32) -> (i32, i32) {
    %c0_i32 = arith.constant 0 : i32
    %c0_i32_0 = arith.constant 0 : i32
    %c0_i32_1 = arith.constant 0 : i32
    return %c0_i32, %c0_i32_0 : i32, i32
  }
  func.func @transform_3(%arg0: i32) -> (i32, i32) {
    %c0_i32 = arith.constant 0 : i32
    %c0_i32_0 = arith.constant 0 : i32
    %c0_i32_1 = arith.constant 0 : i32
    return %c0_i32, %c0_i32_0 : i32, i32
  }
  func.func @transform_4(%arg0: i32) -> (i32, i32) {
    %c0_i32 = arith.constant 0 : i32
    %c0_i32_0 = arith.constant 0 : i32
    %c0_i32_1 = arith.constant 0 : i32
    return %c0_i32, %c0_i32_0 : i32, i32
  }
  func.func @transform_5(%arg0: i32) -> (i32, i32, i32, i32) {
    %c0_i32 = arith.constant 0 : i32
    %c0_i32_0 = arith.constant 0 : i32
    %c0_i32_1 = arith.constant 0 : i32
    %c0_i32_2 = arith.constant 0 : i32
    return %arg0, %c0_i32, %c0_i32_0, %c0_i32_1 : i32, i32, i32, i32
  }
  func.func @transform_6(%arg0: i32) -> (i32, i32, i32) {
    %c0_i32 = arith.constant 0 : i32
    %c0_i32_0 = arith.constant 0 : i32
    %c0_i32_1 = arith.constant 0 : i32
    return %arg0, %c0_i32, %c0_i32_0 : i32, i32, i32
  }
  func.func @transform_7(%arg0: i32) -> (i32, i32, i32) {
    %c0_i32 = arith.constant 0 : i32
    %c0_i32_0 = arith.constant 0 : i32
    %c0_i32_1 = arith.constant 0 : i32
    return %arg0, %c0_i32, %c0_i32_0 : i32, i32, i32
  }
}

module attributes {stable_mosaic.version = 11 : i64} {
  func.func @_bn_relu_kernel(%arg0: i32, %arg1: i32, %arg2: memref<1x8x16x8xf32, #tpu.memory_space<vmem>>, %arg3: memref<1x8xf32, #tpu.memory_space<vmem>>, %arg4: memref<1x8xf32, #tpu.memory_space<vmem>>, %arg5: memref<1x8x16x8xf32, #tpu.memory_space<vmem>>) attributes {dimension_semantics = [#tpu.dimension_semantics<parallel>, #tpu.dimension_semantics<parallel>], iteration_bounds = array<i64: 2, 2>, scalar_prefetch = 0 : i64, scratch_operands = 0 : i64, tpu.core_type = #tpu.core_type<tc>, window_params = [{transform_indices = @transform_0, window_bounds = array<i64: 1, 8, 16, 8>}, {pipeline_mode = #tpu.pipeline_mode<synchronous>, transform_indices = @transform_1, window_bounds = array<i64: 1, 8>}, {pipeline_mode = #tpu.pipeline_mode<synchronous>, transform_indices = @transform_2, window_bounds = array<i64: 1, 8>}, {transform_indices = @transform_3, window_bounds = array<i64: 1, 8, 16, 8>}]} {
    %c0 = arith.constant 0 : index
    %c0_0 = arith.constant 0 : index
    %c0_1 = arith.constant 0 : index
    %c0_2 = arith.constant 0 : index
    %0 = vector.load %arg2[%c0, %c0_0, %c0_1, %c0_2] : memref<1x8x16x8xf32, #tpu.memory_space<vmem>>, vector<1x8x16x8xf32>
    %c0_3 = arith.constant 0 : index
    %c0_4 = arith.constant 0 : index
    %1 = vector.load %arg3[%c0_3, %c0_4] : memref<1x8xf32, #tpu.memory_space<vmem>>, vector<1x8xf32>
    %2 = vector.shape_cast %1 : vector<1x8xf32> to vector<1x1x1x8xf32>
    %3 = vector.broadcast %2 : vector<1x1x1x8xf32> to vector<1x8x16x8xf32>
    %4 = arith.mulf %0, %3 : vector<1x8x16x8xf32>
    %c0_5 = arith.constant 0 : index
    %c0_6 = arith.constant 0 : index
    %5 = vector.load %arg4[%c0_5, %c0_6] : memref<1x8xf32, #tpu.memory_space<vmem>>, vector<1x8xf32>
    %6 = vector.shape_cast %5 : vector<1x8xf32> to vector<1x1x1x8xf32>
    %7 = vector.broadcast %6 : vector<1x1x1x8xf32> to vector<1x8x16x8xf32>
    %8 = arith.addf %4, %7 : vector<1x8x16x8xf32>
    %cst = arith.constant 0.000000e+00 : f32
    %9 = vector.broadcast %cst : f32 to vector<1x8x16x8xf32>
    %10 = arith.maximumf %8, %9 : vector<1x8x16x8xf32>
    %c0_7 = arith.constant 0 : index
    %c0_8 = arith.constant 0 : index
    %c0_9 = arith.constant 0 : index
    %c0_10 = arith.constant 0 : index
    %11 = vector.load %arg5[%c0_7, %c0_8, %c0_9, %c0_10] : memref<1x8x16x8xf32, #tpu.memory_space<vmem>>, vector<1x8x16x8xf32>
    tpu.vector_store %arg5[%c0_7, %c0_8, %c0_9, %c0_10], %10 {strides = array<i32>} : memref<1x8x16x8xf32, #tpu.memory_space<vmem>>, vector<1x8x16x8xf32>,
    return
  }
  func.func @transform_0(%arg0: i32, %arg1: i32) -> (i32, i32, i32, i32) {
    %c0_i32 = arith.constant 0 : i32
    %c0_i32_0 = arith.constant 0 : i32
    %c0_i32_1 = arith.constant 0 : i32
    return %arg0, %arg1, %c0_i32, %c0_i32_0 : i32, i32, i32, i32
  }
  func.func @transform_1(%arg0: i32, %arg1: i32) -> (i32, i32) {
    %c0_i32 = arith.constant 0 : i32
    %c0_i32_0 = arith.constant 0 : i32
    %c0_i32_1 = arith.constant 0 : i32
    return %c0_i32, %c0_i32_0 : i32, i32
  }
  func.func @transform_2(%arg0: i32, %arg1: i32) -> (i32, i32) {
    %c0_i32 = arith.constant 0 : i32
    %c0_i32_0 = arith.constant 0 : i32
    %c0_i32_1 = arith.constant 0 : i32
    return %c0_i32, %c0_i32_0 : i32, i32
  }
  func.func @transform_3(%arg0: i32, %arg1: i32) -> (i32, i32, i32, i32) {
    %c0_i32 = arith.constant 0 : i32
    %c0_i32_0 = arith.constant 0 : i32
    %c0_i32_1 = arith.constant 0 : i32
    return %arg0, %arg1, %c0_i32, %c0_i32_0 : i32, i32, i32, i32
  }
}

module attributes {stable_mosaic.version = 11 : i64} {
  func.func @_conv_stage_kernel(%arg0: i32, %arg1: memref<1x16x16x8xf32, #tpu.memory_space<vmem>>, %arg2: memref<1x8xf32, #tpu.memory_space<vmem>>, %arg3: memref<1x8xf32, #tpu.memory_space<vmem>>, %arg4: memref<72x8xbf16, #tpu.memory_space<vmem>>, %arg5: memref<1x8xf32, #tpu.memory_space<vmem>>, %arg6: memref<1x16x16x8xf32, #tpu.memory_space<vmem>>, %arg7: memref<1x1x8xf32, #tpu.memory_space<vmem>>, %arg8: memref<1x1x8xf32, #tpu.memory_space<vmem>>) attributes {dimension_semantics = [#tpu.dimension_semantics<parallel>], iteration_bounds = array<i64: 2>, scalar_prefetch = 0 : i64, scratch_operands = 0 : i64, tpu.core_type = #tpu.core_type<tc>, window_params = [{transform_indices = @transform_0, window_bounds = array<i64: 1, 16, 16, 8>}, {pipeline_mode = #tpu.pipeline_mode<synchronous>, transform_indices = @transform_1, window_bounds = array<i64: 1, 8>}, {pipeline_mode = #tpu.pipeline_mode<synchronous>, transform_indices = @transform_2, window_bounds = array<i64: 1, 8>}, {pipeline_mode = #tpu.pipeline_mode<synchronous>, transform_indices = @transform_3, window_bounds = array<i64: 72, 8>}, {pipeline_mode = #tpu.pipeline_mode<synchronous>, transform_indices = @transform_4, window_bounds = array<i64: 1, 8>}, {transform_indices = @transform_5, window_bounds = array<i64: 1, 16, 16, 8>}, {transform_indices = @transform_6, window_bounds = array<i64: 1, 1, 8>}, {transform_indices = @transform_7, window_bounds = array<i64: 1, 1, 8>}]} {
    %c0 = arith.constant 0 : index
    %c0_0 = arith.constant 0 : index
    %c0_1 = arith.constant 0 : index
    %c0_2 = arith.constant 0 : index
    %0 = vector.load %arg1[%c0, %c0_0, %c0_1, %c0_2] : memref<1x16x16x8xf32, #tpu.memory_space<vmem>>, vector<1x16x16x8xf32>
    %1 = vector.shape_cast %0 : vector<1x16x16x8xf32> to vector<16x16x8xf32>
    %c0_3 = arith.constant 0 : index
    %c0_4 = arith.constant 0 : index
    %2 = vector.load %arg2[%c0_3, %c0_4] : memref<1x8xf32, #tpu.memory_space<vmem>>, vector<1x8xf32>
    %3 = vector.shape_cast %2 : vector<1x8xf32> to vector<1x1x8xf32>
    %4 = vector.broadcast %3 : vector<1x1x8xf32> to vector<16x16x8xf32>
    %5 = arith.mulf %1, %4 : vector<16x16x8xf32>
    %c0_5 = arith.constant 0 : index
    %c0_6 = arith.constant 0 : index
    %6 = vector.load %arg3[%c0_5, %c0_6] : memref<1x8xf32, #tpu.memory_space<vmem>>, vector<1x8xf32>
    %7 = vector.shape_cast %6 : vector<1x8xf32> to vector<1x1x8xf32>
    %8 = vector.broadcast %7 : vector<1x1x8xf32> to vector<16x16x8xf32>
    %9 = arith.addf %5, %8 : vector<16x16x8xf32>
    %cst = arith.constant 0.000000e+00 : f32
    %10 = vector.broadcast %cst : f32 to vector<16x16x8xf32>
    %11 = arith.maximumf %9, %10 : vector<16x16x8xf32>
    %12 = arith.truncf %11 : vector<16x16x8xf32> to vector<16x16x8xbf16>
    %cst_7 = arith.constant 0.000000e+00 : bf16
    %13 = vector.broadcast %cst_7 : bf16 to vector<1x16x8xbf16>
    %14 = tpu.concatenate %13, %12, %13 in 0 : vector<1x16x8xbf16>, vector<16x16x8xbf16>, vector<1x16x8xbf16> -> vector<18x16x8xbf16>
    %cst_8 = arith.constant 0.000000e+00 : bf16
    %15 = vector.broadcast %cst_8 : bf16 to vector<18x1x8xbf16>
    %16 = tpu.concatenate %15, %14, %15 in 1 : vector<18x1x8xbf16>, vector<18x16x8xbf16>, vector<18x1x8xbf16> -> vector<18x18x8xbf16>
    %17 = vector.extract_strided_slice %16 {offsets = [0, 0, 0], sizes = [16, 16, 8], strides = [1, 1, 1]} : vector<18x18x8xbf16> to vector<16x16x8xbf16>
    %18 = vector.extract_strided_slice %16 {offsets = [0, 1, 0], sizes = [16, 16, 8], strides = [1, 1, 1]} : vector<18x18x8xbf16> to vector<16x16x8xbf16>
    %19 = vector.extract_strided_slice %16 {offsets = [0, 2, 0], sizes = [16, 16, 8], strides = [1, 1, 1]} : vector<18x18x8xbf16> to vector<16x16x8xbf16>
    %20 = vector.extract_strided_slice %16 {offsets = [1, 0, 0], sizes = [16, 16, 8], strides = [1, 1, 1]} : vector<18x18x8xbf16> to vector<16x16x8xbf16>
    %21 = vector.extract_strided_slice %16 {offsets = [1, 1, 0], sizes = [16, 16, 8], strides = [1, 1, 1]} : vector<18x18x8xbf16> to vector<16x16x8xbf16>
    %22 = vector.extract_strided_slice %16 {offsets = [1, 2, 0], sizes = [16, 16, 8], strides = [1, 1, 1]} : vector<18x18x8xbf16> to vector<16x16x8xbf16>
    %23 = vector.extract_strided_slice %16 {offsets = [2, 0, 0], sizes = [16, 16, 8], strides = [1, 1, 1]} : vector<18x18x8xbf16> to vector<16x16x8xbf16>
    %24 = vector.extract_strided_slice %16 {offsets = [2, 1, 0], sizes = [16, 16, 8], strides = [1, 1, 1]} : vector<18x18x8xbf16> to vector<16x16x8xbf16>
    %25 = vector.extract_strided_slice %16 {offsets = [2, 2, 0], sizes = [16, 16, 8], strides = [1, 1, 1]} : vector<18x18x8xbf16> to vector<16x16x8xbf16>
    %26 = tpu.concatenate %17, %18, %19, %20, %21, %22, %23, %24, %25 in 2 : vector<16x16x8xbf16>, vector<16x16x8xbf16>, vector<16x16x8xbf16>, vector<16x16x8xbf16>, vector<16x16x8xbf16>, vector<16x16x8xbf16>, vector<16x16x8xbf16>, vector<16x16x8xbf16>, vector<16x16x8xbf16> -> vector<16x16x72xbf16>
    %27 = vector.shape_cast %26 : vector<16x16x72xbf16> to vector<256x72xbf16>
    %c0_9 = arith.constant 0 : index
    %c0_10 = arith.constant 0 : index
    %28 = vector.load %arg4[%c0_9, %c0_10] : memref<72x8xbf16, #tpu.memory_space<vmem>>, vector<72x8xbf16>
    %cst_11 = arith.constant dense<0.000000e+00> : vector<256x8xf32>
    %29 = tpu.matmul %27, %28, %cst_11 {dimension_numbers = #tpu.dot_dimension_numbers<[1], [0], [0], [1], [0, 0, 1, 1], [], []>} : vector<256x72xbf16>, vector<72x8xbf16>, vector<256x8xf32> -> vector<256x8xf32>
    %c0_12 = arith.constant 0 : index
    %c0_13 = arith.constant 0 : index
    %30 = vector.load %arg5[%c0_12, %c0_13] : memref<1x8xf32, #tpu.memory_space<vmem>>, vector<1x8xf32>
    %31 = vector.broadcast %30 : vector<1x8xf32> to vector<256x8xf32>
    %32 = arith.addf %29, %31 : vector<256x8xf32>
    %cst_14 = arith.constant dense<0.000000e+00> : vector<8xf32>
    %33 = vector.multi_reduction <add>, %32, %cst_14 [0] : vector<256x8xf32> to vector<8xf32>
    %34 = vector.shape_cast %33 : vector<8xf32> to vector<1x8xf32>
    %cst_15 = arith.constant 2.560000e+02 : f32
    %35 = vector.broadcast %cst_15 : f32 to vector<1x8xf32>
    %36 = arith.divf %34, %35 : vector<1x8xf32>
    %37 = vector.broadcast %36 : vector<1x8xf32> to vector<256x8xf32>
    %38 = arith.subf %32, %37 : vector<256x8xf32>
    %39 = arith.mulf %38, %38 : vector<256x8xf32>
    %cst_16 = arith.constant dense<0.000000e+00> : vector<8xf32>
    %40 = vector.multi_reduction <add>, %39, %cst_16 [0] : vector<256x8xf32> to vector<8xf32>
    %41 = vector.shape_cast %40 : vector<8xf32> to vector<1x8xf32>
    %42 = vector.shape_cast %32 : vector<256x8xf32> to vector<1x16x16x8xf32>
    %c0_17 = arith.constant 0 : index
    %c0_18 = arith.constant 0 : index
    %c0_19 = arith.constant 0 : index
    %c0_20 = arith.constant 0 : index
    %43 = vector.load %arg6[%c0_17, %c0_18, %c0_19, %c0_20] : memref<1x16x16x8xf32, #tpu.memory_space<vmem>>, vector<1x16x16x8xf32>
    tpu.vector_store %arg6[%c0_17, %c0_18, %c0_19, %c0_20], %42 {strides = array<i32>} : memref<1x16x16x8xf32, #tpu.memory_space<vmem>>, vector<1x16x16x8xf32>,
    %44 = vector.shape_cast %36 : vector<1x8xf32> to vector<1x1x8xf32>
    %c0_21 = arith.constant 0 : index
    %c0_22 = arith.constant 0 : index
    %c0_23 = arith.constant 0 : index
    %45 = vector.load %arg7[%c0_21, %c0_22, %c0_23] : memref<1x1x8xf32, #tpu.memory_space<vmem>>, vector<1x1x8xf32>
    tpu.vector_store %arg7[%c0_21, %c0_22, %c0_23], %44 {strides = array<i32>} : memref<1x1x8xf32, #tpu.memory_space<vmem>>, vector<1x1x8xf32>,
    %46 = vector.shape_cast %41 : vector<1x8xf32> to vector<1x1x8xf32>
    %c0_24 = arith.constant 0 : index
    %c0_25 = arith.constant 0 : index
    %c0_26 = arith.constant 0 : index
    %47 = vector.load %arg8[%c0_24, %c0_25, %c0_26] : memref<1x1x8xf32, #tpu.memory_space<vmem>>, vector<1x1x8xf32>
    tpu.vector_store %arg8[%c0_24, %c0_25, %c0_26], %46 {strides = array<i32>} : memref<1x1x8xf32, #tpu.memory_space<vmem>>, vector<1x1x8xf32>,
    return
  }
  func.func @transform_0(%arg0: i32) -> (i32, i32, i32, i32) {
    %c0_i32 = arith.constant 0 : i32
    %c0_i32_0 = arith.constant 0 : i32
    %c0_i32_1 = arith.constant 0 : i32
    %c0_i32_2 = arith.constant 0 : i32
    return %arg0, %c0_i32, %c0_i32_0, %c0_i32_1 : i32, i32, i32, i32
  }
  func.func @transform_1(%arg0: i32) -> (i32, i32) {
    %c0_i32 = arith.constant 0 : i32
    %c0_i32_0 = arith.constant 0 : i32
    %c0_i32_1 = arith.constant 0 : i32
    return %c0_i32, %c0_i32_0 : i32, i32
  }
  func.func @transform_2(%arg0: i32) -> (i32, i32) {
    %c0_i32 = arith.constant 0 : i32
    %c0_i32_0 = arith.constant 0 : i32
    %c0_i32_1 = arith.constant 0 : i32
    return %c0_i32, %c0_i32_0 : i32, i32
  }
  func.func @transform_3(%arg0: i32) -> (i32, i32) {
    %c0_i32 = arith.constant 0 : i32
    %c0_i32_0 = arith.constant 0 : i32
    %c0_i32_1 = arith.constant 0 : i32
    return %c0_i32, %c0_i32_0 : i32, i32
  }
  func.func @transform_4(%arg0: i32) -> (i32, i32) {
    %c0_i32 = arith.constant 0 : i32
    %c0_i32_0 = arith.constant 0 : i32
    %c0_i32_1 = arith.constant 0 : i32
    return %c0_i32, %c0_i32_0 : i32, i32
  }
  func.func @transform_5(%arg0: i32) -> (i32, i32, i32, i32) {
    %c0_i32 = arith.constant 0 : i32
    %c0_i32_0 = arith.constant 0 : i32
    %c0_i32_1 = arith.constant 0 : i32
    %c0_i32_2 = arith.constant 0 : i32
    return %arg0, %c0_i32, %c0_i32_0, %c0_i32_1 : i32, i32, i32, i32
  }
  func.func @transform_6(%arg0: i32) -> (i32, i32, i32) {
    %c0_i32 = arith.constant 0 : i32
    %c0_i32_0 = arith.constant 0 : i32
    %c0_i32_1 = arith.constant 0 : i32
    return %arg0, %c0_i32, %c0_i32_0 : i32, i32, i32
  }
  func.func @transform_7(%arg0: i32) -> (i32, i32, i32) {
    %c0_i32 = arith.constant 0 : i32
    %c0_i32_0 = arith.constant 0 : i32
    %c0_i32_1 = arith.constant 0 : i32
    return %arg0, %c0_i32, %c0_i32_0 : i32, i32, i32
  }
}

</mosaic_0001>

<bundles_post_ra>
// kernel: double_conv.5
= control target key start
LH: loop header
LB: loop body
LE: loop exit
PB: predicated region body
PF: predicated region fallthrough
CT: control target
= control target key end

     0   :  { %s526_s12 = smov 0   ;;  %s528_s13 = smov 0   ;;  %s671_s0 = inlined_call_operand.vmem [shape: f32[2,16,16,8], index: 0, kind: input, shape index: {}]   ;;  %s672_s1 = inlined_call_operand.vmem [shape: f32[1,8], index: 1, kind: input, shape index: {}]   ;;  %s673_s2 = inlined_call_operand.vmem [shape: f32[1,8], index: 2, kind: input, shape index: {}]   ;;  %s674_s3 = inlined_call_operand.vmem [shape: f32[2,16,16,8], index: 3, kind: output, shape index: {}]  }
   0x1   :  { %s530_s14 = smov 0   ;;  %s532_s15 = smov 0  }
   0x2   :  { %s534_s16 = smov 0  }
   0x3 LB: > { %s22_s17 = sadd.s32 1, %s496_s14  ;;  %s25_s18 = sadd.s32 1, %s500_s15  ;;  %s504_s16 = sphi %s534_s16, %s13_s16   ;;  %s500_s15 = sphi %s532_s15, %s678_s15   ;;  %s496_s14 = sphi %s530_s14, %s677_s14   ;;  %s492_s13 = sphi %s528_s13, %s676_s13   ;;  %s488_s12 = sphi %s526_s12, %s675_s12  }
   0x4   : > { %p23_p0 = scmp.ge.s32.totalorder %s22_s17, 2  ;;  %p413_p1 = scmp.ge.s32.totalorder %s504_s16, 1 }
   0x5   : > { %p159_p2 = scmp.lt.s32.totalorder %s504_s16, 5 }
   0x6   : > { %s680_s17 = smov (%p23_p0, %s22_s17), 0  ;;  %s682_s18 = smov (!%p23_p0, %s25_s18), %s500_s15 }
   0x7   : > { %p160_p3 = pnand %p413_p1, %p159_p2  ;;  %p27_p4 = scmp.ge.s32.totalorder %s682_s18, 2 }
   0x8   : > { %s414_s19 = sshll.u32 (!%p160_p3), %s488_s12, 3  ;;  %p194_p5 = scmp.lt.s32.totalorder (!%p160_p3), %s492_s13, 1  ;;  %v559_v0 = vld [vmem:[%s672_s1] ss:$0 sm:$0xff] (!%p160_p3)  ;;  %vm293_vm0 = vcmask (!%p160_p3), 64512  }
   0x9   : > { %s684_s18 = smov (%p27_p4, %s682_s18), 0  ;;  %163 = sbr.rel (%p160_p3) target bundleno = 39 (0x27), region = 32 }
   0xa   : > { %p196_p6 = scmp.lt.s32.totalorder (!%p160_p3), %s414_s19, 15  ;;  %v569_v1 = vld [vmem:[%s673_s2] ss:$0 sm:$0xff] (!%p160_p3) }
  0x10   : > { %s686_s13 = smov (!%p194_p5, %s492_s13), 1  ;;  %s688_s19 = smov (!%p196_p6, %s414_s19), 15 }
  0x11   : > { %s416_s20 = sshll.u32 %s686_s13, 5  ;;  %s415_s21 = sshll.u32 %s688_s19, 1 }
  0x12   : > { %s200_s22 = sadd.s32 %s416_s20, %s415_s21 }
  0x13   : > { %s417_s23 = sshll.u32 %s200_s22, 3 }
  0x14   : > { %s564_s28 = scalar_lea.vmem %s671_s0, %s417_s23  ;;  %s592_s6 = scalar_lea.vmem %s674_s3, %s417_s23 }
  0x15   : > { %v215_v2 = vld [vmem:[%s564_s28] sm:$0xff]  ;;  %v216_v3 = vld [vmem:[%s564_s28 + $0x8] sm:$0xff]  ;;  %v217_v4 = vld [vmem:[%s564_s28 + $0x10] sm:$0xff] }
  0x16   : > { %v238_v5 = vmul.f32 %v559_v0, %v215_v2  ;;  %v239_v6 = vmul.f32 %v559_v0, %v216_v3  ;;  %v240_v7 = vmul.f32 %v559_v0, %v217_v4  ;;  %v218_v8 = vld [vmem:[%s564_s28 + $0x18] sm:$0xff]  ;;  %v219_v9 = vld [vmem:[%s564_s28 + $0x20] sm:$0xff]  ;;  %v220_v10 = vld [vmem:[%s564_s28 + $0x28] sm:$0xff] }
  0x17   : > { %v241_v11 = vmul.f32 %v559_v0, %v218_v8  ;;  %v242_v12 = vmul.f32 %v559_v0, %v219_v9  ;;  %v243_v13 = vmul.f32 %v559_v0, %v220_v10  ;;  %v221_v14 = vld [vmem:[%s564_s28 + $0x30] sm:$0xff]  ;;  %v222_v15 = vld [vmem:[%s564_s28 + $0x38] sm:$0xff]  ;;  %v223_v24 = vld [vmem:[%s564_s28 + $0x40] sm:$0xff] }
  0x18   : > { %v261_v16 = vadd.f32 %v569_v1, %v238_v5  ;;  %v262_v17 = vadd.f32 %v569_v1, %v239_v6  ;;  %v263_v18 = vadd.f32 %v569_v1, %v240_v7  ;;  %v244_v19 = vmul.f32 %v559_v0, %v221_v14  ;;  %v224_v25 = vld [vmem:[%s564_s28 + $0x48] sm:$0xff]  ;;  %v225_v26 = vld [vmem:[%s564_s28 + $0x50] sm:$0xff]  ;;  %v226_v31 = vld [vmem:[%s564_s28 + $0x58] sm:$0xff] }
  0x19   : > { %v264_v20 = vadd.f32 %v569_v1, %v241_v11  ;;  %v265_v21 = vadd.f32 %v569_v1, %v242_v12  ;;  %v266_v22 = vadd.f32 %v569_v1, %v243_v13  ;;  %v245_v23 = vmul.f32 %v559_v0, %v222_v15  ;;  %v227_v32 = vld [vmem:[%s564_s28 + $0x60] sm:$0xff]  ;;  %v228_v33 = vld [vmem:[%s564_s28 + $0x68] sm:$0xff]  ;;  %v229_v38 = vld [vmem:[%s564_s28 + $0x70] sm:$0xff] }
  0x1a   : > { %v277_v27 = vmax.f32 %v261_v16, 0.0  ;;  %v278_v28 = vmax.f32 %v262_v17, 0.0  ;;  %v279_v29 = vmax.f32 %v263_v18, 0.0  ;;  %v267_v30 = vadd.f32 %v569_v1, %v244_v19  ;;  %v230_v43 = vld [vmem:[%s564_s28 + $0x78] sm:$0xff] }
  0x1b   : > { %v280_v34 = vmax.f32 %v264_v20, 0.0  ;;  %v281_v35 = vmax.f32 %v265_v21, 0.0  ;;  %v282_v36 = vmax.f32 %v266_v22, 0.0  ;;  %v268_v37 = vadd.f32 %v569_v1, %v245_v23 }
  0x1c   : > { %294 = vst.msk [vmem:[%s592_s6] sm:$0xff] %vm293_vm0, %v277_v27  ;;  %295 = vst.msk [vmem:[%s592_s6 + $0x8] sm:$0xff] %vm293_vm0, %v278_v28  ;;  %v283_v39 = vmax.f32 %v267_v30, 0.0  ;;  %v246_v40 = vmul.f32 %v559_v0, %v223_v24  ;;  %v247_v41 = vmul.f32 %v559_v0, %v224_v25  ;;  %v248_v42 = vmul.f32 %v559_v0, %v225_v26 }
  0x1d   : > { %296 = vst.msk [vmem:[%s592_s6 + $0x10] sm:$0xff] %vm293_vm0, %v279_v29  ;;  %297 = vst.msk [vmem:[%s592_s6 + $0x18] sm:$0xff] %vm293_vm0, %v280_v34  ;;  %v284_v44 = vmax.f32 %v268_v37, 0.0  ;;  %v249_v45 = vmul.f32 %v559_v0, %v226_v31  ;;  %v250_v46 = vmul.f32 %v559_v0, %v227_v32  ;;  %v251_v47 = vmul.f32 %v559_v0, %v228_v33 }
  0x1e   : > { %298 = vst.msk [vmem:[%s592_s6 + $0x20] sm:$0xff] %vm293_vm0, %v281_v35  ;;  %299 = vst.msk [vmem:[%s592_s6 + $0x28] sm:$0xff] %vm293_vm0, %v282_v36  ;;  %v269_v48 = vadd.f32 %v569_v1, %v246_v40  ;;  %v270_v49 = vadd.f32 %v569_v1, %v247_v41  ;;  %v271_v50 = vadd.f32 %v569_v1, %v248_v42 }
  0x1f   : > { %300 = vst.msk [vmem:[%s592_s6 + $0x30] sm:$0xff] %vm293_vm0, %v283_v39  ;;  %v252_v51 = vmul.f32 %v559_v0, %v229_v38  ;;  %301 = vst.msk [vmem:[%s592_s6 + $0x38] sm:$0xff] %vm293_vm0, %v284_v44  ;;  %v272_v52 = vadd.f32 %v569_v1, %v249_v45  ;;  %v273_v53 = vadd.f32 %v569_v1, %v250_v46 }
  0x20   : > { %v274_v54 = vadd.f32 %v569_v1, %v251_v47  ;;  %v253_v55 = vmul.f32 %v559_v0, %v230_v43  ;;  %v285_v56 = vmax.f32 %v269_v48, 0.0  ;;  %v286_v57 = vmax.f32 %v270_v49, 0.0 }
  0x21   : > { %v287_v58 = vmax.f32 %v271_v50, 0.0  ;;  %v275_v59 = vadd.f32 %v569_v1, %v252_v51  ;;  %v288_v60 = vmax.f32 %v272_v52, 0.0  ;;  %v289_v61 = vmax.f32 %v273_v53, 0.0 }
  0x22   : > { %v290_v62 = vmax.f32 %v274_v54, 0.0  ;;  %v276_v63 = vadd.f32 %v569_v1, %v253_v55  ;;  %302 = vst.msk [vmem:[%s592_s6 + $0x40] sm:$0xff] %vm293_vm0, %v285_v56  ;;  %303 = vst.msk [vmem:[%s592_s6 + $0x48] sm:$0xff] %vm293_vm0, %v286_v57 }
  0x23   : > { %304 = vst.msk [vmem:[%s592_s6 + $0x50] sm:$0xff] %vm293_vm0, %v287_v58  ;;  %v291_v2 = vmax.f32 %v275_v59, 0.0  ;;  %305 = vst.msk [vmem:[%s592_s6 + $0x58] sm:$0xff] %vm293_vm0, %v288_v60 }
  0x24   : > { %306 = vst.msk [vmem:[%s592_s6 + $0x60] sm:$0xff] %vm293_vm0, %v289_v61  ;;  %307 = vst.msk [vmem:[%s592_s6 + $0x68] sm:$0xff] %vm293_vm0, %v290_v62  ;;  %v292_v0 = vmax.f32 %v276_v63, 0.0 }
  0x25   : > { %308 = vst.msk [vmem:[%s592_s6 + $0x70] sm:$0xff] %vm293_vm0, %v291_v2 }
  0x26   : > { %309 = vst.msk [vmem:[%s592_s6 + $0x78] sm:$0xff] %vm293_vm0, %v292_v0 }
  0x27 PF: > { %s13_s16 = sadd.s32 1, %s504_s16   ;;  %s675_s12 = smov %s496_s14 }
  0x28   : > { %p10_p7 = scmp.ge.s32.totalorder %s13_s16, 6   ;;  %s676_s13 = smov %s500_s15 }
  0x29   : > { %s677_s14 = smov %s680_s17  ;;  %s678_s15 = smov %s684_s18 }
  0x2a   :  { %12 = sbr.rel (!%p10_p7) target bundleno = 3 (0x3), region = 62 }

// kernel: double_conv.3
= control target key start
LH: loop header
LB: loop body
LE: loop exit
PB: predicated region body
PF: predicated region fallthrough
CT: control target
= control target key end

     0   :  { %s2090_s24 = smov 0   ;;  %s3058_s0 = inlined_call_operand.vmem [shape: f32[2,16,16,4], index: 0, kind: input, shape index: {}]   ;;  %s3059_s1 = inlined_call_operand.vmem [shape: f32[1,4], index: 1, kind: input, shape index: {}, may-alias: {1,2}]   ;;  %s3060_s2 = inlined_call_operand.vmem [shape: f32[1,4], index: 2, kind: input, shape index: {}, may-alias: {1,2}]   ;;  %s3061_s3 = inlined_call_operand.vmem [shape: bf16[36,8], index: 3, kind: input, shape index: {}]   ;;  %s3062_s4 = inlined_call_operand.vmem [shape: f32[1,8], index: 4, kind: input, shape index: {}]   ;;  %s3063_s5 = inlined_call_operand.vmem [shape: f32[2,16,16,8], index: 5, kind: output, shape index: {0}]   ;;  %s3064_s6 = inlined_call_operand.vmem [shape: f32[2,1,8], index: 6, kind: output, shape index: {1}]   ;;  %s3065_s7 = inlined_call_operand.vmem [shape: f32[2,1,8], index: 7, kind: output, shape index: {2}]  }
   0x1 LB: > { %s1915_s1 = sadd.s32 4294967295, %s2039_s24   ;;  %p1919_p0 = scmp.ge.s32.totalorder %s2039_s24, 1  ;;  %s2039_s24 = sphi %s2090_s24, %s18_s24  }
   0x2   : > { %p242_p1 = scmp.lt.s32.totalorder %s2039_s24, 3 }
   0x4   : > { %p243_p2 = pnand %p1919_p0, %p242_p1 }
   0x5   : > { %vm498_vm0 = vcmask (!%p243_p2), 1040384   ;;  %vm499_vm1 = vsmask.f32 (!%p243_p2), 256  ;;  %v2041_v0 = vmov (!%p243_p2), 0   ;;  %p280_p3 = scmp.lt.s32.totalorder (!%p243_p2), %s1915_s1, 1  ;;  %vm792_vm3 = vcmask (!%p243_p2), 1046528  }
   0x6   : > { %246 = sbr.rel (%p243_p2) target bundleno = 712 (0x2c8), region = 40  ;;  %v348_v1 = vrot.slane (!%p243_p2), %v2041_v0, 7  ;;  %vm2098_vm2 = vmand (!%p243_p2), %vm498_vm0, %vm499_vm1  ;;  %s2042_s28 = smov (!%p243_p2), 8   ;;  %vm535_vm4 = vsmask.f32 (!%p243_p2), 7424  ;;  %v2030_v50 = vld [vmem:[%s3061_s3] sm:$0xff] (!%p243_p2)  }
   0x7   : > { %s2043_s29 = smov (!%p243_p2), 4   ;;  %s2044_s30 = smov (!%p243_p2), 12   ;;  %1967 = vmatprep.subr.bf16.mxu0 (!%p243_p2), %v2030_v50  ;;  %2005 = vmatprep.subr.bf16.mxu1 (!%p243_p2), %v2030_v50  ;;  %v2031_v62 = vld [vmem:[%s3061_s3 + $0x8] sm:$0xff] (!%p243_p2)   ;;  %vm1406_vm5 = vcmask (!%p243_p2), 1041408   ;;  %vm1082_vm6 = vcmask (!%p243_p2), 31744   ;;  %vm1115_vm7 = vcmask (!%p243_p2), 64512  }
   0x8   : > { %v2104_v3 = vsel (!%p243_p2), %vm2098_vm2, 0, %v348_v1  ;;  %v518_v4 = vsel (!%p243_p2), %vm2098_vm2, %v348_v1, 0  ;;  %s2045_s10 = smov (!%p243_p2), 24   ;;  %1968 = vmatpush3.bf16.msra.mxu0 (!%p243_p2), %v2030_v50  ;;  %2008 = vmatpush3.bf16.msra.mxu1 (!%p243_p2), %v2030_v50  ;;  %s2046_s13 = smov (!%p243_p2), 20   ;;  %vm1148_vm8 = vcmask (!%p243_p2), 97280   ;;  %vm1181_vm9 = vcmask (!%p243_p2), 130048  }
   0x9   : > { %v793_v5 = vrot.slane (!%p243_p2), %v2104_v3, 1  ;;  %v794_v6 = vrot.slane (!%p243_p2), %v518_v4, 1  ;;  %v537_v7 = vshrl.u32 (!%p243_p2), %v2104_v3, 16  ;;  %v539_v8 = vshll.u32 (!%p243_p2), %v2104_v3, 16  ;;  %1969 = vmatprep.subr.bf16.mxu0 (!%p243_p2), %v2031_v62  ;;  %2006 = vmatprep.subr.bf16.mxu1 (!%p243_p2), %v2031_v62  ;;  %s2047_s14 = smov (!%p243_p2), 16   ;;  %s2048_s15 = smov (!%p243_p2), 28  }
   0xa   : > { %v544_v9 = vshll.u32 (!%p243_p2), %v518_v4, 16  ;;  %s2049_s16 = smov (!%p243_p2), 32   ;;  %vm1214_vm10 = vcmask (!%p243_p2), 162816   ;;  %vm1247_vm11 = vcmask (!%p243_p2), 195584   ;;  %vm1280_vm12 = vcmask (!%p243_p2), 228352  }
   0xb   : > { %v2115_v10 = vsel (!%p243_p2), %vm792_vm3, %v793_v5, %v794_v6  ;;  %v541_v11 = vrot.slane (!%p243_p2), %v539_v8, 1  ;;  %vm1313_vm13 = vcmask (!%p243_p2), 261120   ;;  %vm1373_vm14 = vcmask (!%p243_p2), 293888  }
   0xc   : > { %841 = vrot.lane.b32.xlu1 (!%p243_p2), %v2115_v10, %s2042_s28  ;;  %v546_v12 = vrot.slane (!%p243_p2), %v544_v9, 1  ;;  %1970 = vmatpush3.bf16.msra.mxu0 (!%p243_p2), %v2031_v62  ;;  %vm1807_vm15 = vcmask (!%p243_p2), 57344  }
   0xd   : > { %s3069_s1 = smov (!%p280_p3, %s1915_s1), 1  ;;  %v542_v16 = vor.u32 %v541_v11, %v537_v7  ;;  %2009 = vmatpush3.bf16.msra.mxu1 %v2031_v62 }
   0xe   : > { %s1946_s2 = sshll.u32 %s3069_s1, 8  ;;  %s292_s26 = scalar_lea.vmem %s3064_s6, %s3069_s1 }
   0xf   : > { %s2122_s27 = scalar_lea.vmem %s3058_s0, %s1946_s2  ;;  %v2133_v23 = vsel %vm535_vm4, %v542_v16, %v546_v12  ;;  %s2678_s23 = scalar_lea.vmem %s3063_s5, %s1946_s2 }
  0x10   : > { %v299_v13 = vld [vmem:[%s2122_s27 + $0x10] sm:$0xff]  ;;  %v300_v14 = vld [vmem:[%s2122_s27 + $0x18] sm:$0xff]  ;;  %v297_v15 = vld [vmem:[%s2122_s27] sm:$0xff]  ;;  %728 = vrot.lane.b32.xlu0 %v2133_v23, %s2043_s29 }
  0x11   : > { %v330_v17 = vpack.c.bf16 %v300_v14, %v299_v13  ;;  %v298_v18 = vld [vmem:[%s2122_s27 + $0x8] sm:$0xff]  ;;  %v301_v19 = vld [vmem:[%s2122_s27 + $0x20] sm:$0xff]  ;;  %v303_v48 = vld [vmem:[%s2122_s27 + $0x30] sm:$0xff] }
  0x12   : > { %v302_v20 = vld [vmem:[%s2122_s27 + $0x28] sm:$0xff]  ;;  %v329_v21 = vpack.c.bf16 %v298_v18, %v297_v15  ;;  %v304_v49 = vld [vmem:[%s2122_s27 + $0x38] sm:$0xff]  ;;  %v305_v15 = vld [vmem:[%s2122_s27 + $0x40] sm:$0xff] }
  0x13   : > { %v331_v22 = vpack.c.bf16 %v302_v20, %v301_v19  ;;  %v360_v24 = vshrl.u32 %v330_v17, 16  ;;  %v363_v25 = vshll.u32 %v330_v17, 16  ;;  %v332_v61 = vpack.c.bf16 %v304_v49, %v303_v48  ;;  %v306_v16 = vld [vmem:[%s2122_s27 + $0x48] sm:$0xff] }
  0x14   : > { %v353_v26 = vshrl.u32 %v329_v21, 16  ;;  %v356_v27 = vshll.u32 %v329_v21, 16  ;;  %v333_v19 = vpack.c.bf16 %v306_v16, %v305_v15 }
  0x15   : > { %v367_v28 = vshrl.u32 %v331_v22, 16  ;;  %v370_v29 = vshll.u32 %v331_v22, 16  ;;  %v362_v30 = vrot.slane %v360_v24, 7  ;;  %v374_v8 = vshrl.u32 %v332_v61, 16 }
  0x16   : > { %v355_v31 = vrot.slane %v353_v26, 7  ;;  %v377_v14 = vshll.u32 %v332_v61, 16  ;;  %v381_v24 = vshrl.u32 %v333_v19, 16 }
  0x17   : > { %v369_v32 = vrot.slane %v367_v28, 7  ;;  %v365_v33 = vor.u32 %v363_v25, %v362_v30  ;;  %v520_v39 = vsel %vm2098_vm2, %v362_v30, 0  ;;  %v376_v13 = vrot.slane %v374_v8, 7  ;;  %v2032_v30 = vld [vmem:[%s3061_s3 + $0x10] ss:$0 sps:$4 sm:$0x33]  }
  0x18   : > { %v358_v34 = vor.u32 %v356_v27, %v355_v31  ;;  %v519_v36 = vsel %vm2098_vm2, %v355_v31, 0  ;;  %v800_v52 = vrot.slane %v520_v39, 1  ;;  %v568_v53 = vshll.u32 %v520_v39, 16  ;;  %2011 = vmatprep.subr.msk.bf16.mxu0 %vm1406_vm5, %v2032_v30  ;;  %2012 = vmatprep.subr.msk.bf16.mxu1 %vm1406_vm5, %v2032_v30 }
  0x19   : > { %v372_v35 = vor.u32 %v370_v29, %v369_v32  ;;  %v2141_v37 = vsel %vm2098_vm2, 0, %v365_v33  ;;  %v797_v42 = vrot.slane %v519_v36, 1  ;;  %v556_v45 = vshll.u32 %v519_v36, 16 }
  0x1a   : > { %876 = vrot.lane.b32.xlu1 %v2141_v37, %s2044_s30  ;;  %v2147_v38 = vsel %vm2098_vm2, 0, %v358_v34  ;;  %v563_v46 = vshll.u32 %v2141_v37, 16  ;;  %v799_v51 = vrot.slane %v2141_v37, 1  ;;  %v561_v55 = vshrl.u32 %v2141_v37, 16 }
  0x1b   : > { %874 = vrot.lane.b32.xlu0 %v2147_v38, %s2044_s30  ;;  %v2155_v40 = vsel %vm2098_vm2, 0, %v372_v35  ;;  %v796_v41 = vrot.slane %v2147_v38, 1  ;;  %v551_v43 = vshll.u32 %v2147_v38, 16  ;;  %v549_v44 = vshrl.u32 %v2147_v38, 16 }
  0x1c   : > { %v565_v56 = vrot.slane %v563_v46, 1  ;;  %v575_v57 = vshll.u32 %v2155_v40, 16  ;;  %v558_v59 = vrot.slane %v556_v45, 1  ;;  %v521_v60 = vsel %vm2098_vm2, %v369_v32, 0 }
  0x1d   : > { %v553_v47 = vrot.slane %v551_v43, 1  ;;  %v798_v54 = vsel %vm792_vm3, %v796_v41, %v797_v42  ;;  %v801_v63 = vsel %vm792_vm3, %v799_v51, %v800_v52  ;;  %v570_v0 = vrot.slane %v568_v53, 1  ;;  %v307_v41 = vld [vmem:[%s2122_s27 + $0x50] sm:$0xff]  ;;  %v308_v42 = vld [vmem:[%s2122_s27 + $0x58] sm:$0xff] }
  0x1e   : > { %988 = vrot.lane.b32.xlu1 %v2155_v40, %s2045_s10  ;;  %v566_v1 = vor.u32 %v565_v56, %v561_v55  ;;  %v573_v4 = vshrl.u32 %v2155_v40, 16  ;;  %v577_v5 = vrot.slane %v575_v57, 1  ;;  %v580_v6 = vshll.u32 %v521_v60, 16 }
  0x1f   : > { %986 = vrot.lane.b32.xlu0 %v2141_v37, %s2045_s10  ;;  %v554_v58 = vor.u32 %v553_v47, %v549_v44  ;;  %v379_v18 = vor.u32 %v377_v14, %v376_v13  ;;  %v802_v20 = vrot.slane %v2155_v40, 1  ;;  %v803_v21 = vrot.slane %v521_v60, 1  ;;  %v310_v60 = vld [vmem:[%s2122_s27 + $0x68] sm:$0xff] }
  0x20   : > { %v571_v9 = vsel %vm535_vm4, %v566_v1, %v570_v0  ;;  %v578_v11 = vor.u32 %v577_v5, %v573_v4  ;;  %v582_v12 = vrot.slane %v580_v6, 1  ;;  %v522_v27 = vsel %vm2098_vm2, %v376_v13, 0 }
  0x21   : > { %v559_v7 = vsel %vm535_vm4, %v554_v58, %v558_v59  ;;  %v2197_v22 = vsel %vm2098_vm2, 0, %v379_v18  ;;  %v804_v26 = vsel %vm792_vm3, %v802_v20, %v803_v21  ;;  %v383_v28 = vrot.slane %v381_v24, 7  ;;  %v309_v59 = vld [vmem:[%s2122_s27 + $0x60] sm:$0xff]  ;;  %v312_v20 = vld [vmem:[%s2122_s27 + $0x78] sm:$0xff] }
  0x22   : > { %843 = vrot.lane.b32.xlu1 %v798_v54, %s2042_s28  ;;  %v583_v17 = vsel %vm535_vm4, %v578_v11, %v582_v12  ;;  %v587_v25 = vshll.u32 %v2197_v22, 16  ;;  %v384_v29 = vshll.u32 %v333_v19, 16  ;;  %v585_v31 = vshrl.u32 %v2197_v22, 16  ;;  %v311_v19 = vld [vmem:[%s2122_s27 + $0x70] sm:$0xff] }
  0x23   : > { %954 = vrot.lane.b32.xlu0 %v798_v54, %s2046_s13  ;;  %v592_v33 = vshll.u32 %v522_v27, 16  ;;  %v1408_v43 = vsel %vm1406_vm5, %v2032_v30, 0  ;;  %v805_v45 = vrot.slane %v2197_v22, 1  ;;  %v806_v46 = vrot.slane %v522_v27, 1 }
  0x24   : > { %v589_v32 = vrot.slane %v587_v25, 1  ;;  %v386_v34 = vor.u32 %v384_v29, %v383_v28  ;;  %1972 = vmatpush3.bf16.msra.mxu0 %v1408_v43  ;;  %2010 = vmatpush3.bf16.msra.mxu1 %v1408_v43  ;;  %v523_v48 = vsel %vm2098_vm2, %v383_v28, 0  ;;  %v334_v49 = vpack.c.bf16 %v308_v42, %v307_v41  ;;  %v313_v42 = vld [vmem:[%s2122_s27 + $0x80] sm:$0xff]  ;;  %v314_v43 = vld [vmem:[%s2122_s27 + $0x88] sm:$0xff] }
  0x25   : > { %v594_v36 = vrot.slane %v592_v33, 1  ;;  %v807_v50 = vsel %vm792_vm3, %v805_v45, %v806_v46  ;;  %v604_v53 = vshll.u32 %v523_v48, 16  ;;  %v809_v1 = vrot.slane %v523_v48, 1 }
  0x26   : > { %956 = vrot.lane.b32.xlu1 %v801_v63, %s2046_s13  ;;  %v590_v35 = vor.u32 %v589_v32, %v585_v31  ;;  %v2215_v39 = vsel %vm2098_vm2, 0, %v386_v34  ;;  %v388_v54 = vshrl.u32 %v334_v49, 16  ;;  %v391_v58 = vshll.u32 %v334_v49, 16 }
  0x27   : > { %730 = vrot.lane.b32.xlu0 %v559_v7, %s2043_s29  ;;  %v599_v47 = vshll.u32 %v2215_v39, 16  ;;  %v597_v51 = vshrl.u32 %v2215_v39, 16  ;;  %v606_v56 = vrot.slane %v604_v53, 1  ;;  %v808_v0 = vrot.slane %v2215_v39, 1 }
  0x28   : > { %v595_v44 = vsel %vm535_vm4, %v590_v35, %v594_v36  ;;  %v390_v57 = vrot.slane %v388_v54, 7  ;;  %v336_v28 = vpack.c.bf16 %v312_v20, %v311_v19  ;;  %v337_v46 = vpack.c.bf16 %v314_v43, %v313_v42 }
  0x29   : > { %v601_v52 = vrot.slane %v599_v47, 1 }
  0x2a   : > { %920 = vrot.lane.b32.xlu1 %v571_v9, %s2047_s14  ;;  %v393_v62 = vor.u32 %v391_v58, %v390_v57  ;;  %v524_v8 = vsel %vm2098_vm2, %v390_v57, 0  ;;  %v402_v33 = vshrl.u32 %v336_v28, 16  ;;  %v405_v41 = vshll.u32 %v336_v28, 16 }
  0x2b   : > { %918 = vrot.lane.b32.xlu0 %v559_v7, %s2047_s14  ;;  %v602_v55 = vor.u32 %v601_v52, %v597_v51  ;;  %v810_v7 = vsel %vm792_vm3, %v808_v0, %v809_v1  ;;  %v616_v14 = vshll.u32 %v524_v8, 16  ;;  %v812_v25 = vrot.slane %v524_v8, 1  ;;  %v316_v0 = vld [vmem:[%s2122_s27 + $0x98] sm:$0xff] }
  0x2c   : > { %v2246_v4 = vsel %vm2098_vm2, 0, %v393_v62  ;;  %v404_v36 = vrot.slane %v402_v33, 7 }
  0x2d   : > { %v607_v61 = vsel %vm535_vm4, %v602_v55, %v606_v56  ;;  %v611_v6 = vshll.u32 %v2246_v4, 16  ;;  %v609_v12 = vshrl.u32 %v2246_v4, 16  ;;  %v811_v24 = vrot.slane %v2246_v4, 1 }
  0x2e   : > { %1020 = vrot.lane.b32.xlu1 %v583_v17, %s2048_s15  ;;  %v407_v45 = vor.u32 %v405_v41, %v404_v36  ;;  %v526_v53 = vsel %vm2098_vm2, %v404_v36, 0  ;;  %v412_v55 = vshll.u32 %v337_v46, 16 }
  0x2f   : > { %1018 = vrot.lane.b32.xlu0 %v571_v9, %s2048_s15  ;;  %v613_v13 = vrot.slane %v611_v6, 1  ;;  %v813_v29 = vsel %vm792_vm3, %v811_v24, %v812_v25  ;;  %v640_v58 = vshll.u32 %v526_v53, 16  ;;  %v818_v6 = vrot.slane %v526_v53, 1  ;;  %v317_v25 = vld [vmem:[%s2122_s27 + $0xa0] sm:$0xff] }
  0x30   : > { %v2292_v49 = vsel %vm2098_vm2, 0, %v407_v45 }
  0x31   : > { %v614_v16 = vor.u32 %v613_v13, %v609_v12  ;;  %v635_v51 = vshll.u32 %v2292_v49, 16  ;;  %v633_v56 = vshrl.u32 %v2292_v49, 16 }
  0x32   : > { %732 = vrot.lane.b32.xlu1 %v571_v9, %s2043_s29 }
  0x33   : > { %1050 = vrot.lane.b32.xlu0 %v801_v63, %s2049_s16  ;;  %v637_v57 = vrot.slane %v635_v51, 1 }
  0x36   : > { %734 = vrot.lane.b32.xlu1 %v583_v17, %s2043_s29 }
  0x37   : > { %1052 = vrot.lane.b32.xlu0 %v804_v26, %s2049_s16 }
  0x3a   : > { %847 = vrot.lane.b32.xlu1 %v804_v26, %s2042_s28 }
  0x3b   : > { %845 = vrot.lane.b32.xlu0 %v801_v63, %s2042_s28  ;;  %v335_v63 = vpack.c.bf16 %v310_v60, %v309_v59  ;;  %v638_v60 = vor.u32 %v637_v57, %v633_v56 }
  0x3d   : > { %v395_v5 = vshrl.u32 %v335_v63, 16  ;;  %v398_v11 = vshll.u32 %v335_v63, 16  ;;  %v315_v63 = vld [vmem:[%s2122_s27 + $0x90] sm:$0xff] }
  0x3e   : > { %880 = vrot.lane.b32.xlu1 %v2197_v22, %s2044_s30 }
  0x3f   : > { %878 = vrot.lane.b32.xlu0 %v2155_v40, %s2044_s30  ;;  %v397_v9 = vrot.slane %v395_v5, 7  ;;  %v817_v5 = vrot.slane %v2292_v49, 1 }
  0x41   : > { %v400_v15 = vor.u32 %v398_v11, %v397_v9  ;;  %v525_v27 = vsel %vm2098_vm2, %v397_v9, 0  ;;  %v338_v9 = vpack.c.bf16 %v316_v0, %v315_v63  ;;  %v819_v11 = vsel %vm792_vm3, %v817_v5, %v818_v6  ;;  %v319_v6 = vld [vmem:[%s2122_s27 + $0xb0] sm:$0xff] }
  0x42   : > { %924 = vrot.lane.b32.xlu1 %v595_v44, %s2047_s14  ;;  %v628_v32 = vshll.u32 %v525_v27, 16  ;;  %v815_v48 = vrot.slane %v525_v27, 1 }
  0x43   : > { %922 = vrot.lane.b32.xlu0 %v583_v17, %s2047_s14  ;;  %v618_v17 = vrot.slane %v616_v14, 1  ;;  %v2261_v18 = vsel %vm2098_vm2, 0, %v400_v15  ;;  %v416_v15 = vshrl.u32 %v338_v9, 16  ;;  %v419_v24 = vshll.u32 %v338_v9, 16 }
  0x44   : > { %v621_v30 = vshrl.u32 %v2261_v18, 16  ;;  %v630_v35 = vrot.slane %v628_v32, 1  ;;  %v814_v47 = vrot.slane %v2261_v18, 1 }
  0x45   : > { %v619_v21 = vsel %vm535_vm4, %v614_v16, %v618_v17 }
  0x46   : > { %960 = vrot.lane.b32.xlu1 %v807_v50, %s2046_s13  ;;  %v816_v52 = vsel %vm792_vm3, %v814_v47, %v815_v48 }
  0x47   : > { %958 = vrot.lane.b32.xlu0 %v804_v26, %s2046_s13  ;;  %v623_v26 = vshll.u32 %v2261_v18, 16 }
  0x49   : > { %v625_v31 = vrot.slane %v623_v26, 1  ;;  %v318_v26 = vld [vmem:[%s2122_s27 + $0xa8] sm:$0xff] }
  0x4a   : > { %992 = vrot.lane.b32.xlu1 %v2215_v39, %s2045_s10 }
  0x4b   : > { %990 = vrot.lane.b32.xlu0 %v2197_v22, %s2045_s10  ;;  %v626_v34 = vor.u32 %v625_v31, %v621_v30  ;;  %v339_v30 = vpack.c.bf16 %v318_v26, %v317_v25 }
  0x4d   : > { %v423_v36 = vshrl.u32 %v339_v30, 16  ;;  %v426_v47 = vshll.u32 %v339_v30, 16 }
  0x4e   : > { %1024 = vrot.lane.b32.xlu1 %v607_v61, %s2048_s15 }
  0x4f   : > { %1022 = vrot.lane.b32.xlu0 %v595_v44, %s2048_s15 }
  0x52   : > { %736 = vrot.lane.b32.xlu1 %v595_v44, %s2043_s29  ;;  %v631_v44 = vsel %vm535_vm4, %v626_v34, %v630_v35 }
  0x53   : > { %1054 = vrot.lane.b32.xlu0 %v807_v50, %s2049_s16 }
  0x56   : > { %738 = vrot.lane.b32.xlu1 %v607_v61, %s2043_s29 }
  0x57   : > { %1056 = vrot.lane.b32.xlu0 %v810_v7, %s2049_s16 }
  0x5a   : > { %851 = vrot.lane.b32.xlu1 %v810_v7, %s2042_s28 }
  0x5b   : > { %849 = vrot.lane.b32.xlu0 %v807_v50, %s2042_s28  ;;  %v409_v50 = vshrl.u32 %v337_v46, 16  ;;  %v425_v46 = vrot.slane %v423_v36, 7 }
  0x5d   : > { %v411_v54 = vrot.slane %v409_v50, 7 }
  0x5e   : > { %884 = vrot.lane.b32.xlu1 %v2246_v4, %s2044_s30 }
  0x5f   : > { %882 = vrot.lane.b32.xlu0 %v2215_v39, %s2044_s30  ;;  %v414_v59 = vor.u32 %v412_v55, %v411_v54  ;;  %v527_v8 = vsel %vm2098_vm2, %v411_v54, 0  ;;  %v428_v54 = vor.u32 %v426_v47, %v425_v46 }
  0x60   : > { %v652_v14 = vshll.u32 %v527_v8, 16  ;;  %v821_v34 = vrot.slane %v527_v8, 1 }
  0x61   : > { %v2307_v62 = vsel %vm2098_vm2, 0, %v414_v59  ;;  %v2369_v0 = vsel %vm2098_vm2, 0, %v428_v54 }
  0x62   : > { %928 = vrot.lane.b32.xlu1 %v619_v21, %s2047_s14  ;;  %v645_v12 = vshrl.u32 %v2307_v62, 16  ;;  %v654_v20 = vrot.slane %v652_v14, 1  ;;  %v820_v33 = vrot.slane %v2307_v62, 1  ;;  %v671_v14 = vshll.u32 %v2369_v0, 16 }
  0x63   : > { %926 = vrot.lane.b32.xlu0 %v607_v61, %s2047_s14  ;;  %v642_v61 = vrot.slane %v640_v58, 1  ;;  %v669_v26 = vshrl.u32 %v2369_v0, 16 }
  0x65   : > { %v643_v1 = vsel %vm535_vm4, %v638_v60, %v642_v61 }
  0x66   : > { %964 = vrot.lane.b32.xlu1 %v813_v29, %s2046_s13 }
  0x67   : > { %962 = vrot.lane.b32.xlu0 %v810_v7, %s2046_s13  ;;  %v647_v7 = vshll.u32 %v2307_v62, 16 }
  0x69   : > { %v649_v13 = vrot.slane %v647_v7, 1  ;;  %v320_v7 = vld [vmem:[%s2122_s27 + $0xb8] sm:$0xff] }
  0x6a   : > { %996 = vrot.lane.b32.xlu1 %v2261_v18, %s2045_s10 }
  0x6b   : > { %994 = vrot.lane.b32.xlu0 %v2246_v4, %s2045_s10  ;;  %v650_v19 = vor.u32 %v649_v13, %v645_v12 }
  0x6d   : > { %v2333_v27 = vsel %vm535_vm4, %v650_v19, %v654_v20  ;;  %v340_v19 = vpack.c.bf16 %v320_v7, %v319_v6 }
  0x6e   : > { %1028 = vrot.lane.b32.xlu1 %v631_v44, %s2048_s15 }
  0x6f   : > { %1026 = vrot.lane.b32.xlu0 %v619_v21, %s2048_s15 }
  0x72   : > { %740 = vrot.lane.b32.xlu1 %v619_v21, %s2043_s29  ;;  %v418_v21 = vrot.slane %v416_v15, 7 }
  0x73   : > { %1058 = vrot.lane.b32.xlu0 %v813_v29, %s2049_s16 }
  0x74   : > { %v528_v45 = vsel %vm2098_vm2, %v418_v21, 0 }
  0x76   : > { %742 = vrot.lane.b32.xlu1 %v631_v44, %s2043_s29 }
  0x77   : > { %1060 = vrot.lane.b32.xlu0 %v816_v52, %s2049_s16 }
  0x7a   : > { %855 = vrot.lane.b32.xlu1 %v816_v52, %s2042_s28 }
  0x7b   : > { %853 = vrot.lane.b32.xlu0 %v813_v29, %s2042_s28  ;;  %v421_v29 = vor.u32 %v419_v24, %v418_v21 }
  0x7d   : > { %v2343_v35 = vsel %vm2098_vm2, 0, %v421_v29 }
  0x7e   : > { %888 = vrot.lane.b32.xlu1 %v2292_v49, %s2044_s30  ;;  %v842_v16 = vpop.permute.xlu1 %841  ;;  %v659_v42 = vshll.u32 %v2343_v35, 16  ;;  %v657_v50 = vshrl.u32 %v2343_v35, 16  ;;  %v823_v9 = vrot.slane %v2343_v35, 1 }
  0x7f   : > { %886 = vrot.lane.b32.xlu0 %v2261_v18, %s2044_s30 }
  0x80   : > { %v661_v51 = vrot.slane %v659_v42, 1 }
  0x82   : > { %932 = vrot.lane.b32.xlu1 %v643_v1, %s2047_s14  ;;  %v729_v17 = vpop.permute.xlu0 %728  ;;  %v662_v59 = vor.u32 %v661_v51, %v657_v50  ;;  %v321_v50 = vld [vmem:[%s2122_s27 + $0xc0] sm:$0xff] }
  0x83   : > { %930 = vrot.lane.b32.xlu0 %v631_v44, %s2047_s14  ;;  %v2349_v44 = vsel %vm792_vm3, %v820_v33, %v821_v34  ;;  %v1084_v55 = vsel %vm1082_vm6, %v2104_v3, %v729_v17  ;;  %v529_v17 = vsel %vm2098_vm2, %v425_v46, 0  ;;  %v433_v46 = vshll.u32 %v340_v19, 16 }
  0x84   : > { %v1117_v61 = vsel %vm1115_vm7, %v1084_v55, %v842_v16  ;;  %v676_v29 = vshll.u32 %v529_v17, 16 }
  0x86   : > { %968 = vrot.lane.b32.xlu1 %v819_v11, %s2046_s13  ;;  %v678_v42 = vrot.slane %v676_v29, 1 }
  0x87   : > { %966 = vrot.lane.b32.xlu0 %v816_v52, %s2046_s13  ;;  %v664_v52 = vshll.u32 %v528_v45, 16 }
  0x89   : > { %v666_v60 = vrot.slane %v664_v52, 1 }
  0x8a   : > { %1000 = vrot.lane.b32.xlu1 %v2307_v62, %s2045_s10 }
  0x8b   : > { %998 = vrot.lane.b32.xlu0 %v2292_v49, %s2045_s10  ;;  %v667_v13 = vsel %vm535_vm4, %v662_v59, %v666_v60 }
  0x8c   : > { %v877_v28 = vpop.permute.xlu1 %876 }
  0x8d   : > { %v875_v31 = vpop.permute.xlu0 %874 }
  0x8e   : > { %1032 = vrot.lane.b32.xlu1 %v2333_v27, %s2048_s15 }
  0x8f   : > { %1030 = vrot.lane.b32.xlu0 %v643_v1, %s2048_s15 }
  0x90   : > { %v2338_v32 = vpop.permute.xlu1 %988 }
  0x91   : > { %v987_v41 = vpop.permute.xlu0 %986 }
  0x92   : > { %744 = vrot.lane.b32.xlu1 %v643_v1, %s2043_s29 }
  0x93   : > { %1062 = vrot.lane.b32.xlu0 %v819_v11, %s2049_s16 }
  0x94   : > { %v844_v43 = vpop.permute.xlu1 %843 }
  0x95   : > { %v955_v48 = vpop.permute.xlu0 %954 }
  0x96   : > { %746 = vrot.lane.b32.xlu1 %v2333_v27, %s2043_s29 }
  0x97   : > { %1064 = vrot.lane.b32.xlu0 %v2349_v44, %s2049_s16 }
  0x98   : > { %v957_v53 = vpop.permute.xlu1 %956 }
  0x99   : > { %v731_v56 = vpop.permute.xlu0 %730 }
  0x9a   : > { %v1086_v57 = vsel %vm1082_vm6, %v2147_v38, %v731_v56  ;;  %859 = vrot.lane.b32.xlu1 %v2349_v44, %s2042_s28  ;;  %v1150_v38 = vsel %vm1148_vm8, %v1117_v61, %v875_v31  ;;  %v430_v31 = vshrl.u32 %v340_v19, 16 }
  0x9b   : > { %v1119_v58 = vsel %vm1115_vm7, %v1086_v57, %v844_v43  ;;  %857 = vrot.lane.b32.xlu0 %v819_v11, %s2042_s28  ;;  %v824_v11 = vrot.slane %v528_v45, 1  ;;  %v826_v57 = vrot.slane %v2369_v0, 1 }
  0x9c   : > { %v921_v63 = vpop.permute.xlu1 %920  ;;  %v1152_v1 = vsel %vm1148_vm8, %v1119_v58, %v877_v28  ;;  %v673_v28 = vrot.slane %v671_v14, 1  ;;  %v432_v45 = vrot.slane %v430_v31, 7  ;;  %v827_v58 = vrot.slane %v529_v17, 1 }
  0x9d   : > { %v919_v5 = vpop.permute.xlu0 %918  ;;  %v1185_v15 = vsel %vm1181_vm9, %v1152_v1, %v921_v63  ;;  %v825_v24 = vsel %vm792_vm3, %v823_v9, %v824_v11 }
  0x9e   : > { %v1183_v8 = vsel %vm1181_vm9, %v1150_v38, %v919_v5  ;;  %892 = vrot.lane.b32.xlu1 %v2343_v35, %s2044_s30  ;;  %v1218_v25 = vsel %vm1214_vm10, %v1185_v15, %v957_v53  ;;  %v435_v53 = vor.u32 %v433_v46, %v432_v45  ;;  %v828_v1 = vsel %vm792_vm3, %v826_v57, %v827_v58 }
  0x9f   : > { %v1216_v12 = vsel %vm1214_vm10, %v1183_v8, %v955_v48  ;;  %890 = vrot.lane.b32.xlu0 %v2307_v62, %s2044_s30  ;;  %v1251_v36 = vsel %vm1247_vm11, %v1218_v25, %v2338_v32  ;;  %v322_v32 = vld [vmem:[%s2122_s27 + $0xc8] sm:$0xff]  ;;  %v530_v5 = vsel %vm2098_vm2, %v432_v45, 0  ;;  %v323_v25 = vld [vmem:[%s2122_s27 + $0xd0] sm:$0xff] }
  0xa0   : > { %v1021_v16 = vpop.permute.xlu1 %1020  ;;  %v1249_v21 = vsel %vm1247_vm11, %v1216_v12, %v987_v41  ;;  %v674_v41 = vor.u32 %v673_v28, %v669_v26  ;;  %v341_v54 = vpack.c.bf16 %v322_v32, %v321_v50  ;;  %v2421_v59 = vsel %vm2098_vm2, 0, %v435_v53  ;;  %v324_v26 = vld [vmem:[%s2122_s27 + $0xd8] sm:$0xff] }
  0xa1   : > { %v1019_v20 = vpop.permute.xlu0 %1018  ;;  %v1284_v47 = vsel %vm1280_vm12, %v1251_v36, %v1021_v16  ;;  %v683_v63 = vshll.u32 %v2421_v59, 16  ;;  %v681_v9 = vshrl.u32 %v2421_v59, 16  ;;  %v688_v12 = vshll.u32 %v530_v5, 16 }
  0xa2   : > { %936 = vrot.lane.b32.xlu1 %v667_v13, %s2047_s14  ;;  %v1282_v33 = vsel %vm1280_vm12, %v1249_v21, %v1019_v20  ;;  %v437_v60 = vshrl.u32 %v341_v54, 16  ;;  %v440_v7 = vshll.u32 %v341_v54, 16  ;;  %v829_v28 = vrot.slane %v2421_v59, 1 }
  0xa3   : > { %934 = vrot.lane.b32.xlu0 %v2333_v27, %s2047_s14  ;;  %v685_v11 = vrot.slane %v683_v63, 1  ;;  %v690_v17 = vrot.slane %v688_v12, 1  ;;  %v830_v29 = vrot.slane %v530_v5, 1 }
  0xa4   : > { %v2394_v30 = vpop.permute.xlu1 %732  ;;  %v439_v6 = vrot.slane %v437_v60, 7 }
  0xa5   : > { %v1051_v34 = vpop.permute.xlu0 %1050  ;;  %v686_v16 = vor.u32 %v685_v11, %v681_v9  ;;  %v831_v50 = vsel %vm792_vm3, %v829_v28, %v830_v29  ;;  %v326_v9 = vld [vmem:[%s2122_s27 + $0xe8] sm:$0xff] }
  0xa6   : > { %972 = vrot.lane.b32.xlu1 %v825_v24, %s2046_s13  ;;  %v1315_v27 = vsel %vm1313_vm13, %v1282_v33, %v1051_v34  ;;  %v442_v14 = vor.u32 %v440_v7, %v439_v6  ;;  %v531_v33 = vsel %vm2098_vm2, %v439_v6, 0 }
  0xa7   : > { %970 = vrot.lane.b32.xlu0 %v2349_v44, %s2046_s13  ;;  %1973 = vmatprep.mubr.msk.bf16.mxu0 %vm1373_vm14, %v1315_v27  ;;  %v679_v44 = vsel %vm535_vm4, %v674_v41, %v678_v42  ;;  %v691_v31 = vsel %vm535_vm4, %v686_v16, %v690_v17  ;;  %v342_v41 = vpack.c.bf16 %v324_v26, %v323_v25 }
  0xa8   : > { %v2404_v43 = vpop.permute.xlu1 %734  ;;  %v2436_v20 = vsel %vm2098_vm2, 0, %v442_v14 }
  0xa9   : > { %v1053_v48 = vpop.permute.xlu0 %1052  ;;  %v695_v34 = vshll.u32 %v2436_v20, 16  ;;  %v447_v6 = vshll.u32 %v342_v41, 16  ;;  %v832_v17 = vrot.slane %v2436_v20, 1 }
  0xaa   : > { %v1317_v51 = vsel %vm1313_vm13, %v1284_v47, %v1053_v48  ;;  %1004 = vrot.lane.b32.xlu1 %v2369_v0, %s2045_s10  ;;  %v1090_v47 = vsel %vm1082_vm6, %v2155_v40, %v2404_v43 }
  0xab   : > { %1002 = vrot.lane.b32.xlu0 %v2343_v35, %s2045_s10  ;;  %1974 = vmatmul.mubr.msk.bf16.vlgmr.msra.gmra.mrb[0].mxu0 %vm1373_vm14, %v1317_v51  ;;  %v697_v32 = vrot.slane %v695_v34, 1 }
  0xac   : > { %v848_v52 = vpop.permute.xlu1 %847 }
  0xad   : > { %v846_v55 = vpop.permute.xlu0 %845  ;;  %v1123_v51 = vsel %vm1115_vm7, %v1090_v47, %v848_v52 }
  0xae   : > { %1036 = vrot.lane.b32.xlu1 %v679_v44, %s2048_s15 }
  0xaf   : > { %1034 = vrot.lane.b32.xlu0 %v667_v13, %s2048_s15 }
  0xb0   : > { %v881_v56 = vpop.permute.xlu1 %880 }
  0xb1   : > { %v879_v61 = vpop.permute.xlu0 %878  ;;  %v1156_v57 = vsel %vm1148_vm8, %v1123_v51, %v881_v56 }
  0xb2   : > { %748 = vrot.lane.b32.xlu1 %v667_v13, %s2043_s29 }
  0xb3   : > { %1066 = vrot.lane.b32.xlu0 %v825_v24, %s2049_s16 }
  0xb4   : > { %v925_v38 = vpop.permute.xlu1 %924 }
  0xb5   : > { %v923_v8 = vpop.permute.xlu0 %922  ;;  %v1189_v43 = vsel %vm1181_vm9, %v1156_v57, %v925_v38 }
  0xb6   : > { %750 = vrot.lane.b32.xlu1 %v679_v44, %s2043_s29 }
  0xb7   : > { %1068 = vrot.lane.b32.xlu0 %v828_v1, %s2049_s16 }
  0xb8   : > { %v961_v13 = vpop.permute.xlu1 %960 }
  0xb9   : > { %v959_v15 = vpop.permute.xlu0 %958  ;;  %v1222_v52 = vsel %vm1214_vm10, %v1189_v43, %v961_v13 }
  0xba   : > { %863 = vrot.lane.b32.xlu1 %v828_v1, %s2042_s28 }
  0xbb   : > { %861 = vrot.lane.b32.xlu0 %v825_v24, %s2042_s28  ;;  %v1088_v24 = vsel %vm1082_vm6, %v2141_v37, %v2394_v30  ;;  %v693_v37 = vshrl.u32 %v2436_v20, 16  ;;  %v700_v30 = vshll.u32 %v531_v33, 16 }
  0xbc   : > { %v993_v19 = vpop.permute.xlu1 %992  ;;  %v1121_v36 = vsel %vm1115_vm7, %v1088_v24, %v846_v55  ;;  %v444_v55 = vshrl.u32 %v342_v41, 16 }
  0xbd   : > { %v991_v21 = vpop.permute.xlu0 %990  ;;  %v1154_v42 = vsel %vm1148_vm8, %v1121_v36, %v879_v61  ;;  %v698_v60 = vor.u32 %v697_v32, %v693_v37  ;;  %v702_v61 = vrot.slane %v700_v30, 1  ;;  %v1255_v56 = vsel %vm1247_vm11, %v1222_v52, %v993_v19 }
  0xbe   : > { %896 = vrot.lane.b32.xlu1 %v2421_v59, %s2044_s30  ;;  %v1187_v46 = vsel %vm1181_vm9, %v1154_v42, %v923_v8  ;;  %v446_v5 = vrot.slane %v444_v55, 7  ;;  %v325_v8 = vld [vmem:[%s2122_s27 + $0xe0] sm:$0xff]  ;;  %v833_v19 = vrot.slane %v531_v33, 1  ;;  %v328_v55 = vld [vmem:[%s2122_s27 + $0xf8] sm:$0xff] }
  0xbf   : > { %894 = vrot.lane.b32.xlu0 %v2369_v0, %s2044_s30  ;;  %v1220_v48 = vsel %vm1214_vm10, %v1187_v46, %v959_v15  ;;  %v343_v14 = vpack.c.bf16 %v326_v9, %v325_v8 }
  0xc0   : > { %v1025_v27 = vpop.permute.xlu1 %1024  ;;  %v1253_v53 = vsel %vm1247_vm11, %v1220_v48, %v991_v21  ;;  %v449_v13 = vor.u32 %v447_v6, %v446_v5  ;;  %v834_v24 = vsel %vm792_vm3, %v832_v17, %v833_v19  ;;  %v532_v34 = vsel %vm2098_vm2, %v446_v5, 0 }
  0xc1   : > { %v1023_v45 = vpop.permute.xlu0 %1022  ;;  %v1288_v38 = vsel %vm1280_vm12, %v1255_v56, %v1025_v27  ;;  %v451_v25 = vshrl.u32 %v343_v14, 16  ;;  %v454_v33 = vshll.u32 %v343_v14, 16  ;;  %v712_v42 = vshll.u32 %v532_v34, 16 }
  0xc2   : > { %940 = vrot.lane.b32.xlu1 %v691_v31, %s2047_s14  ;;  %v1286_v58 = vsel %vm1280_vm12, %v1253_v53, %v1023_v45  ;;  %v2493_v21 = vsel %vm2098_vm2, 0, %v449_v13  ;;  %v327_v53 = vld [vmem:[%s2122_s27 + $0xf0] sm:$0xff] }
  0xc3   : > { %938 = vrot.lane.b32.xlu0 %v679_v44, %s2047_s14  ;;  %v707_v28 = vshll.u32 %v2493_v21, 16  ;;  %v453_v36 = vrot.slane %v451_v25, 7  ;;  %v714_v47 = vrot.slane %v712_v42, 1  ;;  %v835_v57 = vrot.slane %v2493_v21, 1 }
  0xc4   : > { %v2465_v54 = vpop.permute.xlu1 %736 }
  0xc5   : > { %v1055_v40 = vpop.permute.xlu0 %1054  ;;  %v709_v41 = vrot.slane %v707_v28, 1  ;;  %v456_v46 = vor.u32 %v454_v33, %v453_v36 }
  0xc6   : > { %v1319_v44 = vsel %vm1313_vm13, %v1286_v58, %v1055_v40  ;;  %976 = vrot.lane.b32.xlu1 %v831_v50, %s2046_s13  ;;  %v836_v58 = vrot.slane %v532_v34, 1 }
  0xc7   : > { %974 = vrot.lane.b32.xlu0 %v828_v1, %s2046_s13  ;;  %1977 = vmatprep.mubr.msk.bf16.mxu0 %vm1373_vm14, %v1319_v44  ;;  %v703_v1 = vsel %vm535_vm4, %v698_v60, %v702_v61  ;;  %v2508_v32 = vsel %vm2098_vm2, 0, %v456_v46  ;;  %v533_v60 = vsel %vm2098_vm2, %v453_v36, 0  ;;  %v344_v61 = vpack.c.bf16 %v328_v55, %v327_v53 }
  0xc8   : > { %v2476_v63 = vpop.permute.xlu1 %738  ;;  %v719_v43 = vshll.u32 %v2508_v32, 16  ;;  %v724_v9 = vshll.u32 %v533_v60, 16  ;;  %v838_v46 = vrot.slane %v2508_v32, 1 }
  0xc9   : > { %v1057_v7 = vpop.permute.xlu0 %1056  ;;  %v461_v36 = vshll.u32 %v344_v61, 16 }
  0xca   : > { %v1321_v11 = vsel %vm1313_vm13, %v1288_v38, %v1057_v7  ;;  %1008 = vrot.lane.b32.xlu1 %v2436_v20, %s2045_s10  ;;  %v1094_v38 = vsel %vm1082_vm6, %v2215_v39, %v2476_v63  ;;  %v721_v8 = vrot.slane %v719_v43, 1 }
  0xcb   : > { %1006 = vrot.lane.b32.xlu0 %v2421_v59, %s2045_s10  ;;  %1978 = vmatmul.mubr.msk.bf16.gmra.mrb[4].mxu0 %vm1373_vm14, %v1321_v11 }
  0xcc   : > { %v852_v12 = vpop.permute.xlu1 %851 }
  0xcd   : > { %v850_v15 = vpop.permute.xlu0 %849  ;;  %v1127_v11 = vsel %vm1115_vm7, %v1094_v38, %v852_v12  ;;  %v726_v12 = vrot.slane %v724_v9, 1 }
  0xce   : > { %1040 = vrot.lane.b32.xlu1 %v703_v1, %s2048_s15 }
  0xcf   : > { %1038 = vrot.lane.b32.xlu0 %v691_v31, %s2048_s15 }
  0xd0   : > { %v885_v16 = vpop.permute.xlu1 %884 }
  0xd1   : > { %v883_v26 = vpop.permute.xlu0 %882  ;;  %v1160_v17 = vsel %vm1148_vm8, %v1127_v11, %v885_v16 }
  0xd2   : > { %752 = vrot.lane.b32.xlu1 %v691_v31, %s2043_s29  ;;  %v705_v31 = vshrl.u32 %v2493_v21, 16 }
  0xd3   : > { %1070 = vrot.lane.b32.xlu0 %v831_v50, %s2049_s16 }
  0xd4   : > { %v929_v29 = vpop.permute.xlu1 %928  ;;  %v710_v30 = vor.u32 %v709_v41, %v705_v31 }
  0xd5   : > { %v927_v27 = vpop.permute.xlu0 %926 }
  0xd6   : > { %754 = vrot.lane.b32.xlu1 %v703_v1, %s2043_s29  ;;  %v715_v40 = vsel %vm535_vm4, %v710_v30, %v714_v47 }
  0xd7   : > { %1072 = vrot.lane.b32.xlu0 %v834_v24, %s2049_s16 }
  0xd8   : > { %v965_v45 = vpop.permute.xlu1 %964 }
  0xd9   : > { %v963_v37 = vpop.permute.xlu0 %962 }
  0xda   : > { %867 = vrot.lane.b32.xlu1 %v834_v24, %s2042_s28 }
  0xdb   : > { %865 = vrot.lane.b32.xlu0 %v831_v50, %s2042_s28  ;;  %v1092_v50 = vsel %vm1082_vm6, %v2197_v22, %v2465_v54  ;;  %v837_v22 = vsel %vm792_vm3, %v835_v57, %v836_v58  ;;  %v717_v54 = vshrl.u32 %v2508_v32, 16 }
  0xdc   : > { %v997_v48 = vpop.permute.xlu1 %996  ;;  %v1125_v44 = vsel %vm1115_vm7, %v1092_v50, %v850_v15  ;;  %v458_v15 = vshrl.u32 %v344_v61, 16 }
  0xdd   : > { %v995_v51 = vpop.permute.xlu0 %994  ;;  %v1158_v56 = vsel %vm1148_vm8, %v1125_v44, %v883_v26  ;;  %v1193_v26 = vsel %vm1181_vm9, %v1160_v17, %v929_v29 }
  0xde   : > { %900 = vrot.lane.b32.xlu1 %v2493_v21, %s2044_s30  ;;  %v1191_v6 = vsel %vm1181_vm9, %v1158_v56, %v927_v27  ;;  %v1226_v63 = vsel %vm1214_vm10, %v1193_v26, %v965_v45  ;;  %v460_v34 = vrot.slane %v458_v15, 7 }
  0xdf   : > { %898 = vrot.lane.b32.xlu0 %v2436_v20, %s2044_s30  ;;  %v1224_v7 = vsel %vm1214_vm10, %v1191_v6, %v963_v37  ;;  %v1259_v28 = vsel %vm1247_vm11, %v1226_v63, %v997_v48  ;;  %v839_v37 = vrot.slane %v533_v60, 1 }
  0xe0   : > { %v1029_v52 = vpop.permute.xlu1 %1028  ;;  %v1257_v13 = vsel %vm1247_vm11, %v1224_v7, %v995_v51  ;;  %v463_v41 = vor.u32 %v461_v36, %v460_v34  ;;  %v534_v55 = vsel %vm2098_vm2, %v460_v34, 0 }
  0xe1   : > { %v1027_v5 = vpop.permute.xlu0 %1026  ;;  %v1292_v33 = vsel %vm1280_vm12, %v1259_v28, %v1029_v52  ;;  %v840_v53 = vsel %vm792_vm3, %v838_v46, %v839_v37  ;;  %v914_v43 = vshll.u32 %v534_v55, 16 }
  0xe2   : > { %944 = vrot.lane.b32.xlu1 %v715_v40, %s2047_s14  ;;  %v1290_v19 = vsel %vm1280_vm12, %v1257_v13, %v1027_v5  ;;  %v517_v30 = vsel %vm2098_vm2, 0, %v463_v41 }
  0xe3   : > { %942 = vrot.lane.b32.xlu0 %v703_v1, %s2047_s14  ;;  %v722_v1 = vor.u32 %v721_v8, %v717_v54  ;;  %v909_v48 = vshll.u32 %v517_v30, 16  ;;  %v907_v58 = vshrl.u32 %v517_v30, 16  ;;  %v916_v60 = vrot.slane %v914_v43, 1 }
  0xe4   : > { %v741_v14 = vpop.permute.xlu1 %740  ;;  %v951_v6 = vrot.slane %v517_v30, 1  ;;  %v952_v54 = vrot.slane %v534_v55, 1 }
  0xe5   : > { %v1059_v25 = vpop.permute.xlu0 %1058  ;;  %v911_v50 = vrot.slane %v909_v48, 1  ;;  %v1096_v2 = vsel %vm1082_vm6, %v2246_v4, %v741_v14 }
  0xe6   : > { %v1323_v39 = vsel %vm1313_vm13, %v1290_v19, %v1059_v25  ;;  %980 = vrot.lane.b32.xlu1 %v837_v22, %s2046_s13  ;;  %v953_v13 = vsel %vm792_vm3, %v951_v6, %v952_v54 }
  0xe7   : > { %978 = vrot.lane.b32.xlu0 %v834_v24, %s2046_s13  ;;  %1981 = vmatprep.mubr.msk.bf16.mxu0 %vm1373_vm14, %v1323_v39  ;;  %v727_v24 = vsel %vm535_vm4, %v722_v1, %v726_v12 }
  0xe8   : > { %v743_v16 = vpop.permute.xlu1 %742 }
  0xe9   : > { %v1061_v29 = vpop.permute.xlu0 %1060  ;;  %v1098_v4 = vsel %vm1082_vm6, %v2261_v18, %v743_v16 }
  0xea   : > { %v1325_v27 = vsel %vm1313_vm13, %v1292_v33, %v1061_v29  ;;  %1012 = vrot.lane.b32.xlu1 %v2508_v32, %s2045_s10 }
  0xeb   : > { %1010 = vrot.lane.b32.xlu0 %v2493_v21, %s2045_s10  ;;  %1982 = vmatmul.mubr.msk.bf16.gmra.mrb[8].mxu0 %vm1373_vm14, %v1325_v27 }
  0xec   : > { %v856_v31 = vpop.permute.xlu1 %855 }
  0xed   : > { %v854_v42 = vpop.permute.xlu0 %853  ;;  %v1131_v14 = vsel %vm1115_vm7, %v1098_v4, %v856_v31 }
  0xee   : > { %1044 = vrot.lane.b32.xlu1 %v727_v24, %s2048_s15  ;;  %v1129_v38 = vsel %vm1115_vm7, %v1096_v2, %v854_v42 }
  0xef   : > { %1042 = vrot.lane.b32.xlu0 %v715_v40, %s2048_s15 }
  0xf0   : > { %v889_v45 = vpop.permute.xlu1 %888 }
  0xf1   : > { %v887_v47 = vpop.permute.xlu0 %886  ;;  %v1164_v19 = vsel %vm1148_vm8, %v1131_v14, %v889_v45 }
  0xf2   : > { %756 = vrot.lane.b32.xlu1 %v715_v40, %s2043_s29  ;;  %v912_v40 = vor.u32 %v911_v50, %v907_v58 }
  0xf3   : > { %1074 = vrot.lane.b32.xlu0 %v837_v22, %s2049_s16 }
  0xf4   : > { %v933_v51 = vpop.permute.xlu1 %932  ;;  %v917_v5 = vsel %vm535_vm4, %v912_v40, %v916_v60 }
  0xf5   : > { %v931_v57 = vpop.permute.xlu0 %930  ;;  %v1197_v39 = vsel %vm1181_vm9, %v1164_v19, %v933_v51 }
  0xf6   : > { %758 = vrot.lane.b32.xlu1 %v727_v24, %s2043_s29  ;;  %s295_s29 = scalar_lea.vmem %s3065_s7, %s3069_s1 }
  0xf7   : > { %1076 = vrot.lane.b32.xlu0 %v840_v53, %s2049_s16 }
  0xf8   : > { %v969_v44 = vpop.permute.xlu1 %968 }
  0xf9   : > { %v967_v52 = vpop.permute.xlu0 %966  ;;  %v1230_v63 = vsel %vm1214_vm10, %v1197_v39, %v969_v44 }
  0xfa   : > { %871 = vrot.lane.b32.xlu1 %v840_v53, %s2042_s28 }
  0xfb   : > { %869 = vrot.lane.b32.xlu0 %v837_v22, %s2042_s28  ;;  %v1162_v22 = vsel %vm1148_vm8, %v1129_v38, %v887_v47 }
  0xfc   : > { %v1001_v61 = vpop.permute.xlu1 %1000  ;;  %v1195_v9 = vsel %vm1181_vm9, %v1162_v22, %v931_v57 }
  0xfd   : > { %v999_v56 = vpop.permute.xlu0 %998  ;;  %v1228_v11 = vsel %vm1214_vm10, %v1195_v9, %v967_v52  ;;  %v1263_v1 = vsel %vm1247_vm11, %v1230_v63, %v1001_v61 }
  0xfe   : > { %904 = vrot.lane.b32.xlu1 %v517_v30, %s2044_s30  ;;  %v1261_v15 = vsel %vm1247_vm11, %v1228_v11, %v999_v56 }
  0xff   : > { %902 = vrot.lane.b32.xlu0 %v2508_v32, %s2044_s30 }
 0x100   : > { %v1033_v7 = vpop.permute.xlu1 %1032 }
 0x101   : > { %v1031_v8 = vpop.permute.xlu0 %1030  ;;  %v1296_v28 = vsel %vm1280_vm12, %v1263_v1, %v1033_v7 }
 0x102   : > { %948 = vrot.lane.b32.xlu1 %v917_v5, %s2047_s14  ;;  %v1294_v25 = vsel %vm1280_vm12, %v1261_v15, %v1031_v8 }
 0x103   : > { %946 = vrot.lane.b32.xlu0 %v727_v24, %s2047_s14 }
 0x104   : > { %v745_v17 = vpop.permute.xlu1 %744 }
 0x105   : > { %v1063_v26 = vpop.permute.xlu0 %1062  ;;  %v1100_v46 = vsel %vm1082_vm6, %v2292_v49, %v745_v17 }
 0x106   : > { %v1327_v18 = vsel %vm1313_vm13, %v1294_v25, %v1063_v26  ;;  %984 = vrot.lane.b32.xlu1 %v953_v13, %s2046_s13 }
 0x107   : > { %982 = vrot.lane.b32.xlu0 %v840_v53, %s2046_s13  ;;  %1985 = vmatprep.mubr.msk.bf16.mxu0 %vm1373_vm14, %v1327_v18 }
 0x108   : > { %v747_v12 = vpop.permute.xlu1 %746 }
 0x109   : > { %v1065_v16 = vpop.permute.xlu0 %1064 }
 0x10a   : > { %v1329_v34 = vsel %vm1313_vm13, %v1296_v28, %v1065_v16  ;;  %1016 = vrot.lane.b32.xlu1 %v2104_v3, %s2045_s10 }
 0x10b   : > { %1014 = vrot.lane.b32.xlu0 %v517_v30, %s2045_s10  ;;  %1986 = vmatmul.mubr.msk.bf16.gmra.mrb[12].mxu0 %vm1373_vm14, %v1329_v34 }
 0x10c   : > { %v860_v36 = vpop.permute.xlu1 %859 }
 0x10d   : > { %v858_v33 = vpop.permute.xlu0 %857 }
 0x10e   : > { %1048 = vrot.lane.b32.xlu1 %v2133_v23, %s2048_s15  ;;  %v1133_v23 = vsel %vm1115_vm7, %v1100_v46, %v858_v33 }
 0x10f   : > { %1046 = vrot.lane.b32.xlu0 %v917_v5, %s2048_s15 }
 0x110   : > { %v893_v29 = vpop.permute.xlu1 %892 }
 0x111   : > { %v891_v27 = vpop.permute.xlu0 %890 }
 0x112   : > { %1080 = vrot.lane.b32.xlu1 %v2115_v10, %s2049_s16  ;;  %v1166_v30 = vsel %vm1148_vm8, %v1133_v23, %v891_v27  ;;  %v1102_v10 = vsel %vm1082_vm6, %v2307_v62, %v747_v12 }
 0x113   : > { %1078 = vrot.lane.b32.xlu0 %v953_v13, %s2049_s16  ;;  %v1135_v53 = vsel %vm1115_vm7, %v1102_v10, %v860_v36 }
 0x114   : > { %v937_v24 = vpop.permute.xlu1 %936  ;;  %v1168_v49 = vsel %vm1148_vm8, %v1135_v53, %v893_v29 }
 0x115   : > { %v935_v3 = vpop.permute.xlu0 %934  ;;  %v1201_v43 = vsel %vm1181_vm9, %v1168_v49, %v937_v24 }
 0x116   : > { %v1199_v48 = vsel %vm1181_vm9, %v1166_v30, %v935_v3 }
 0x118   : > { %v973_v31 = vpop.permute.xlu1 %972 }
 0x119   : > { %v971_v41 = vpop.permute.xlu0 %970  ;;  %v1234_v52 = vsel %vm1214_vm10, %v1201_v43, %v973_v31 }
 0x11a   : > { %v1232_v51 = vsel %vm1214_vm10, %v1199_v48, %v971_v41 }
 0x11c   : > { %v1005_v42 = vpop.permute.xlu1 %1004 }
 0x11d   : > { %v1003_v45 = vpop.permute.xlu0 %1002  ;;  %v1267_v62 = vsel %vm1247_vm11, %v1234_v52, %v1005_v42 }
 0x11e   : > { %v1265_v55 = vsel %vm1247_vm11, %v1232_v51, %v1003_v45 }
 0x120   : > { %v1037_v37 = vpop.permute.xlu1 %1036 }
 0x121   : > { %v1035_v47 = vpop.permute.xlu0 %1034  ;;  %v1300_v60 = vsel %vm1280_vm12, %v1267_v62, %v1037_v37 }
 0x122   : > { %v1298_v58 = vsel %vm1280_vm12, %v1265_v55, %v1035_v47 }
 0x124   : > { %v749_v57 = vpop.permute.xlu1 %748 }
 0x125   : > { %v1067_v50 = vpop.permute.xlu0 %1066  ;;  %v1104_v11 = vsel %vm1082_vm6, %v2343_v35, %v749_v57 }
 0x126   : > { %v1331_v44 = vsel %vm1313_vm13, %v1298_v58, %v1067_v50 }
 0x127   : > { %1989 = vmatprep.mubr.msk.bf16.mxu1 %vm1373_vm14, %v1331_v44 }
 0x128   : > { %v751_v40 = vpop.permute.xlu1 %750 }
 0x129   : > { %v1069_v61 = vpop.permute.xlu0 %1068  ;;  %v1106_v25 = vsel %vm1082_vm6, %v2369_v0, %v751_v40 }
 0x12a   : > { %v1333_v56 = vsel %vm1313_vm13, %v1300_v60, %v1069_v61 }
 0x12b   : > { %1990 = vmatmul.mubr.msk.bf16.vlgmr.msra.gmra.mrb[0].mxu1 %vm1373_vm14, %v1333_v56 }
 0x12c   : > { %v864_v2 = vpop.permute.xlu1 %863 }
 0x12d   : > { %v862_v5 = vpop.permute.xlu0 %861  ;;  %v1139_v39 = vsel %vm1115_vm7, %v1106_v25, %v864_v2 }
 0x12e   : > { %v1137_v13 = vsel %vm1115_vm7, %v1104_v11, %v862_v5 }
 0x130   : > { %v897_v6 = vpop.permute.xlu1 %896 }
 0x131   : > { %v895_v54 = vpop.permute.xlu0 %894  ;;  %v1172_v35 = vsel %vm1148_vm8, %v1139_v39, %v897_v6 }
 0x132   : > { %v1170_v15 = vsel %vm1148_vm8, %v1137_v13, %v895_v54  ;;  %v2669_v13 = vld [vmem:[%s3062_s4] ss:$0 sm:$0xff] }
 0x134   : > { %v941_v38 = vpop.permute.xlu1 %940 }
 0x135   : > { %v939_v7 = vpop.permute.xlu0 %938  ;;  %v1205_v28 = vsel %vm1181_vm9, %v1172_v35, %v941_v38 }
 0x136   : > { %v1203_v19 = vsel %vm1181_vm9, %v1170_v15, %v939_v7 }
 0x138   : > { %v977_v22 = vpop.permute.xlu1 %976 }
 0x139   : > { %v975_v8 = vpop.permute.xlu0 %974  ;;  %v1238_v34 = vsel %vm1214_vm10, %v1205_v28, %v977_v22 }
 0x13a   : > { %v1236_v26 = vsel %vm1214_vm10, %v1203_v19, %v975_v8 }
 0x13c   : > { %v1009_v9 = vpop.permute.xlu1 %1008 }
 0x13d   : > { %v1007_v4 = vpop.permute.xlu0 %1006  ;;  %v1271_v0 = vsel %vm1247_vm11, %v1238_v34, %v1009_v9 }
 0x13e   : > { %v1269_v18 = vsel %vm1247_vm11, %v1236_v26, %v1007_v4 }
 0x140   : > { %v1041_v14 = vpop.permute.xlu1 %1040 }
 0x141   : > { %v1039_v17 = vpop.permute.xlu0 %1038  ;;  %v1304_v33 = vsel %vm1280_vm12, %v1271_v0, %v1041_v14 }
 0x142   : > { %v1302_v1 = vsel %vm1280_vm12, %v1269_v18, %v1039_v17 }
 0x144   : > { %v753_v63 = vpop.permute.xlu1 %752 }
 0x145   : > { %v1071_v12 = vpop.permute.xlu0 %1070  ;;  %v1108_v47 = vsel %vm1082_vm6, %v2421_v59, %v753_v63 }
 0x146   : > { %v1335_v16 = vsel %vm1313_vm13, %v1302_v1, %v1071_v12 }
 0x147   : > { %1993 = vmatprep.mubr.msk.bf16.mxu1 %vm1373_vm14, %v1335_v16 }
 0x148   : > { %v755_v36 = vpop.permute.xlu1 %754 }
 0x149   : > { %v1073_v29 = vpop.permute.xlu0 %1072  ;;  %v1110_v57 = vsel %vm1082_vm6, %v2436_v20, %v755_v36 }
 0x14a   : > { %v1337_v27 = vsel %vm1313_vm13, %v1304_v33, %v1073_v29 }
 0x14b   : > { %1994 = vmatmul.mubr.msk.bf16.gmra.mrb[4].mxu1 %vm1373_vm14, %v1337_v27 }
 0x14c   : > { %v868_v24 = vpop.permute.xlu1 %867 }
 0x14d   : > { %v866_v3 = vpop.permute.xlu0 %865  ;;  %v1143_v58 = vsel %vm1115_vm7, %v1110_v57, %v868_v24 }
 0x14e   : > { %v1141_v48 = vsel %vm1115_vm7, %v1108_v47, %v866_v3 }
 0x150   : > { %v901_v31 = vpop.permute.xlu1 %900 }
 0x151   : > { %v899_v41 = vpop.permute.xlu0 %898  ;;  %v1176_v59 = vsel %vm1148_vm8, %v1143_v58, %v901_v31 }
 0x152   : > { %v1174_v51 = vsel %vm1148_vm8, %v1141_v48, %v899_v41 }
 0x154   : > { %v945_v42 = vpop.permute.xlu1 %944 }
 0x155   : > { %v943_v45 = vpop.permute.xlu0 %942  ;;  %v1209_v62 = vsel %vm1181_vm9, %v1176_v59, %v945_v42 }
 0x156   : > { %v1207_v55 = vsel %vm1181_vm9, %v1174_v51, %v943_v45 }
 0x158   : > { %v981_v46 = vpop.permute.xlu1 %980 }
 0x159   : > { %v979_v23 = vpop.permute.xlu0 %978  ;;  %v1242_v60 = vsel %vm1214_vm10, %v1209_v62, %v981_v46 }
 0x15a   : > { %v1240_v49 = vsel %vm1214_vm10, %v1207_v55, %v979_v23 }
 0x15c   : > { %v1013_v37 = vpop.permute.xlu1 %1012 }
 0x15d   : > { %v1011_v30 = vpop.permute.xlu0 %1010  ;;  %v1275_v20 = vsel %vm1247_vm11, %v1242_v60, %v1013_v37 }
 0x15e   : > { %v1273_v50 = vsel %vm1247_vm11, %v1240_v49, %v1011_v30 }
 0x160   : > { %v1045_v10 = vpop.permute.xlu1 %1044 }
 0x161   : > { %v1043_v53 = vpop.permute.xlu0 %1042  ;;  %v1308_v56 = vsel %vm1280_vm12, %v1275_v20, %v1045_v10 }
 0x162   : > { %v1306_v44 = vsel %vm1280_vm12, %v1273_v50, %v1043_v53 }
 0x164   : > { %v757_v43 = vpop.permute.xlu1 %756 }
 0x165   : > { %v1075_v52 = vpop.permute.xlu0 %1074  ;;  %v1112_v19 = vsel %vm1082_vm6, %v2493_v21, %v757_v43 }
 0x166   : > { %v1339_v40 = vsel %vm1313_vm13, %v1306_v44, %v1075_v52 }
 0x167   : > { %1997 = vmatprep.mubr.msk.bf16.mxu1 %vm1373_vm14, %v1339_v40 }
 0x168   : > { %v759_v61 = vpop.permute.xlu1 %758 }
 0x169   : > { %v1077_v2 = vpop.permute.xlu0 %1076  ;;  %v1114_v15 = vsel %vm1082_vm6, %v2508_v32, %v759_v61 }
 0x16a   : > { %v1341_v5 = vsel %vm1313_vm13, %v1308_v56, %v1077_v2 }
 0x16b   : > { %1998 = vmatmul.mubr.msk.bf16.gmra.mrb[8].mxu1 %vm1373_vm14, %v1341_v5 }
 0x16c   : > { %v872_v6 = vpop.permute.xlu1 %871 }
 0x16d   : > { %v870_v54 = vpop.permute.xlu0 %869  ;;  %v1147_v25 = vsel %vm1115_vm7, %v1114_v15, %v872_v6 }
 0x16e   : > { %v1145_v32 = vsel %vm1115_vm7, %v1112_v19, %v870_v54 }
 0x170   : > { %v905_v38 = vpop.permute.xlu1 %904 }
 0x171   : > { %v903_v7 = vpop.permute.xlu0 %902  ;;  %v1180_v18 = vsel %vm1148_vm8, %v1147_v25, %v905_v38 }
 0x172   : > { %v1178_v21 = vsel %vm1148_vm8, %v1145_v32, %v903_v7 }
 0x174   : > { %v949_v22 = vpop.permute.xlu1 %948 }
 0x175   : > { %v947_v8 = vpop.permute.xlu0 %946  ;;  %v1213_v12 = vsel %vm1181_vm9, %v1180_v18, %v949_v22 }
 0x176   : > { %v1211_v0 = vsel %vm1181_vm9, %v1178_v21, %v947_v8 }
 0x178   : > { %v985_v9 = vpop.permute.xlu1 %984 }
 0x179   : > { %v983_v4 = vpop.permute.xlu0 %982  ;;  %v1246_v36 = vsel %vm1214_vm10, %v1213_v12, %v985_v9 }
 0x17a   : > { %v1244_v29 = vsel %vm1214_vm10, %v1211_v0, %v983_v4 }
 0x17c   : > { %v1017_v11 = vpop.permute.xlu1 %1016 }
 0x17d   : > { %v1015_v14 = vpop.permute.xlu0 %1014  ;;  %v1279_v27 = vsel %vm1247_vm11, %v1246_v36, %v1017_v11 }
 0x17e   : > { %v1975_v17 = vpop.f32.mrb[0].mxu0  ;;  %v1277_v24 = vsel %vm1247_vm11, %v1244_v29, %v1015_v14 }
 0x17f   : > { %v2684_v26 = vadd.f32 %v1975_v17, %v2669_v13  ;;  %v1444_v39 = vpop.f32.mrb[1].mxu0 }
 0x180   : > { %v2689_v63 = vadd.f32 %v2669_v13, %v1444_v39  ;;  %v1976_v35 = vpop.f32.mrb[2].mxu0  ;;  %v1049_v1 = vpop.permute.xlu1 %1048 }
 0x181   : > { %1777 = vst.msk [vmem:[%s2678_s23 + $0x10] sm:$0xff] %vm1115_vm7, %v2684_v26  ;;  %v2697_v28 = vadd.f32 %v1976_v35, %v2669_v13  ;;  %v1447_v16 = vpop.f32.mrb[3].mxu0  ;;  %v1047_v34 = vpop.permute.xlu0 %1046  ;;  %v1312_v3 = vsel %vm1280_vm12, %v1279_v27, %v1049_v1  ;;  %v1574_v38 = vsel %vm1115_vm7, %v2684_v26, 0.0 }
 0x182   : > { %1775 = vst.msk [vmem:[%s2678_s23] sm:$0xff] %vm1115_vm7, %v2689_v63  ;;  %v2705_v33 = vadd.f32 %v2669_v13, %v1447_v16  ;;  %v1310_v41 = vsel %vm1280_vm12, %v1277_v24, %v1047_v34  ;;  %v1571_v6 = vsel %vm1115_vm7, %v2689_v63, 0.0 }
 0x183   : > { %1778 = vst.msk [vmem:[%s2678_s23 + $0x18] sm:$0xff] %vm1115_vm7, %v2697_v28  ;;  %v1576_v22 = vsel %vm1115_vm7, %v2697_v28, 0.0 }
 0x184   : > { %1776 = vst.msk [vmem:[%s2678_s23 + $0x8] sm:$0xff] %vm1115_vm7, %v2705_v33  ;;  %v1081_v31 = vpop.permute.xlu1 %1080  ;;  %v1572_v5 = vsel %vm1115_vm7, %v2705_v33, 0.0 }
 0x185   : > { %v1345_v42 = vsel %vm1313_vm13, %v1312_v3, %v1081_v31  ;;  %v1079_v45 = vpop.permute.xlu0 %1078  ;;  %v1573_v54 = vadd.f32 %v1572_v5, %v1571_v6 }
 0x186   : > { %v1343_v46 = vsel %vm1313_vm13, %v1310_v41, %v1079_v45 }
 0x187   : > { %2001 = vmatprep.mubr.msk.bf16.mxu1 %vm1373_vm14, %v1343_v46  ;;  %v1575_v7 = vadd.f32 %v1574_v38, %v1573_v54 }
 0x188   : > { %2002 = vmatmul.mubr.msk.bf16.gmra.mrb[12].mxu1 %vm1373_vm14, %v1345_v42 }
 0x189   : > { %v1577_v9 = vadd.f32 %v1576_v22, %v1575_v7 }
 0x19e   : > { %v1979_v23 = vpop.f32.mrb[4].mxu0 }
 0x19f   : > { %v2723_v37 = vadd.f32 %v1979_v23, %v2669_v13  ;;  %v1460_v30 = vpop.f32.mrb[5].mxu0 }
 0x1a0   : > { %v2726_v47 = vadd.f32 %v2669_v13, %v1460_v30  ;;  %v1980_v48 = vpop.f32.mrb[6].mxu0 }
 0x1a1   : > { %1781 = vst.msk [vmem:[%s2678_s23 + $0x30] sm:$0xff] %vm1115_vm7, %v2723_v37  ;;  %v2732_v10 = vadd.f32 %v1980_v48, %v2669_v13  ;;  %v1463_v51 = vpop.f32.mrb[7].mxu0  ;;  %v1582_v1 = vsel %vm1115_vm7, %v2723_v37, 0.0 }
 0x1a2   : > { %1779 = vst.msk [vmem:[%s2678_s23 + $0x20] sm:$0xff] %vm1115_vm7, %v2726_v47  ;;  %v2738_v53 = vadd.f32 %v2669_v13, %v1463_v51  ;;  %v1578_v8 = vsel %vm1115_vm7, %v2726_v47, 0.0 }
 0x1a3   : > { %1782 = vst.msk [vmem:[%s2678_s23 + $0x38] sm:$0xff] %vm1115_vm7, %v2732_v10  ;;  %v1579_v4 = vadd.f32 %v1578_v8, %v1577_v9  ;;  %v1584_v12 = vsel %vm1115_vm7, %v2732_v10, 0.0 }
 0x1a4   : > { %1780 = vst.msk [vmem:[%s2678_s23 + $0x28] sm:$0xff] %vm1115_vm7, %v2738_v53  ;;  %v1580_v11 = vsel %vm1115_vm7, %v2738_v53, 0.0 }
 0x1a5   : > { %v1581_v39 = vadd.f32 %v1580_v11, %v1579_v4 }
 0x1a7   : > { %v1583_v21 = vadd.f32 %v1582_v1, %v1581_v39 }
 0x1a9   : > { %v1585_v34 = vadd.f32 %v1584_v12, %v1583_v21 }
 0x1be   : > { %v1983_v55 = vpop.f32.mrb[8].mxu0 }
 0x1bf   : > { %v2747_v57 = vadd.f32 %v1983_v55, %v2669_v13  ;;  %v1476_v49 = vpop.f32.mrb[9].mxu0 }
 0x1c0   : > { %v2750_v58 = vadd.f32 %v2669_v13, %v1476_v49  ;;  %v1984_v50 = vpop.f32.mrb[10].mxu0 }
 0x1c1   : > { %1785 = vst.msk [vmem:[%s2678_s23 + $0x50] sm:$0xff] %vm1115_vm7, %v2747_v57  ;;  %v2756_v43 = vadd.f32 %v1984_v50, %v2669_v13  ;;  %v1479_v59 = vpop.f32.mrb[11].mxu0  ;;  %v1590_v27 = vsel %vm1115_vm7, %v2747_v57, 0.0 }
 0x1c2   : > { %1783 = vst.msk [vmem:[%s2678_s23 + $0x40] sm:$0xff] %vm1115_vm7, %v2750_v58  ;;  %v2762_v44 = vadd.f32 %v2669_v13, %v1479_v59  ;;  %v1586_v16 = vsel %vm1115_vm7, %v2750_v58, 0.0 }
 0x1c3   : > { %1786 = vst.msk [vmem:[%s2678_s23 + $0x58] sm:$0xff] %vm1115_vm7, %v2756_v43  ;;  %v1587_v0 = vadd.f32 %v1586_v16, %v1585_v34  ;;  %v1592_v3 = vsel %vm1115_vm7, %v2756_v43, 0.0 }
 0x1c4   : > { %1784 = vst.msk [vmem:[%s2678_s23 + $0x48] sm:$0xff] %vm1115_vm7, %v2762_v44  ;;  %v1588_v36 = vsel %vm1115_vm7, %v2762_v44, 0.0 }
 0x1c5   : > { %v1589_v29 = vadd.f32 %v1588_v36, %v1587_v0 }
 0x1c7   : > { %v1591_v24 = vadd.f32 %v1590_v27, %v1589_v29 }
 0x1c9   : > { %v1593_v41 = vadd.f32 %v1592_v3, %v1591_v24 }
 0x1de   : > { %v1987_v52 = vpop.f32.mrb[12].mxu0 }
 0x1df   : > { %v2771_v62 = vadd.f32 %v1987_v52, %v2669_v13  ;;  %v1492_v40 = vpop.f32.mrb[13].mxu0 }
 0x1e0   : > { %v2774_v60 = vadd.f32 %v2669_v13, %v1492_v40  ;;  %v1988_v20 = vpop.f32.mrb[14].mxu0 }
 0x1e1   : > { %1789 = vst.msk [vmem:[%s2678_s23 + $0x70] sm:$0xff] %vm1115_vm7, %v2771_v62  ;;  %v2780_v61 = vadd.f32 %v1988_v20, %v2669_v13  ;;  %v1495_v56 = vpop.f32.mrb[15].mxu0  ;;  %v1598_v51 = vsel %vm1115_vm7, %v2771_v62, 0.0 }
 0x1e2   : > { %1787 = vst.msk [vmem:[%s2678_s23 + $0x60] sm:$0xff] %vm1115_vm7, %v2774_v60  ;;  %v2786_v2 = vadd.f32 %v2669_v13, %v1495_v56  ;;  %v1594_v31 = vsel %vm1115_vm7, %v2774_v60, 0.0 }
 0x1e3   : > { %1790 = vst.msk [vmem:[%s2678_s23 + $0x78] sm:$0xff] %vm1115_vm7, %v2780_v61  ;;  %v1595_v42 = vadd.f32 %v1594_v31, %v1593_v41  ;;  %v1600_v20 = vsel %vm1115_vm7, %v2780_v61, 0.0 }
 0x1e4   : > { %1788 = vst.msk [vmem:[%s2678_s23 + $0x68] sm:$0xff] %vm1115_vm7, %v2786_v2  ;;  %v1596_v45 = vsel %vm1115_vm7, %v2786_v2, 0.0 }
 0x1e5   : > { %v1597_v46 = vadd.f32 %v1596_v45, %v1595_v42 }
 0x1e7   : > { %v1599_v50 = vadd.f32 %v1598_v51, %v1597_v46 }
 0x1e9   : > { %v1601_v5 = vadd.f32 %v1600_v20, %v1599_v50 }
 0x1fe   : > { %v1991_v14 = vpop.f32.mrb[0].mxu1 }
 0x1ff   : > { %v2807_v15 = vadd.f32 %v1991_v14, %v2669_v13  ;;  %v1508_v17 = vpop.f32.mrb[1].mxu1 }
 0x200   : > { %v2810_v19 = vadd.f32 %v2669_v13, %v1508_v17  ;;  %v1992_v25 = vpop.f32.mrb[2].mxu1 }
 0x201   : > { %1793 = vst.msk [vmem:[%s2678_s23 + $0x90] sm:$0xff] %vm1115_vm7, %v2807_v15  ;;  %v2816_v32 = vadd.f32 %v1992_v25, %v2669_v13  ;;  %v1511_v18 = vpop.f32.mrb[3].mxu1  ;;  %v1606_v7 = vsel %vm1115_vm7, %v2807_v15, 0.0 }
 0x202   : > { %1791 = vst.msk [vmem:[%s2678_s23 + $0x80] sm:$0xff] %vm1115_vm7, %v2810_v19  ;;  %v2822_v35 = vadd.f32 %v2669_v13, %v1511_v18  ;;  %v1602_v56 = vsel %vm1115_vm7, %v2810_v19, 0.0 }
 0x203   : > { %1794 = vst.msk [vmem:[%s2678_s23 + $0x98] sm:$0xff] %vm1115_vm7, %v2816_v32  ;;  %v1603_v6 = vadd.f32 %v1602_v56, %v1601_v5  ;;  %v1608_v8 = vsel %vm1115_vm7, %v2816_v32, 0.0 }
 0x204   : > { %1792 = vst.msk [vmem:[%s2678_s23 + $0x88] sm:$0xff] %vm1115_vm7, %v2822_v35  ;;  %v1604_v54 = vsel %vm1115_vm7, %v2822_v35, 0.0 }
 0x205   : > { %v1605_v38 = vadd.f32 %v1604_v54, %v1603_v6 }
 0x207   : > { %v1607_v22 = vadd.f32 %v1606_v7, %v1605_v38 }
 0x209   : > { %v1609_v4 = vadd.f32 %v1608_v8, %v1607_v22 }
 0x21e   : > { %v1995_v23 = vpop.f32.mrb[4].mxu1 }
 0x21f   : > { %v2847_v30 = vadd.f32 %v1995_v23, %v2669_v13  ;;  %v1524_v48 = vpop.f32.mrb[5].mxu1 }
 0x220   : > { %v2852_v55 = vadd.f32 %v2669_v13, %v1524_v48  ;;  %v1996_v49 = vpop.f32.mrb[6].mxu1 }
 0x221   : > { %1797 = vst.msk [vmem:[%s2678_s23 + $0xb0] sm:$0xff] %vm1115_vm7, %v2847_v30  ;;  %v2858_v59 = vadd.f32 %v1996_v49, %v2669_v13  ;;  %v1527_v52 = vpop.f32.mrb[7].mxu1  ;;  %v1614_v25 = vsel %vm1115_vm7, %v2847_v30, 0.0 }
 0x222   : > { %1795 = vst.msk [vmem:[%s2678_s23 + $0xa0] sm:$0xff] %vm1115_vm7, %v2852_v55  ;;  %v2864_v40 = vadd.f32 %v2669_v13, %v1527_v52  ;;  %v1610_v9 = vsel %vm1115_vm7, %v2852_v55, 0.0 }
 0x223   : > { %1798 = vst.msk [vmem:[%s2678_s23 + $0xb8] sm:$0xff] %vm1115_vm7, %v2858_v59  ;;  %v1611_v11 = vadd.f32 %v1610_v9, %v1609_v4  ;;  %v1616_v12 = vsel %vm1115_vm7, %v2858_v59, 0.0 }
 0x224   : > { %1796 = vst.msk [vmem:[%s2678_s23 + $0xa8] sm:$0xff] %vm1115_vm7, %v2864_v40  ;;  %v1612_v14 = vsel %vm1115_vm7, %v2864_v40, 0.0 }
 0x225   : > { %v1613_v17 = vadd.f32 %v1612_v14, %v1611_v11 }
 0x227   : > { %v1615_v39 = vadd.f32 %v1614_v25, %v1613_v17 }
 0x229   : > { %v1617_v0 = vadd.f32 %v1616_v12, %v1615_v39 }
 0x23e   : > { %v1999_v18 = vpop.f32.mrb[8].mxu1 }
 0x23f   : > { %v1549_v1 = vadd.f32 %v1999_v18, %v2669_v13  ;;  %v1540_v21 = vpop.f32.mrb[9].mxu1 }
 0x240   : > { %v1541_v16 = vadd.f32 %v2669_v13, %v1540_v21  ;;  %v2000_v34 = vpop.f32.mrb[10].mxu1 }
 0x241   : > { %1801 = vst.msk [vmem:[%s2678_s23 + $0xd0] sm:$0xff] %vm1115_vm7, %v1549_v1  ;;  %v1552_v36 = vadd.f32 %v2000_v34, %v2669_v13  ;;  %v1543_v29 = vpop.f32.mrb[11].mxu1  ;;  %v1622_v42 = vsel %vm1115_vm7, %v1549_v1, 0.0 }
 0x242   : > { %v1618_v27 = vsel %vm1115_vm7, %v1541_v16, 0.0  ;;  %1799 = vst.msk [vmem:[%s2678_s23 + $0xc0] sm:$0xff] %vm1115_vm7, %v1541_v16  ;;  %v1544_v24 = vadd.f32 %v2669_v13, %v1543_v29 }
 0x243   : > { %v1619_v3 = vadd.f32 %v1618_v27, %v1617_v0  ;;  %1802 = vst.msk [vmem:[%s2678_s23 + $0xd8] sm:$0xff] %vm1115_vm7, %v1552_v36  ;;  %v1624_v46 = vsel %vm1115_vm7, %v1552_v36, 0.0 }
 0x244   : > { %v1620_v31 = vsel %vm1115_vm7, %v1544_v24, 0.0  ;;  %1800 = vst.msk [vmem:[%s2678_s23 + $0xc8] sm:$0xff] %vm1115_vm7, %v1544_v24 }
 0x245   : > { %v1621_v41 = vadd.f32 %v1620_v31, %v1619_v3 }
 0x247   : > { %v1623_v45 = vadd.f32 %v1622_v42, %v1621_v41 }
 0x249   : > { %v1625_v23 = vadd.f32 %v1624_v46, %v1623_v45 }
 0x25b   : > { %v2003_v48 = vpop.f32.mrb[12].mxu1 }
 0x25c   : > { %v1565_v51 = vadd.f32 %v2003_v48, %v2669_v13  ;;  %v1556_v49 = vpop.f32.mrb[13].mxu1 }
 0x25d   : > { %v1557_v50 = vadd.f32 %v2669_v13, %v1556_v49  ;;  %v2004_v52 = vpop.f32.mrb[14].mxu1 }
 0x25e   : > { %1805 = vst.msk [vmem:[%s2678_s23 + $0xf0] sm:$0xff] %vm1115_vm7, %v1565_v51  ;;  %v1568_v20 = vadd.f32 %v2004_v52, %v2669_v13  ;;  %v1559_v56 = vpop.f32.mrb[15].mxu1  ;;  %v1630_v22 = vsel %vm1115_vm7, %v1565_v51, 0.0 }
 0x25f   : > { %v1626_v5 = vsel %vm1115_vm7, %v1557_v50, 0.0  ;;  %1803 = vst.msk [vmem:[%s2678_s23 + $0xe0] sm:$0xff] %vm1115_vm7, %v1557_v50  ;;  %v1560_v6 = vadd.f32 %v2669_v13, %v1559_v56 }
 0x260   : > { %v1627_v54 = vadd.f32 %v1626_v5, %v1625_v23  ;;  %1806 = vst.msk [vmem:[%s2678_s23 + $0xf8] sm:$0xff] %vm1115_vm7, %v1568_v20  ;;  %v1632_v9 = vsel %vm1115_vm7, %v1568_v20, 0.0 }
 0x261   : > { %v1628_v38 = vsel %vm1115_vm7, %v1560_v6, 0.0  ;;  %1804 = vst.msk [vmem:[%s2678_s23 + $0xe8] sm:$0xff] %vm1115_vm7, %v1560_v6 }
 0x262   : > { %v1629_v7 = vadd.f32 %v1628_v38, %v1627_v54 }
 0x264   : > { %v1631_v8 = vadd.f32 %v1630_v22, %v1629_v7 }
 0x266   : > { %v1633_v4 = vadd.f32 %v1632_v9, %v1631_v8 }
 0x268   : > { %v1634_v11 = vrot.slane %v1633_v4, 4 }
 0x26a   : > { %v1635_v14 = vadd.f32 %v1634_v11, %v1633_v4 }
 0x26c   : > { %v1636_v17 = vrot.slane %v1635_v14, 2 }
 0x26e   : > { %v1637_v25 = vadd.f32 %v1636_v17, %v1635_v14 }
 0x270   : > { %v1638_v13 = vrot.slane %v1637_v25, 1 }
 0x272   : > { %v1639_v39 = vadd.f32 %v1638_v13, %v1637_v25 }
 0x274   : > { %v2926_v18 = vmul.f32 0.00390625, %v1639_v39 }
 0x276   : > { %1808 = vst.msk [vmem:[%s292_s26] sm:$0x1] %vm1807_vm15, %v2926_v18  ;;  %v2931_v21 = vsub.f32 %v1541_v16, %v2926_v18  ;;  %v2934_v12 = vsub.f32 %v1544_v24, %v2926_v18  ;;  %v2937_v34 = vsub.f32 %v1549_v1, %v2926_v18  ;;  %v2940_v0 = vsub.f32 %v1552_v36, %v2926_v18 }
 0x277   : > { %v2943_v29 = vsub.f32 %v1557_v50, %v2926_v18  ;;  %v2946_v27 = vsub.f32 %v1560_v6, %v2926_v18  ;;  %v2949_v3 = vsub.f32 %v1565_v51, %v2926_v18  ;;  %v2952_v16 = vsub.f32 %v1568_v20, %v2926_v18 }
 0x278   : > { %v1642_v24 = vsub.f32 %v2689_v63, %v2926_v18  ;;  %v1643_v1 = vsub.f32 %v2705_v33, %v2926_v18  ;;  %v1644_v36 = vsub.f32 %v2684_v26, %v2926_v18  ;;  %v1645_v31 = vsub.f32 %v2697_v28, %v2926_v18 }
 0x279   : > { %v1646_v45 = vsub.f32 %v2726_v47, %v2926_v18  ;;  %v1647_v23 = vsub.f32 %v2738_v53, %v2926_v18  ;;  %v1648_v26 = vsub.f32 %v2723_v37, %v2926_v18  ;;  %v1649_v47 = vsub.f32 %v2732_v10, %v2926_v18 }
 0x27a   : > { %v1674_v41 = vmul.f32 %v1642_v24, %v1642_v24  ;;  %v1675_v42 = vmul.f32 %v1643_v1, %v1643_v1  ;;  %v1676_v46 = vmul.f32 %v1644_v36, %v1644_v36  ;;  %v1677_v48 = vmul.f32 %v1645_v31, %v1645_v31 }
 0x27b   : > { %v1678_v49 = vmul.f32 %v1646_v45, %v1646_v45  ;;  %v1679_v52 = vmul.f32 %v1647_v23, %v1647_v23  ;;  %v1650_v56 = vsub.f32 %v2750_v58, %v2926_v18  ;;  %v1680_v5 = vmul.f32 %v1648_v26, %v1648_v26 }
 0x27c   : > { %v1706_v63 = vsel %vm1115_vm7, %v1674_v41, 0.0  ;;  %v1707_v33 = vsel %vm1115_vm7, %v1675_v42, 0.0  ;;  %v1709_v28 = vsel %vm1115_vm7, %v1676_v46, 0.0  ;;  %v1711_v20 = vsel %vm1115_vm7, %v1677_v48, 0.0 }
 0x27d   : > { %v1708_v51 = vadd.f32 %v1707_v33, %v1706_v63  ;;  %v1713_v6 = vsel %vm1115_vm7, %v1678_v49, 0.0  ;;  %v1651_v37 = vsub.f32 %v2762_v44, %v2926_v18  ;;  %v1681_v38 = vmul.f32 %v1649_v47, %v1649_v47 }
 0x27e   : > { %v1715_v7 = vsel %vm1115_vm7, %v1679_v52, 0.0  ;;  %v1652_v10 = vsub.f32 %v2747_v57, %v2926_v18  ;;  %v1682_v8 = vmul.f32 %v1650_v56, %v1650_v56  ;;  %v1717_v9 = vsel %vm1115_vm7, %v1680_v5, 0.0 }
 0x27f   : > { %v1710_v50 = vadd.f32 %v1709_v28, %v1708_v51  ;;  %v1653_v58 = vsub.f32 %v2756_v43, %v2926_v18  ;;  %v1683_v11 = vmul.f32 %v1651_v37, %v1651_v37  ;;  %v1719_v14 = vsel %vm1115_vm7, %v1681_v38, 0.0 }
 0x280   : > { %v1654_v44 = vsub.f32 %v2774_v60, %v2926_v18  ;;  %v1684_v25 = vmul.f32 %v1652_v10, %v1652_v10  ;;  %v1721_v13 = vsel %vm1115_vm7, %v1682_v8, 0.0  ;;  %v1655_v57 = vsub.f32 %v2786_v2, %v2926_v18 }
 0x281   : > { %v1712_v53 = vadd.f32 %v1711_v20, %v1710_v50  ;;  %v1685_v24 = vmul.f32 %v1653_v58, %v1653_v58  ;;  %v1723_v1 = vsel %vm1115_vm7, %v1683_v11, 0.0  ;;  %v1656_v43 = vsub.f32 %v2771_v62, %v2926_v18 }
 0x282   : > { %v1686_v31 = vmul.f32 %v1654_v44, %v1654_v44  ;;  %v1725_v41 = vsel %vm1115_vm7, %v1684_v25, 0.0  ;;  %v1657_v60 = vsub.f32 %v2780_v61, %v2926_v18  ;;  %v1687_v45 = vmul.f32 %v1655_v57, %v1655_v57 }
 0x283   : > { %v1714_v54 = vadd.f32 %v1713_v6, %v1712_v53  ;;  %v1727_v46 = vsel %vm1115_vm7, %v1685_v24, 0.0  ;;  %v1658_v2 = vsub.f32 %v2810_v19, %v2926_v18  ;;  %v1688_v48 = vmul.f32 %v1656_v43, %v1656_v43 }
 0x284   : > { %v1729_v63 = vsel %vm1115_vm7, %v1686_v31, 0.0  ;;  %v1659_v62 = vsub.f32 %v2822_v35, %v2926_v18  ;;  %v1689_v51 = vmul.f32 %v1657_v60, %v1657_v60  ;;  %v1731_v26 = vsel %vm1115_vm7, %v1687_v45, 0.0 }
 0x285   : > { %v1716_v22 = vadd.f32 %v1715_v7, %v1714_v54  ;;  %v1660_v61 = vsub.f32 %v2807_v15, %v2926_v18  ;;  %v1690_v28 = vmul.f32 %v1658_v2, %v1658_v2  ;;  %v1733_v50 = vsel %vm1115_vm7, %v1688_v48, 0.0 }
 0x286   : > { %v1661_v19 = vsub.f32 %v2816_v32, %v2926_v18  ;;  %v1691_v52 = vmul.f32 %v1659_v62, %v1659_v62  ;;  %v1735_v20 = vsel %vm1115_vm7, %v1689_v51, 0.0  ;;  %v1662_v35 = vsub.f32 %v2852_v55, %v2926_v18 }
 0x287   : > { %v1718_v4 = vadd.f32 %v1717_v9, %v1716_v22  ;;  %v1692_v56 = vmul.f32 %v1660_v61, %v1660_v61  ;;  %v1737_v5 = vsel %vm1115_vm7, %v1690_v28, 0.0  ;;  %v1663_v15 = vsub.f32 %v2864_v40, %v2926_v18 }
 0x288   : > { %v1693_v54 = vmul.f32 %v1661_v19, %v1661_v19  ;;  %v1739_v37 = vsel %vm1115_vm7, %v1691_v52, 0.0  ;;  %v1664_v32 = vsub.f32 %v2847_v30, %v2926_v18  ;;  %v1694_v7 = vmul.f32 %v1662_v35, %v1662_v35 }
 0x289   : > { %v1720_v17 = vadd.f32 %v1719_v14, %v1718_v4  ;;  %v1741_v22 = vsel %vm1115_vm7, %v1692_v56, 0.0  ;;  %v1665_v55 = vsub.f32 %v2858_v59, %v2926_v18  ;;  %v1695_v8 = vmul.f32 %v1663_v15, %v1663_v15 }
 0x28a   : > { %v1743_v9 = vsel %vm1115_vm7, %v1693_v54, 0.0  ;;  %v1696_v58 = vmul.f32 %v1664_v32, %v1664_v32  ;;  %v1745_v40 = vsel %vm1115_vm7, %v1694_v7, 0.0  ;;  %v1698_v30 = vmul.f32 %v2931_v21, %v2931_v21 }
 0x28b   : > { %v1722_v39 = vadd.f32 %v1721_v13, %v1720_v17  ;;  %v1697_v14 = vmul.f32 %v1665_v55, %v1665_v55  ;;  %v1747_v17 = vsel %vm1115_vm7, %v1695_v8, 0.0  ;;  %v1699_v59 = vmul.f32 %v2934_v12, %v2934_v12 }
 0x28c   : > { %v1749_v25 = vsel %vm1115_vm7, %v1696_v58, 0.0  ;;  %v1700_v57 = vmul.f32 %v2937_v34, %v2937_v34  ;;  %v1753_v24 = vsel %vm1115_vm7, %v1698_v30, 0.0  ;;  %v1702_v31 = vmul.f32 %v2943_v29, %v2943_v29 }
 0x28d   : > { %v1724_v36 = vadd.f32 %v1723_v1, %v1722_v39  ;;  %v1751_v18 = vsel %vm1115_vm7, %v1697_v14, 0.0  ;;  %v1755_v21 = vsel %vm1115_vm7, %v1699_v59, 0.0  ;;  %v1704_v45 = vmul.f32 %v2949_v3, %v2949_v3 }
 0x28e   : > { %v1757_v12 = vsel %vm1115_vm7, %v1700_v57, 0.0 }
 0x28f   : > { %v1726_v42 = vadd.f32 %v1725_v41, %v1724_v36  ;;  %v1701_v36 = vmul.f32 %v2940_v0, %v2940_v0  ;;  %v1761_v0 = vsel %vm1115_vm7, %v1702_v31, 0.0  ;;  %v1765_v48 = vsel %vm1115_vm7, %v1704_v45, 0.0 }
 0x291   : > { %v1728_v23 = vadd.f32 %v1727_v46, %v1726_v42  ;;  %v1703_v42 = vmul.f32 %v2946_v27, %v2946_v27  ;;  %v1759_v34 = vsel %vm1115_vm7, %v1701_v36, 0.0 }
 0x293   : > { %v1730_v33 = vadd.f32 %v1729_v63, %v1728_v23  ;;  %v1705_v23 = vmul.f32 %v2952_v16, %v2952_v16  ;;  %v1763_v29 = vsel %vm1115_vm7, %v1703_v42, 0.0 }
 0x295   : > { %v1732_v49 = vadd.f32 %v1731_v26, %v1730_v33  ;;  %v1767_v27 = vsel %vm1115_vm7, %v1705_v23, 0.0 }
 0x297   : > { %v1734_v47 = vadd.f32 %v1733_v50, %v1732_v49 }
 0x299   : > { %v1736_v53 = vadd.f32 %v1735_v20, %v1734_v47 }
 0x29b   : > { %v1738_v6 = vadd.f32 %v1737_v5, %v1736_v53 }
 0x29d   : > { %v1740_v38 = vadd.f32 %v1739_v37, %v1738_v6 }
 0x29f   : > { %v1742_v10 = vadd.f32 %v1741_v22, %v1740_v38 }
 0x2a1   : > { %v1744_v4 = vadd.f32 %v1743_v9, %v1742_v10 }
 0x2a3   : > { %v1746_v11 = vadd.f32 %v1745_v40, %v1744_v4 }
 0x2a5   : > { %v1748_v44 = vadd.f32 %v1747_v17, %v1746_v11 }
 0x2a7   : > { %v1750_v13 = vadd.f32 %v1749_v25, %v1748_v44 }
 0x2a9   : > { %v1752_v39 = vadd.f32 %v1751_v18, %v1750_v13 }
 0x2ab   : > { %v1754_v1 = vadd.f32 %v1753_v24, %v1752_v39 }
 0x2ad   : > { %v1756_v43 = vadd.f32 %v1755_v21, %v1754_v1 }
 0x2af   : > { %v1758_v41 = vadd.f32 %v1757_v12, %v1756_v43 }
 0x2b1   : > { %v1760_v60 = vadd.f32 %v1759_v34, %v1758_v41 }
 0x2b3   : > { %v1762_v46 = vadd.f32 %v1761_v0, %v1760_v60 }
 0x2b5   : > { %v1764_v2 = vadd.f32 %v1763_v29, %v1762_v46 }
 0x2b7   : > { %v1766_v63 = vadd.f32 %v1765_v48, %v1764_v2 }
 0x2b9   : > { %v1768_v33 = vadd.f32 %v1767_v27, %v1766_v63 }
 0x2bb   : > { %v1769_v62 = vrot.slane %v1768_v33, 4 }
 0x2bd   : > { %v1770_v51 = vadd.f32 %v1769_v62, %v1768_v33 }
 0x2bf   : > { %v1771_v26 = vrot.slane %v1770_v51, 2 }
 0x2c1   : > { %v1772_v49 = vadd.f32 %v1771_v26, %v1770_v51 }
 0x2c3   : > { %v1773_v3 = vrot.slane %v1772_v49, 1 }
 0x2c5   : > { %v1774_v61 = vadd.f32 %v1773_v3, %v1772_v49 }
 0x2c7   : > { %1809 = vst.msk [vmem:[%s295_s29] sm:$0x1] %vm1807_vm15, %v1774_v61 }
 0x2c8 PF: > { %s18_s24 = sadd.s32 1, %s2039_s24  }
 0x2c9   : > { %p15_p4 = scmp.ge.s32.totalorder %s18_s24, 4  }
 0x2cb   :  { %17 = sbr.rel (!%p15_p4) target bundleno = 1 (0x1), region = 94 }

// kernel: double_conv.4
= control target key start
LH: loop header
LB: loop body
LE: loop exit
PB: predicated region body
PF: predicated region fallthrough
CT: control target
= control target key end

     0   :  { %s2234_s24 = smov 0   ;;  %s3356_s0 = inlined_call_operand.vmem [shape: f32[2,16,16,8], index: 0, kind: input, shape index: {}]   ;;  %s3357_s1 = inlined_call_operand.vmem [shape: f32[1,8], index: 1, kind: input, shape index: {}]   ;;  %s3358_s2 = inlined_call_operand.vmem [shape: f32[1,8], index: 2, kind: input, shape index: {}]   ;;  %s3359_s3 = inlined_call_operand.vmem [shape: bf16[72,8], index: 3, kind: input, shape index: {}]   ;;  %s3360_s4 = inlined_call_operand.vmem [shape: f32[1,8], index: 4, kind: input, shape index: {}]   ;;  %s3361_s5 = inlined_call_operand.vmem [shape: f32[2,16,16,8], index: 5, kind: output, shape index: {0}]   ;;  %s3362_s6 = inlined_call_operand.vmem [shape: f32[2,1,8], index: 6, kind: output, shape index: {1}]   ;;  %s3363_s7 = inlined_call_operand.vmem [shape: f32[2,1,8], index: 7, kind: output, shape index: {2}]  }
   0x1 LB: > { %s2041_s25 = sadd.s32 4294967295, %s2183_s24   ;;  %p2045_p0 = scmp.ge.s32.totalorder %s2183_s24, 1  ;;  %s2183_s24 = sphi %s2234_s24, %s18_s24  }
   0x2   : > { %p242_p1 = scmp.lt.s32.totalorder %s2183_s24, 3 }
   0x4   : > { %p243_p2 = pnand %p2045_p0, %p242_p1 }
   0x5   : > { %vm608_vm0 = vcmask (!%p243_p2), 1040384   ;;  %vm609_vm1 = vsmask.f32 (!%p243_p2), 256  ;;  %v2185_v0 = vmov (!%p243_p2), 0   ;;  %p280_p3 = scmp.lt.s32.totalorder (!%p243_p2), %s2041_s25, 1  ;;  %vm902_vm3 = vcmask (!%p243_p2), 1046528  }
   0x6   : > { %246 = sbr.rel (%p243_p2) target bundleno = 718 (0x2ce), region = 40  ;;  %v458_v1 = vrot.slane (!%p243_p2), %v2185_v0, 7  ;;  %vm2242_vm2 = vmand (!%p243_p2), %vm608_vm0, %vm609_vm1  ;;  %v2260_v9 = vld [vmem:[%s3357_s1] ss:$0 sm:$0xff] (!%p243_p2)  ;;  %s2186_s11 = smov (!%p243_p2), 16   ;;  %vm1532_vm5 = vcmask (!%p243_p2), 1043456  }
   0x7   : > { %v2266_v11 = vld [vmem:[%s3358_s2] ss:$0 sm:$0xff] (!%p243_p2)  ;;  %vm645_vm4 = vsmask.f32 (!%p243_p2), 7424  ;;  %s2187_s12 = smov (!%p243_p2), 8   ;;  %s2188_s17 = smov (!%p243_p2), 24  }
   0x8   : > { %v2248_v3 = vsel (!%p243_p2), %vm2242_vm2, 0, %v458_v1  ;;  %v628_v4 = vsel (!%p243_p2), %vm2242_vm2, %v458_v1, 0  ;;  %v2170_v55 = vld [vmem:[%s3359_s3] sm:$0xff] (!%p243_p2)   ;;  %v2171_v1 = vld [vmem:[%s3359_s3 + $0x8] sm:$0xff] (!%p243_p2)   ;;  %s2189_s20 = smov (!%p243_p2), 48   ;;  %s2190_s23 = smov (!%p243_p2), 40  }
   0x9   : > { %v903_v5 = vrot.slane (!%p243_p2), %v2248_v3, 1  ;;  %v904_v6 = vrot.slane (!%p243_p2), %v628_v4, 1  ;;  %v647_v7 = vshrl.u32 (!%p243_p2), %v2248_v3, 16  ;;  %v649_v8 = vshll.u32 (!%p243_p2), %v2248_v3, 16  ;;  %2099 = vmatprep.subr.bf16.mxu0 (!%p243_p2), %v2170_v55  ;;  %2141 = vmatprep.subr.bf16.mxu1 (!%p243_p2), %v2170_v55  ;;  %s2191_s26 = smov (!%p243_p2), 64   ;;  %s2192_s27 = smov (!%p243_p2), 32  }
   0xa   : > { %v654_v10 = vshll.u32 (!%p243_p2), %v628_v4, 16  ;;  %2100 = vmatpush3.bf16.msra.mxu0 (!%p243_p2), %v2170_v55  ;;  %2146 = vmatpush3.bf16.msra.mxu1 (!%p243_p2), %v2170_v55  ;;  %s2193_s29 = smov (!%p243_p2), 56   ;;  %vm1192_vm6 = vcmask (!%p243_p2), 64512   ;;  %vm1225_vm7 = vcmask (!%p243_p2), 130048   ;;  %vm1258_vm8 = vcmask (!%p243_p2), 195584  }
   0xb   : > { %v2269_v12 = vsel (!%p243_p2), %vm902_vm3, %v903_v5, %v904_v6  ;;  %v651_v13 = vrot.slane (!%p243_p2), %v649_v8, 1  ;;  %2101 = vmatprep.subr.bf16.mxu0 (!%p243_p2), %v2171_v1  ;;  %2142 = vmatprep.subr.bf16.mxu1 (!%p243_p2), %v2171_v1  ;;  %vm1291_vm9 = vcmask (!%p243_p2), 261120   ;;  %vm1324_vm10 = vcmask (!%p243_p2), 326656  }
   0xc   : > { %951 = vrot.lane.b32.xlu1 (!%p243_p2), %v2269_v12, %s2186_s11  ;;  %v656_v14 = vrot.slane (!%p243_p2), %v654_v10, 1  ;;  %vm1357_vm11 = vcmask (!%p243_p2), 392192   ;;  %vm1423_vm12 = vcmask (!%p243_p2), 523264   ;;  %vm1390_vm13 = vcmask (!%p243_p2), 457728  }
   0xd   : > { %s3367_s25 = smov (!%p280_p3, %s2041_s25), 1  ;;  %v652_v18 = vor.u32 %v651_v13, %v647_v7  ;;  %vm1499_vm14 = vcmask 588800   ;;  %vm1933_vm15 = vcmask 57344  }
   0xe   : > { %s2076_s28 = sshll.u32 %s3367_s25, 8  ;;  %2102 = vmatpush3.bf16.msra.mxu0 %v2171_v1  ;;  %2147 = vmatpush3.bf16.msra.mxu1 %v2171_v1  ;;  %s292_s19 = scalar_lea.vmem %s3362_s6, %s3367_s25 }
   0xf   : > { %s2276_s10 = scalar_lea.vmem %s3356_s0, %s2076_s28  ;;  %v2293_v28 = vsel %vm645_vm4, %v652_v18, %v656_v14  ;;  %s295_s22 = scalar_lea.vmem %s3363_s7, %s3367_s25 }
  0x10   : > { %v299_v15 = vld [vmem:[%s2276_s10 + $0x10] sm:$0xff]  ;;  %v300_v16 = vld [vmem:[%s2276_s10 + $0x18] sm:$0xff]  ;;  %v297_v17 = vld [vmem:[%s2276_s10] sm:$0xff]  ;;  %838 = vrot.lane.b32.xlu0 %v2293_v28, %s2187_s12 }
  0x11   : > { %v338_v19 = vmul.f32 %v2260_v9, %v299_v15  ;;  %v339_v20 = vmul.f32 %v2260_v9, %v300_v16  ;;  %v298_v21 = vld [vmem:[%s2276_s10 + $0x8] sm:$0xff]  ;;  %v336_v22 = vmul.f32 %v2260_v9, %v297_v17  ;;  %v301_v23 = vld [vmem:[%s2276_s10 + $0x20] sm:$0xff]  ;;  %v303_v38 = vld [vmem:[%s2276_s10 + $0x30] sm:$0xff] }
  0x12   : > { %v302_v24 = vld [vmem:[%s2276_s10 + $0x28] sm:$0xff]  ;;  %v337_v25 = vmul.f32 %v2260_v9, %v298_v21  ;;  %v340_v26 = vmul.f32 %v2260_v9, %v301_v23  ;;  %v304_v39 = vld [vmem:[%s2276_s10 + $0x38] sm:$0xff]  ;;  %v342_v46 = vmul.f32 %v2260_v9, %v303_v38  ;;  %v305_v8 = vld [vmem:[%s2276_s10 + $0x40] sm:$0xff] }
  0x13   : > { %v341_v27 = vmul.f32 %v2260_v9, %v302_v24  ;;  %v377_v29 = vadd.f32 %v2266_v11, %v338_v19  ;;  %v378_v30 = vadd.f32 %v2266_v11, %v339_v20  ;;  %v375_v31 = vadd.f32 %v2266_v11, %v336_v22  ;;  %v306_v10 = vld [vmem:[%s2276_s10 + $0x48] sm:$0xff]  ;;  %v2172_v20 = vld [vmem:[%s3359_s3 + $0x10] sm:$0xff]  }
  0x14   : > { %v376_v32 = vadd.f32 %v2266_v11, %v337_v25  ;;  %v379_v33 = vadd.f32 %v2266_v11, %v340_v26  ;;  %v343_v47 = vmul.f32 %v2260_v9, %v304_v39  ;;  %v381_v58 = vadd.f32 %v2266_v11, %v342_v46  ;;  %2103 = vmatprep.subr.bf16.mxu0 %v2172_v20 }
  0x15   : > { %v380_v34 = vadd.f32 %v2266_v11, %v341_v27  ;;  %v409_v35 = vmax.f32 %v377_v29, 0.0  ;;  %v410_v36 = vmax.f32 %v378_v30, 0.0  ;;  %v407_v37 = vmax.f32 %v375_v31, 0.0  ;;  %2104 = vmatpush3.bf16.msra.mxu0 %v2172_v20  ;;  %2143 = vmatprep.subr.bf16.mxu1 %v2172_v20 }
  0x16   : > { %v408_v40 = vmax.f32 %v376_v32, 0.0  ;;  %v411_v41 = vmax.f32 %v379_v33, 0.0  ;;  %v382_v59 = vadd.f32 %v2266_v11, %v343_v47  ;;  %v413_v6 = vmax.f32 %v381_v58, 0.0  ;;  %2148 = vmatpush3.bf16.msra.mxu1 %v2172_v20 }
  0x17   : > { %v412_v42 = vmax.f32 %v380_v34, 0.0  ;;  %v440_v43 = vpack.c.bf16 %v410_v36, %v409_v35  ;;  %v344_v18 = vmul.f32 %v2260_v9, %v305_v8  ;;  %v345_v19 = vmul.f32 %v2260_v9, %v306_v10  ;;  %v2173_v34 = vld [vmem:[%s3359_s3 + $0x18] sm:$0xff]  }
  0x18   : > { %v439_v44 = vpack.c.bf16 %v408_v40, %v407_v37  ;;  %v414_v7 = vmax.f32 %v382_v59, 0.0  ;;  %2105 = vmatprep.subr.bf16.mxu0 %v2173_v34  ;;  %2144 = vmatprep.subr.bf16.mxu1 %v2173_v34 }
  0x19   : > { %v441_v45 = vpack.c.bf16 %v412_v42, %v411_v41  ;;  %v470_v48 = vshrl.u32 %v440_v43, 16  ;;  %v473_v49 = vshll.u32 %v440_v43, 16  ;;  %v383_v37 = vadd.f32 %v2266_v11, %v344_v18  ;;  %2106 = vmatpush3.bf16.msra.mxu0 %v2173_v34 }
  0x1a   : > { %v463_v50 = vshrl.u32 %v439_v44, 16  ;;  %v466_v51 = vshll.u32 %v439_v44, 16  ;;  %v442_v24 = vpack.c.bf16 %v414_v7, %v413_v6  ;;  %2149 = vmatpush3.bf16.msra.mxu1 %v2173_v34 }
  0x1b   : > { %v477_v52 = vshrl.u32 %v441_v45, 16  ;;  %v480_v53 = vshll.u32 %v441_v45, 16  ;;  %v472_v54 = vrot.slane %v470_v48, 7  ;;  %v384_v45 = vadd.f32 %v2266_v11, %v345_v19 }
  0x1c   : > { %v465_v56 = vrot.slane %v463_v50, 7  ;;  %v484_v44 = vshrl.u32 %v442_v24, 16 }
  0x1d   : > { %v479_v57 = vrot.slane %v477_v52, 7  ;;  %v475_v60 = vor.u32 %v473_v49, %v472_v54  ;;  %v630_v5 = vsel %vm2242_vm2, %v472_v54, 0  ;;  %v415_v49 = vmax.f32 %v383_v37, 0.0 }
  0x1e   : > { %v468_v61 = vor.u32 %v466_v51, %v465_v56  ;;  %v629_v63 = vsel %vm2242_vm2, %v465_v56, 0  ;;  %v910_v22 = vrot.slane %v630_v5, 1  ;;  %v678_v23 = vshll.u32 %v630_v5, 16 }
  0x1f   : > { %v482_v62 = vor.u32 %v480_v53, %v479_v57  ;;  %v2316_v0 = vsel %vm2242_vm2, 0, %v475_v60  ;;  %v907_v15 = vrot.slane %v629_v63, 1  ;;  %v666_v32 = vshll.u32 %v629_v63, 16 }
  0x20   : > { %986 = vrot.lane.b32.xlu1 %v2316_v0, %s2188_s17  ;;  %v2325_v4 = vsel %vm2242_vm2, 0, %v468_v61  ;;  %v673_v16 = vshll.u32 %v2316_v0, 16  ;;  %v909_v21 = vrot.slane %v2316_v0, 1  ;;  %v671_v26 = vshrl.u32 %v2316_v0, 16  ;;  %v307_v61 = vld [vmem:[%s2276_s10 + $0x50] sm:$0xff] }
  0x21   : > { %984 = vrot.lane.b32.xlu0 %v2325_v4, %s2188_s17  ;;  %v2335_v13 = vsel %vm2242_vm2, 0, %v482_v62  ;;  %v906_v14 = vrot.slane %v2325_v4, 1  ;;  %v661_v17 = vshll.u32 %v2325_v4, 16  ;;  %v659_v30 = vshrl.u32 %v2325_v4, 16  ;;  %v308_v62 = vld [vmem:[%s2276_s10 + $0x58] sm:$0xff] }
  0x22   : > { %v675_v27 = vrot.slane %v673_v16, 1  ;;  %v685_v29 = vshll.u32 %v2335_v13, 16  ;;  %v631_v33 = vsel %vm2242_vm2, %v479_v57, 0  ;;  %v911_v35 = vsel %vm902_vm3, %v909_v21, %v910_v22 }
  0x23   : > { %v908_v25 = vsel %vm902_vm3, %v906_v14, %v907_v15  ;;  %v663_v31 = vrot.slane %v661_v17, 1  ;;  %v680_v36 = vrot.slane %v678_v23, 1  ;;  %v683_v39 = vshrl.u32 %v2335_v13, 16 }
  0x24   : > { %1098 = vrot.lane.b32.xlu1 %v2335_v13, %s2189_s20  ;;  %v676_v38 = vor.u32 %v675_v27, %v671_v26  ;;  %v687_v40 = vrot.slane %v685_v29, 1  ;;  %v690_v41 = vshll.u32 %v631_v33, 16  ;;  %v668_v43 = vrot.slane %v666_v32, 1  ;;  %v309_v26 = vld [vmem:[%s2276_s10 + $0x60] sm:$0xff]  ;;  %v310_v27 = vld [vmem:[%s2276_s10 + $0x68] sm:$0xff] }
  0x25   : > { %1096 = vrot.lane.b32.xlu0 %v2316_v0, %s2189_s20  ;;  %v664_v42 = vor.u32 %v663_v31, %v659_v30  ;;  %v486_v51 = vrot.slane %v484_v44, 7  ;;  %v487_v52 = vshll.u32 %v442_v24, 16  ;;  %v416_v53 = vmax.f32 %v384_v45, 0.0 }
  0x26   : > { %v681_v46 = vsel %vm645_vm4, %v676_v38, %v680_v36  ;;  %v688_v47 = vor.u32 %v687_v40, %v683_v39  ;;  %v692_v48 = vrot.slane %v690_v41, 1  ;;  %v912_v57 = vrot.slane %v2335_v13, 1 }
  0x27   : > { %v669_v50 = vsel %vm645_vm4, %v664_v42, %v668_v43  ;;  %v489_v55 = vor.u32 %v487_v52, %v486_v51  ;;  %v443_v56 = vpack.c.bf16 %v416_v53, %v415_v49  ;;  %v913_v58 = vrot.slane %v631_v33, 1 }
  0x28   : > { %953 = vrot.lane.b32.xlu1 %v908_v25, %s2186_s11  ;;  %v693_v54 = vsel %vm645_vm4, %v688_v47, %v692_v48  ;;  %v346_v1 = vmul.f32 %v2260_v9, %v307_v61  ;;  %v347_v5 = vmul.f32 %v2260_v9, %v308_v62  ;;  %v632_v7 = vsel %vm2242_vm2, %v486_v51, 0 }
  0x29   : > { %1064 = vrot.lane.b32.xlu0 %v908_v25, %s2190_s23  ;;  %v2377_v59 = vsel %vm2242_vm2, 0, %v489_v55  ;;  %v491_v60 = vshrl.u32 %v443_v56, 16  ;;  %v914_v6 = vsel %vm902_vm3, %v912_v57, %v913_v58  ;;  %v494_v10 = vshll.u32 %v443_v56, 16  ;;  %v2174_v25 = vld [vmem:[%s3359_s3 + $0x20] ss:$0 sps:$4 sm:$0xff]   ;;  %v311_v58 = vld [vmem:[%s2276_s10 + $0x70] sm:$0xff] }
  0x2a   : > { %v697_v63 = vshll.u32 %v2377_v59, 16  ;;  %v695_v14 = vshrl.u32 %v2377_v59, 16  ;;  %v702_v16 = vshll.u32 %v632_v7, 16  ;;  %v385_v18 = vadd.f32 %v2266_v11, %v346_v1  ;;  %2151 = vmatprep.subr.msk.bf16.mxu0 %vm1532_vm5, %v2174_v25  ;;  %2152 = vmatprep.subr.msk.bf16.mxu1 %vm1532_vm5, %v2174_v25 }
  0x2b   : > { %v493_v8 = vrot.slane %v491_v60, 7  ;;  %v386_v19 = vadd.f32 %v2266_v11, %v347_v5  ;;  %v916_v29 = vrot.slane %v632_v7, 1  ;;  %v915_v31 = vrot.slane %v2377_v59, 1  ;;  %v312_v60 = vld [vmem:[%s2276_s10 + $0x78] sm:$0xff] }
  0x2c   : > { %1066 = vrot.lane.b32.xlu1 %v911_v35, %s2190_s23  ;;  %v699_v15 = vrot.slane %v697_v63, 1  ;;  %v704_v21 = vrot.slane %v702_v16, 1  ;;  %v417_v23 = vmax.f32 %v385_v18, 0.0  ;;  %v349_v36 = vmul.f32 %v2260_v9, %v310_v27 }
  0x2d   : > { %1160 = vrot.lane.b32.xlu0 %v911_v35, %s2191_s26  ;;  %v496_v17 = vor.u32 %v494_v10, %v493_v8  ;;  %v418_v24 = vmax.f32 %v386_v19, 0.0  ;;  %v633_v33 = vsel %vm2242_vm2, %v493_v8, 0  ;;  %v1534_v37 = vsel %vm1532_vm5, %v2174_v25, 0  ;;  %v314_v25 = vld [vmem:[%s2276_s10 + $0x88] sm:$0xff] }
  0x2e   : > { %v700_v20 = vor.u32 %v699_v15, %v695_v14  ;;  %2108 = vmatpush3.bf16.msra.mxu0 %v1534_v37  ;;  %v917_v38 = vsel %vm902_vm3, %v915_v31, %v916_v29  ;;  %v714_v41 = vshll.u32 %v633_v33, 16  ;;  %2150 = vmatpush3.bf16.msra.mxu1 %v1534_v37  ;;  %v388_v44 = vadd.f32 %v2266_v11, %v349_v36 }
  0x2f   : > { %v2398_v22 = vsel %vm2242_vm2, 0, %v496_v17  ;;  %v444_v34 = vpack.c.bf16 %v418_v24, %v417_v23  ;;  %v919_v55 = vrot.slane %v633_v33, 1  ;;  %v350_v62 = vmul.f32 %v2260_v9, %v311_v58  ;;  %v313_v24 = vld [vmem:[%s2276_s10 + $0x80] sm:$0xff] }
  0x30   : > { %1030 = vrot.lane.b32.xlu1 %v681_v46, %s2192_s27  ;;  %v705_v30 = vsel %vm645_vm4, %v700_v20, %v704_v21  ;;  %v709_v32 = vshll.u32 %v2398_v22, 16  ;;  %v707_v39 = vshrl.u32 %v2398_v22, 16  ;;  %v351_v63 = vmul.f32 %v2260_v9, %v312_v60 }
  0x31   : > { %840 = vrot.lane.b32.xlu0 %v669_v50, %s2187_s12  ;;  %v498_v42 = vshrl.u32 %v444_v34, 16  ;;  %v501_v48 = vshll.u32 %v444_v34, 16  ;;  %v389_v16 = vadd.f32 %v2266_v11, %v350_v62  ;;  %v352_v33 = vmul.f32 %v2260_v9, %v313_v24  ;;  %v318_v24 = vld [vmem:[%s2276_s10 + $0xa8] sm:$0xff] }
  0x32   : > { %v711_v40 = vrot.slane %v709_v32, 1  ;;  %v390_v17 = vadd.f32 %v2266_v11, %v351_v63  ;;  %v353_v34 = vmul.f32 %v2260_v9, %v314_v25 }
  0x33   : > { %v500_v47 = vrot.slane %v498_v42, 7  ;;  %v421_v21 = vmax.f32 %v389_v16, 0.0 }
  0x34   : > { %1130 = vrot.lane.b32.xlu1 %v693_v54, %s2193_s29  ;;  %v712_v45 = vor.u32 %v711_v40, %v707_v39  ;;  %v422_v23 = vmax.f32 %v390_v17, 0.0  ;;  %v391_v40 = vadd.f32 %v2266_v11, %v352_v33  ;;  %v357_v33 = vmul.f32 %v2260_v9, %v318_v24 }
  0x35   : > { %1028 = vrot.lane.b32.xlu0 %v669_v50, %s2192_s27  ;;  %v420_v50 = vmax.f32 %v388_v44, 0.0  ;;  %v503_v52 = vor.u32 %v501_v48, %v500_v47  ;;  %v634_v5 = vsel %vm2242_vm2, %v500_v47, 0 }
  0x36   : > { %v726_v14 = vshll.u32 %v634_v5, 16  ;;  %v922_v29 = vrot.slane %v634_v5, 1  ;;  %v446_v32 = vpack.c.bf16 %v422_v23, %v421_v21  ;;  %v317_v23 = vld [vmem:[%s2276_s10 + $0xa0] sm:$0xff] }
  0x37   : > { %v2434_v56 = vsel %vm2242_vm2, 0, %v503_v52 }
  0x38   : > { %842 = vrot.lane.b32.xlu1 %v681_v46, %s2187_s12  ;;  %v721_v61 = vshll.u32 %v2434_v56, 16  ;;  %v719_v8 = vshrl.u32 %v2434_v56, 16  ;;  %v728_v19 = vrot.slane %v726_v14, 1  ;;  %v921_v27 = vrot.slane %v2434_v56, 1 }
  0x39   : > { %1128 = vrot.lane.b32.xlu0 %v681_v46, %s2193_s29  ;;  %v716_v46 = vrot.slane %v714_v41, 1  ;;  %v512_v39 = vshrl.u32 %v446_v32, 16  ;;  %v392_v41 = vadd.f32 %v2266_v11, %v353_v34 }
  0x3a   : > { %v723_v10 = vrot.slane %v721_v61, 1 }
  0x3b   : > { %v717_v51 = vsel %vm645_vm4, %v712_v45, %v716_v46  ;;  %v514_v44 = vrot.slane %v512_v39, 7  ;;  %v515_v45 = vshll.u32 %v446_v32, 16  ;;  %v423_v46 = vmax.f32 %v391_v40, 0.0 }
  0x3c   : > { %844 = vrot.lane.b32.xlu1 %v693_v54, %s2187_s12  ;;  %v724_v18 = vor.u32 %v723_v10, %v719_v8  ;;  %v424_v47 = vmax.f32 %v392_v41, 0.0  ;;  %v356_v32 = vmul.f32 %v2260_v9, %v317_v23  ;;  %v396_v40 = vadd.f32 %v2266_v11, %v357_v33 }
  0x3d   : > { %1162 = vrot.lane.b32.xlu0 %v914_v6, %s2191_s26  ;;  %v636_v63 = vsel %vm2242_vm2, %v514_v44, 0 }
  0x3e   : > { %v750_v8 = vshll.u32 %v636_v63, 16  ;;  %v395_v39 = vadd.f32 %v2266_v11, %v356_v32  ;;  %v321_v32 = vld [vmem:[%s2276_s10 + $0xc0] sm:$0xff] }
  0x40   : > { %957 = vrot.lane.b32.xlu1 %v914_v6, %s2186_s11  ;;  %v752_v17 = vrot.slane %v750_v8, 1 }
  0x41   : > { %955 = vrot.lane.b32.xlu0 %v911_v35, %s2186_s11  ;;  %v348_v35 = vmul.f32 %v2260_v9, %v309_v26  ;;  %v729_v26 = vsel %vm645_vm4, %v724_v18, %v728_v19 }
  0x43   : > { %v387_v43 = vadd.f32 %v2266_v11, %v348_v35  ;;  %v923_v35 = vsel %vm902_vm3, %v921_v27, %v922_v29  ;;  %v928_v27 = vrot.slane %v636_v63, 1 }
  0x44   : > { %990 = vrot.lane.b32.xlu1 %v2377_v59, %s2188_s17 }
  0x45   : > { %988 = vrot.lane.b32.xlu0 %v2335_v13, %s2188_s17  ;;  %v419_v49 = vmax.f32 %v387_v43, 0.0 }
  0x47   : > { %v445_v53 = vpack.c.bf16 %v420_v50, %v419_v49  ;;  %v517_v49 = vor.u32 %v515_v45, %v514_v44  ;;  %v447_v50 = vpack.c.bf16 %v424_v47, %v423_v46  ;;  %v427_v47 = vmax.f32 %v395_v39, 0.0 }
  0x48   : > { %1034 = vrot.lane.b32.xlu1 %v705_v30, %s2192_s27 }
  0x49   : > { %1032 = vrot.lane.b32.xlu0 %v693_v54, %s2192_s27  ;;  %v918_v54 = vrot.slane %v2398_v22, 1  ;;  %v505_v57 = vshrl.u32 %v445_v53, 16  ;;  %v508_v7 = vshll.u32 %v445_v53, 16  ;;  %v2488_v53 = vsel %vm2242_vm2, 0, %v517_v49 }
  0x4a   : > { %v745_v58 = vshll.u32 %v2488_v53, 16  ;;  %v522_v5 = vshll.u32 %v447_v50, 16 }
  0x4b   : > { %v920_v1 = vsel %vm902_vm3, %v918_v54, %v919_v55  ;;  %v519_v54 = vshrl.u32 %v447_v50, 16  ;;  %v315_v55 = vld [vmem:[%s2276_s10 + $0x90] sm:$0xff] }
  0x4c   : > { %1070 = vrot.lane.b32.xlu1 %v917_v38, %s2190_s23  ;;  %v354_v60 = vmul.f32 %v2260_v9, %v315_v55 }
  0x4d   : > { %1068 = vrot.lane.b32.xlu0 %v914_v6, %s2190_s23  ;;  %v507_v6 = vrot.slane %v505_v57, 7  ;;  %v316_v57 = vld [vmem:[%s2276_s10 + $0x98] sm:$0xff] }
  0x4e   : > { %v355_v61 = vmul.f32 %v2260_v9, %v316_v57  ;;  %v393_v14 = vadd.f32 %v2266_v11, %v354_v60 }
  0x4f   : > { %v510_v15 = vor.u32 %v508_v7, %v507_v6  ;;  %v635_v31 = vsel %vm2242_vm2, %v507_v6, 0  ;;  %v743_v6 = vshrl.u32 %v2488_v53, 16  ;;  %v747_v7 = vrot.slane %v745_v58, 1 }
  0x50   : > { %1102 = vrot.lane.b32.xlu1 %v2398_v22, %s2189_s20  ;;  %v925_v52 = vrot.slane %v635_v31, 1  ;;  %v425_v19 = vmax.f32 %v393_v14, 0.0 }
  0x51   : > { %1100 = vrot.lane.b32.xlu0 %v2377_v59, %s2189_s20  ;;  %v2455_v20 = vsel %vm2242_vm2, 0, %v510_v15  ;;  %v394_v15 = vadd.f32 %v2266_v11, %v355_v61  ;;  %v748_v16 = vor.u32 %v747_v7, %v743_v6 }
  0x52   : > { %v731_v36 = vshrl.u32 %v2455_v20, 16 }
  0x53   : > { %v426_v21 = vmax.f32 %v394_v15, 0.0  ;;  %v753_v25 = vsel %vm645_vm4, %v748_v16, %v752_v17 }
  0x54   : > { %1134 = vrot.lane.b32.xlu1 %v717_v51, %s2193_s29 }
  0x55   : > { %1132 = vrot.lane.b32.xlu0 %v705_v30, %s2193_s29 }
  0x58   : > { %846 = vrot.lane.b32.xlu1 %v705_v30, %s2187_s12  ;;  %v733_v30 = vshll.u32 %v2455_v20, 16 }
  0x59   : > { %1164 = vrot.lane.b32.xlu0 %v917_v38, %s2191_s26 }
  0x5a   : > { %v735_v37 = vrot.slane %v733_v30, 1 }
  0x5c   : > { %848 = vrot.lane.b32.xlu1 %v717_v51, %s2187_s12  ;;  %v736_v42 = vor.u32 %v735_v37, %v731_v36 }
  0x5d   : > { %1166 = vrot.lane.b32.xlu0 %v920_v1, %s2191_s26 }
  0x60   : > { %961 = vrot.lane.b32.xlu1 %v920_v1, %s2186_s11 }
  0x61   : > { %959 = vrot.lane.b32.xlu0 %v917_v38, %s2186_s11  ;;  %v738_v38 = vshll.u32 %v635_v31, 16  ;;  %v448_v31 = vpack.c.bf16 %v426_v21, %v425_v19 }
  0x63   : > { %v740_v43 = vrot.slane %v738_v38, 1  ;;  %v526_v38 = vshrl.u32 %v448_v31, 16  ;;  %v529_v46 = vshll.u32 %v448_v31, 16 }
  0x64   : > { %994 = vrot.lane.b32.xlu1 %v2434_v56, %s2188_s17 }
  0x65   : > { %992 = vrot.lane.b32.xlu0 %v2398_v22, %s2188_s17  ;;  %v741_v48 = vsel %vm645_vm4, %v736_v42, %v740_v43  ;;  %v528_v45 = vrot.slane %v526_v38, 7 }
  0x68   : > { %1038 = vrot.lane.b32.xlu1 %v729_v26, %s2192_s27 }
  0x69   : > { %1036 = vrot.lane.b32.xlu0 %v717_v51, %s2192_s27  ;;  %v924_v51 = vrot.slane %v2455_v20, 1 }
  0x6b   : > { %v926_v62 = vsel %vm902_vm3, %v924_v51, %v925_v52  ;;  %v531_v51 = vor.u32 %v529_v46, %v528_v45 }
  0x6c   : > { %1074 = vrot.lane.b32.xlu1 %v923_v35, %s2190_s23 }
  0x6d   : > { %1072 = vrot.lane.b32.xlu0 %v920_v1, %s2190_s23  ;;  %v521_v1 = vrot.slane %v519_v54, 7  ;;  %v2553_v60 = vsel %vm2242_vm2, 0, %v531_v51 }
  0x6e   : > { %v769_v6 = vshll.u32 %v2553_v60, 16  ;;  %v767_v19 = vshrl.u32 %v2553_v60, 16 }
  0x6f   : > { %v524_v10 = vor.u32 %v522_v5, %v521_v1  ;;  %v637_v30 = vsel %vm2242_vm2, %v521_v1, 0  ;;  %v320_v1 = vld [vmem:[%s2276_s10 + $0xb8] sm:$0xff] }
  0x70   : > { %1106 = vrot.lane.b32.xlu1 %v2455_v20, %s2189_s20  ;;  %v762_v37 = vshll.u32 %v637_v30, 16  ;;  %v931_v57 = vrot.slane %v637_v30, 1  ;;  %v359_v16 = vmul.f32 %v2260_v9, %v320_v1  ;;  %v771_v21 = vrot.slane %v769_v6, 1 }
  0x71   : > { %1104 = vrot.lane.b32.xlu0 %v2434_v56, %s2189_s20  ;;  %v2509_v18 = vsel %vm2242_vm2, 0, %v524_v10  ;;  %v638_v10 = vsel %vm2242_vm2, %v528_v45, 0  ;;  %v360_v45 = vmul.f32 %v2260_v9, %v321_v32 }
  0x72   : > { %v757_v29 = vshll.u32 %v2509_v18, 16  ;;  %v764_v44 = vrot.slane %v762_v37, 1  ;;  %v930_v55 = vrot.slane %v2509_v18, 1  ;;  %v774_v23 = vshll.u32 %v638_v10, 16 }
  0x73   : > { %v772_v30 = vor.u32 %v771_v21, %v767_v19  ;;  %v399_v19 = vadd.f32 %v2266_v11, %v360_v45 }
  0x74   : > { %1138 = vrot.lane.b32.xlu1 %v741_v48, %s2193_s29  ;;  %v759_v36 = vrot.slane %v757_v29, 1  ;;  %v2562_v5 = vsel %vm902_vm3, %v930_v55, %v931_v57  ;;  %v776_v31 = vrot.slane %v774_v23, 1 }
  0x75   : > { %1136 = vrot.lane.b32.xlu0 %v729_v26, %s2193_s29 }
  0x78   : > { %850 = vrot.lane.b32.xlu1 %v729_v26, %s2187_s12  ;;  %v927_v26 = vrot.slane %v2488_v53, 1 }
  0x79   : > { %1168 = vrot.lane.b32.xlu0 %v923_v35, %s2191_s26 }
  0x7a   : > { %v929_v34 = vsel %vm902_vm3, %v927_v26, %v928_v27  ;;  %v398_v27 = vadd.f32 %v2266_v11, %v359_v16 }
  0x7c   : > { %852 = vrot.lane.b32.xlu1 %v741_v48, %s2187_s12  ;;  %v430_v37 = vmax.f32 %v398_v27, 0.0 }
  0x7d   : > { %1170 = vrot.lane.b32.xlu0 %v926_v62, %s2191_s26 }
  0x7e   : > { %v2531_v41 = vpop.permute.xlu1 %951 }
  0x80   : > { %965 = vrot.lane.b32.xlu1 %v926_v62, %s2186_s11 }
  0x81   : > { %963 = vrot.lane.b32.xlu0 %v923_v35, %s2186_s11  ;;  %v755_v35 = vshrl.u32 %v2509_v18, 16 }
  0x82   : > { %v839_v42 = vpop.permute.xlu0 %838 }
  0x83   : > { %v760_v43 = vor.u32 %v759_v36, %v755_v35  ;;  %v1194_v38 = vsel %vm1192_vm6, %v2248_v3, %v839_v42  ;;  %v2597_v42 = vsel %vm645_vm4, %v772_v30, %v776_v31 }
  0x84   : > { %998 = vrot.lane.b32.xlu1 %v2488_v53, %s2188_s17 }
  0x85   : > { %996 = vrot.lane.b32.xlu0 %v2455_v20, %s2188_s17  ;;  %v2539_v49 = vsel %vm645_vm4, %v760_v43, %v764_v44  ;;  %v933_v43 = vrot.slane %v2553_v60, 1  ;;  %v934_v44 = vrot.slane %v638_v10, 1 }
  0x88   : > { %1042 = vrot.lane.b32.xlu1 %v753_v25, %s2192_s27 }
  0x89   : > { %1040 = vrot.lane.b32.xlu0 %v741_v48, %s2192_s27  ;;  %v428_v48 = vmax.f32 %v396_v40, 0.0  ;;  %v322_v40 = vld [vmem:[%s2276_s10 + $0xc8] sm:$0xff] }
  0x8a   : > { %v361_v57 = vmul.f32 %v2260_v9, %v322_v40  ;;  %v323_v40 = vld [vmem:[%s2276_s10 + $0xd0] sm:$0xff] }
  0x8b   : > { %v449_v52 = vpack.c.bf16 %v428_v48, %v427_v47  ;;  %v1227_v48 = vsel %vm1225_vm7, %v1194_v38, %v2531_v41  ;;  %v2616_v41 = vsel %vm902_vm3, %v933_v43, %v934_v44 }
  0x8c   : > { %1078 = vrot.lane.b32.xlu1 %v929_v34, %s2190_s23  ;;  %v400_v21 = vadd.f32 %v2266_v11, %v361_v57 }
  0x8d   : > { %1076 = vrot.lane.b32.xlu0 %v926_v62, %s2190_s23  ;;  %v533_v61 = vshrl.u32 %v449_v52, 16  ;;  %v319_v62 = vld [vmem:[%s2276_s10 + $0xb0] sm:$0xff]  ;;  %v536_v15 = vshll.u32 %v449_v52, 16 }
  0x8e   : > { %v358_v7 = vmul.f32 %v2260_v9, %v319_v62  ;;  %v432_v31 = vmax.f32 %v400_v21, 0.0 }
  0x8f   : > { %v535_v14 = vrot.slane %v533_v61, 7 }
  0x90   : > { %1110 = vrot.lane.b32.xlu1 %v2509_v18, %s2189_s20  ;;  %v397_v26 = vadd.f32 %v2266_v11, %v358_v7 }
  0x91   : > { %1108 = vrot.lane.b32.xlu0 %v2488_v53, %s2189_s20  ;;  %v2601_v47 = vsel %vm2242_vm2, %v535_v14, 0 }
  0x92   : > { %v2541_v50 = vpop.permute.xlu1 %986  ;;  %v429_v36 = vmax.f32 %v397_v26, 0.0  ;;  %v937_v44 = vrot.slane %v2601_v47, 1 }
  0x93   : > { %v2543_v54 = vpop.permute.xlu0 %984 }
  0x94   : > { %1142 = vrot.lane.b32.xlu1 %v2539_v49, %s2193_s29  ;;  %v450_v55 = vpack.c.bf16 %v430_v37, %v429_v36  ;;  %v1260_v61 = vsel %vm1258_vm8, %v1227_v48, %v2543_v54 }
  0x95   : > { %1140 = vrot.lane.b32.xlu0 %v753_v25, %s2193_s29 }
  0x96   : > { %v2549_v58 = vpop.permute.xlu1 %1098  ;;  %v540_v16 = vshrl.u32 %v450_v55, 16  ;;  %v543_v30 = vshll.u32 %v450_v55, 16 }
  0x97   : > { %v2556_v63 = vpop.permute.xlu0 %1096 }
  0x98   : > { %854 = vrot.lane.b32.xlu1 %v753_v25, %s2187_s12  ;;  %v538_v25 = vor.u32 %v536_v15, %v535_v14  ;;  %v542_v27 = vrot.slane %v540_v16, 7 }
  0x99   : > { %1172 = vrot.lane.b32.xlu0 %v929_v34, %s2191_s26 }
  0x9a   : > { %v954_v8 = vpop.permute.xlu1 %953  ;;  %v2582_v35 = vsel %vm2242_vm2, 0, %v538_v25  ;;  %v545_v37 = vor.u32 %v543_v30, %v542_v27 }
  0x9b   : > { %v1065_v17 = vpop.permute.xlu0 %1064  ;;  %v779_v54 = vshrl.u32 %v2582_v35, 16  ;;  %v936_v43 = vrot.slane %v2582_v35, 1 }
  0x9c   : > { %856 = vrot.lane.b32.xlu1 %v2539_v49, %s2187_s12  ;;  %v2664_v45 = vsel %vm2242_vm2, 0, %v545_v37  ;;  %v2718_v37 = vld [vmem:[%s3357_s1] ss:$0 sm:$0xff] }
  0x9d   : > { %1174 = vrot.lane.b32.xlu0 %v2562_v5, %s2191_s26  ;;  %v2677_v57 = vsel %vm902_vm3, %v936_v43, %v937_v44 }
  0x9e   : > { %v1067_v24 = vpop.permute.xlu1 %1066 }
  0x9f   : > { %v1161_v29 = vpop.permute.xlu0 %1160 }
  0xa0   : > { %969 = vrot.lane.b32.xlu1 %v2562_v5, %s2186_s11 }
  0xa1   : > { %967 = vrot.lane.b32.xlu0 %v929_v34, %s2186_s11 }
  0xa2   : > { %v1031_v33 = vpop.permute.xlu1 %1030 }
  0xa3   : > { %v841_v39 = vpop.permute.xlu0 %840 }
  0xa4   : > { %v1196_v34 = vsel %vm1192_vm6, %v2325_v4, %v841_v39  ;;  %1002 = vrot.lane.b32.xlu1 %v2553_v60, %s2188_s17  ;;  %v781_v4 = vshll.u32 %v2582_v35, 16 }
  0xa5   : > { %v1229_v46 = vsel %vm1225_vm7, %v1196_v34, %v954_v8  ;;  %1000 = vrot.lane.b32.xlu0 %v2509_v18, %s2188_s17 }
  0xa6   : > { %v1262_v51 = vsel %vm1258_vm8, %v1229_v46, %v2541_v50  ;;  %v1131_v52 = vpop.permute.xlu1 %1130  ;;  %v786_v50 = vshll.u32 %v2601_v47, 16  ;;  %v783_v10 = vrot.slane %v781_v4, 1  ;;  %v324_v4 = vld [vmem:[%s2276_s10 + $0xd8] sm:$0xff] }
  0xa7   : > { %v1295_v62 = vsel %vm1291_vm9, %v1262_v51, %v1031_v33  ;;  %v1029_v1 = vpop.permute.xlu0 %1028  ;;  %v362_v51 = vmul.f32 %v2260_v9, %v323_v40  ;;  %v363_v55 = vmul.f32 %v2260_v9, %v324_v4  ;;  %v791_v9 = vshrl.u32 %v2664_v45, 16 }
  0xa8   : > { %v1293_v6 = vsel %vm1291_vm9, %v1260_v61, %v1029_v1  ;;  %1046 = vrot.lane.b32.xlu1 %v2597_v42, %s2192_s27  ;;  %v1328_v7 = vsel %vm1324_vm10, %v1295_v62, %v1067_v24  ;;  %v784_v24 = vor.u32 %v783_v10, %v779_v54  ;;  %v788_v25 = vrot.slane %v786_v50, 1 }
  0xa9   : > { %v1326_v8 = vsel %vm1324_vm10, %v1293_v6, %v1065_v17  ;;  %1044 = vrot.lane.b32.xlu0 %v2539_v49, %s2192_s27  ;;  %v1361_v17 = vsel %vm1357_vm11, %v1328_v7, %v2549_v58  ;;  %v431_v58 = vmax.f32 %v399_v19, 0.0  ;;  %v640_v61 = vsel %vm2242_vm2, %v542_v27, 0 }
  0xaa   : > { %v2624_v14 = vpop.permute.xlu1 %842  ;;  %v1359_v15 = vsel %vm1357_vm11, %v1326_v8, %v2556_v63  ;;  %v1394_v32 = vsel %vm1390_vm13, %v1361_v17, %v1131_v52  ;;  %v793_v52 = vshll.u32 %v2664_v45, 16  ;;  %v401_v6 = vadd.f32 %v2266_v11, %v362_v51 }
  0xab   : > { %v1129_v23 = vpop.permute.xlu0 %1128  ;;  %v451_v38 = vpack.c.bf16 %v432_v31, %v431_v58  ;;  %v798_v7 = vshll.u32 %v640_v61, 16  ;;  %v402_v8 = vadd.f32 %v2266_v11, %v363_v55  ;;  %v325_v11 = vld [vmem:[%s2276_s10 + $0xe0] sm:$0xff]  ;;  %v940_v27 = vrot.slane %v640_v61, 1 }
  0xac   : > { %v1392_v49 = vsel %vm1390_vm13, %v1359_v15, %v1129_v23  ;;  %1082 = vrot.lane.b32.xlu1 %v2616_v41, %s2190_s23  ;;  %v795_v50 = vrot.slane %v793_v52, 1  ;;  %v433_v21 = vmax.f32 %v401_v6, 0.0  ;;  %v1198_v30 = vsel %vm1192_vm6, %v2316_v0, %v2624_v14 }
  0xad   : > { %1080 = vrot.lane.b32.xlu0 %v2562_v5, %s2190_s23  ;;  %v1425_v63 = vsel %vm1423_vm12, %v1392_v49, %v1161_v29  ;;  %v2649_v5 = vsel %vm645_vm4, %v784_v24, %v788_v25  ;;  %v547_v46 = vshrl.u32 %v451_v38, 16  ;;  %v550_v1 = vshll.u32 %v451_v38, 16  ;;  %v326_v24 = vld [vmem:[%s2276_s10 + $0xe8] sm:$0xff] }
  0xae   : > { %2109 = vmatprep.mubr.msk.bf16.mxu0 %vm1499_vm14, %v1425_v63  ;;  %v2639_v26 = vpop.permute.xlu1 %844  ;;  %v796_v16 = vor.u32 %v795_v50, %v791_v9  ;;  %v800_v19 = vrot.slane %v798_v7, 1  ;;  %v434_v23 = vmax.f32 %v402_v8, 0.0  ;;  %v939_v25 = vrot.slane %v2664_v45, 1 }
  0xaf   : > { %v1163_v33 = vpop.permute.xlu0 %1162  ;;  %v549_v62 = vrot.slane %v547_v46, 7  ;;  %v364_v38 = vmul.f32 %v2718_v37, %v325_v11  ;;  %v365_v0 = vmul.f32 %v2718_v37, %v326_v24  ;;  %v1200_v4 = vsel %vm1192_vm6, %v2335_v13, %v2639_v26 }
  0xb0   : > { %v1427_v36 = vsel %vm1423_vm12, %v1394_v32, %v1163_v33  ;;  %1114 = vrot.lane.b32.xlu1 %v2582_v35, %s2189_s20  ;;  %v2711_v58 = vsel %vm645_vm4, %v796_v16, %v800_v19  ;;  %v452_v32 = vpack.c.bf16 %v434_v23, %v433_v21 }
  0xb1   : > { %1112 = vrot.lane.b32.xlu0 %v2553_v60, %s2189_s20  ;;  %2110 = vmatmul.mubr.msk.bf16.vlgmr.msra.gmra.mrb[0].mxu0 %vm1499_vm14, %v1427_v36  ;;  %v552_v10 = vor.u32 %v550_v1, %v549_v62  ;;  %v2176_v1 = vld [vmem:[%s3358_s2] ss:$0 sm:$0xff] }
  0xb2   : > { %v2651_v29 = vpop.permute.xlu1 %957  ;;  %v554_v52 = vshrl.u32 %v452_v32, 16  ;;  %v404_v13 = vadd.f32 %v2176_v1, %v365_v0  ;;  %v557_v8 = vshll.u32 %v452_v32, 16 }
  0xb3   : > { %v956_v39 = vpop.permute.xlu0 %955  ;;  %v2694_v49 = vsel %vm2242_vm2, 0, %v552_v10  ;;  %v1233_v55 = vsel %vm1225_vm7, %v1200_v4, %v2651_v29 }
  0xb4   : > { %1146 = vrot.lane.b32.xlu1 %v2649_v5, %s2193_s29  ;;  %v805_v31 = vshll.u32 %v2694_v49, 16  ;;  %v1231_v33 = vsel %vm1225_vm7, %v1198_v30, %v956_v39  ;;  %v2727_v39 = vsel %vm902_vm3, %v939_v25, %v940_v27  ;;  %v803_v44 = vshrl.u32 %v2694_v49, 16 }
  0xb5   : > { %1144 = vrot.lane.b32.xlu0 %v2597_v42, %s2193_s29  ;;  %v436_v19 = vmax.f32 %v404_v13, 0.0  ;;  %v942_v25 = vrot.slane %v2694_v49, 1 }
  0xb6   : > { %v2658_v34 = vpop.permute.xlu1 %990 }
  0xb7   : > { %v989_v48 = vpop.permute.xlu0 %988  ;;  %v1266_v26 = vsel %vm1258_vm8, %v1233_v55, %v2658_v34 }
  0xb8   : > { %858 = vrot.lane.b32.xlu1 %v2597_v42, %s2187_s12  ;;  %v1264_v14 = vsel %vm1258_vm8, %v1231_v33, %v989_v48  ;;  %v807_v48 = vrot.slane %v805_v31, 1 }
  0xb9   : > { %1176 = vrot.lane.b32.xlu0 %v2616_v41, %s2191_s26 }
  0xba   : > { %v2674_v47 = vpop.permute.xlu1 %1034  ;;  %v808_v7 = vor.u32 %v807_v48, %v803_v44 }
  0xbb   : > { %v1033_v42 = vpop.permute.xlu0 %1032  ;;  %v1299_v9 = vsel %vm1291_vm9, %v1266_v26, %v2674_v47  ;;  %v556_v47 = vrot.slane %v554_v52, 7 }
  0xbc   : > { %860 = vrot.lane.b32.xlu1 %v2649_v5, %s2187_s12  ;;  %v1297_v43 = vsel %vm1291_vm9, %v1264_v14, %v1033_v42  ;;  %v403_v42 = vadd.f32 %v2176_v1, %v364_v38  ;;  %v328_v38 = vld [vmem:[%s2276_s10 + $0xf8] sm:$0xff] }
  0xbd   : > { %1178 = vrot.lane.b32.xlu0 %v2677_v57, %s2191_s26  ;;  %v367_v4 = vmul.f32 %v2718_v37, %v328_v38 }
  0xbe   : > { %v1071_v54 = vpop.permute.xlu1 %1070  ;;  %v435_v16 = vmax.f32 %v403_v42, 0.0 }
  0xbf   : > { %v1069_v15 = vpop.permute.xlu0 %1068  ;;  %v1332_v50 = vsel %vm1324_vm10, %v1299_v9, %v1071_v54  ;;  %v406_v13 = vadd.f32 %v2176_v1, %v367_v4 }
  0xc0   : > { %973 = vrot.lane.b32.xlu1 %v2677_v57, %s2186_s11  ;;  %v1330_v51 = vsel %vm1324_vm10, %v1297_v43, %v1069_v15  ;;  %v453_v11 = vpack.c.bf16 %v436_v19, %v435_v16 }
  0xc1   : > { %971 = vrot.lane.b32.xlu0 %v2616_v41, %s2186_s11  ;;  %v2703_v41 = vsel %vm2242_vm2, %v549_v62, 0 }
  0xc2   : > { %v1103_v17 = vpop.permute.xlu1 %1102  ;;  %v810_v46 = vshll.u32 %v2703_v41, 16  ;;  %v943_v27 = vrot.slane %v2703_v41, 1  ;;  %v561_v32 = vshrl.u32 %v453_v11, 16  ;;  %v642_v41 = vsel %vm2242_vm2, %v556_v47, 0 }
  0xc3   : > { %v1101_v63 = vpop.permute.xlu0 %1100  ;;  %v1365_v10 = vsel %vm1357_vm11, %v1332_v50, %v1103_v17  ;;  %v564_v44 = vshll.u32 %v453_v11, 16  ;;  %v822_v52 = vshll.u32 %v642_v41, 16  ;;  %v438_v50 = vmax.f32 %v406_v13, 0.0 }
  0xc4   : > { %1006 = vrot.lane.b32.xlu1 %v2664_v45, %s2188_s17  ;;  %v1363_v61 = vsel %vm1357_vm11, %v1330_v51, %v1101_v63  ;;  %v812_v34 = vrot.slane %v810_v46, 1  ;;  %v559_v63 = vor.u32 %v557_v8, %v556_v47  ;;  %v944_v0 = vsel %vm902_vm3, %v942_v25, %v943_v27 }
  0xc5   : > { %1004 = vrot.lane.b32.xlu0 %v2582_v35, %s2188_s17  ;;  %v563_v43 = vrot.slane %v561_v32, 7 }
  0xc6   : > { %v1135_v36 = vpop.permute.xlu1 %1134  ;;  %v2782_v31 = vsel %vm2242_vm2, 0, %v559_v63 }
  0xc7   : > { %v1133_v40 = vpop.permute.xlu0 %1132  ;;  %v1398_v21 = vsel %vm1390_vm13, %v1365_v10, %v1135_v36  ;;  %v327_v36 = vld [vmem:[%s2276_s10 + $0xf0] sm:$0xff]  ;;  %v817_v14 = vshll.u32 %v2782_v31, 16  ;;  %v643_v19 = vsel %vm2242_vm2, %v563_v43, 0 }
  0xc8   : > { %1050 = vrot.lane.b32.xlu1 %v2711_v58, %s2192_s27  ;;  %v366_v46 = vmul.f32 %v2718_v37, %v327_v36  ;;  %v834_v27 = vshll.u32 %v643_v19, 16 }
  0xc9   : > { %1048 = vrot.lane.b32.xlu0 %v2649_v5, %s2192_s27  ;;  %v1396_v5 = vsel %vm1390_vm13, %v1363_v61, %v1133_v40  ;;  %v819_v48 = vrot.slane %v817_v14, 1  ;;  %v566_v61 = vor.u32 %v564_v44, %v563_v43 }
  0xca   : > { %v2740_v62 = vpop.permute.xlu1 %846  ;;  %v405_v42 = vadd.f32 %v2176_v1, %v366_v46  ;;  %v945_v1 = vrot.slane %v2782_v31, 1  ;;  %v836_v44 = vrot.slane %v834_v27, 1 }
  0xcb   : > { %v1165_v6 = vpop.permute.xlu0 %1164  ;;  %v2805_v9 = vsel %vm2242_vm2, 0, %v566_v61 }
  0xcc   : > { %v1429_v29 = vsel %vm1423_vm12, %v1396_v5, %v1165_v6  ;;  %1086 = vrot.lane.b32.xlu1 %v2727_v39, %s2190_s23  ;;  %v824_v5 = vrot.slane %v822_v52, 1  ;;  %v829_v10 = vshll.u32 %v2805_v9, 16  ;;  %v948_v13 = vrot.slane %v2805_v9, 1 }
  0xcd   : > { %1084 = vrot.lane.b32.xlu0 %v2677_v57, %s2190_s23  ;;  %2113 = vmatprep.mubr.msk.bf16.mxu0 %vm1499_vm14, %v1429_v29  ;;  %v2768_v57 = vsel %vm645_vm4, %v808_v7, %v812_v34  ;;  %v437_v29 = vmax.f32 %v405_v42, 0.0  ;;  %v946_v34 = vrot.slane %v642_v41, 1 }
  0xce   : > { %v2758_v15 = vpop.permute.xlu1 %848  ;;  %v831_v25 = vrot.slane %v829_v10, 1 }
  0xcf   : > { %v1167_v23 = vpop.permute.xlu0 %1166  ;;  %v1204_v11 = vsel %vm1192_vm6, %v2398_v22, %v2758_v15 }
  0xd0   : > { %v1431_v54 = vsel %vm1423_vm12, %v1398_v21, %v1167_v23  ;;  %1118 = vrot.lane.b32.xlu1 %v2694_v49, %s2189_s20  ;;  %v454_v21 = vpack.c.bf16 %v438_v50, %v437_v29 }
  0xd1   : > { %1116 = vrot.lane.b32.xlu0 %v2664_v45, %s2189_s20  ;;  %2114 = vmatmul.mubr.msk.bf16.gmra.mrb[4].mxu0 %vm1499_vm14, %v1431_v54 }
  0xd2   : > { %v2770_v17 = vpop.permute.xlu1 %961  ;;  %v568_v38 = vshrl.u32 %v454_v21, 16 }
  0xd3   : > { %v960_v24 = vpop.permute.xlu0 %959  ;;  %v1237_v32 = vsel %vm1225_vm7, %v1204_v11, %v2770_v17 }
  0xd4   : > { %1150 = vrot.lane.b32.xlu1 %v2768_v57, %s2193_s29  ;;  %v570_v4 = vrot.slane %v568_v38, 7 }
  0xd5   : > { %1148 = vrot.lane.b32.xlu0 %v2711_v58, %s2193_s29 }
  0xd6   : > { %v2778_v30 = vpop.permute.xlu1 %994 }
  0xd7   : > { %v993_v33 = vpop.permute.xlu0 %992  ;;  %v1270_v41 = vsel %vm1258_vm8, %v1237_v32, %v2778_v30 }
  0xd8   : > { %862 = vrot.lane.b32.xlu1 %v2711_v58, %s2187_s12  ;;  %v815_v58 = vshrl.u32 %v2782_v31, 16 }
  0xd9   : > { %1180 = vrot.lane.b32.xlu0 %v2727_v39, %s2191_s26 }
  0xda   : > { %v1039_v40 = vpop.permute.xlu1 %1038  ;;  %v820_v37 = vor.u32 %v819_v48, %v815_v58 }
  0xdb   : > { %v1037_v51 = vpop.permute.xlu0 %1036  ;;  %v1303_v15 = vsel %vm1291_vm9, %v1270_v41, %v1039_v40 }
  0xdc   : > { %864 = vrot.lane.b32.xlu1 %v2768_v57, %s2187_s12  ;;  %v825_v8 = vsel %vm645_vm4, %v820_v37, %v824_v5 }
  0xdd   : > { %1182 = vrot.lane.b32.xlu0 %v944_v0, %s2191_s26 }
  0xde   : > { %v1075_v55 = vpop.permute.xlu1 %1074 }
  0xdf   : > { %v1073_v26 = vpop.permute.xlu0 %1072 }
  0xe0   : > { %977 = vrot.lane.b32.xlu1 %v944_v0, %s2186_s11 }
  0xe1   : > { %975 = vrot.lane.b32.xlu0 %v2727_v39, %s2186_s11  ;;  %v1202_v39 = vsel %vm1192_vm6, %v2377_v59, %v2740_v62  ;;  %v947_v59 = vsel %vm902_vm3, %v945_v1, %v946_v34  ;;  %v827_v62 = vshrl.u32 %v2805_v9, 16 }
  0xe2   : > { %v1107_v6 = vpop.permute.xlu1 %1106  ;;  %v1235_v47 = vsel %vm1225_vm7, %v1202_v39, %v960_v24 }
  0xe3   : > { %v1105_v7 = vpop.permute.xlu0 %1104  ;;  %v1268_v23 = vsel %vm1258_vm8, %v1235_v47, %v993_v33  ;;  %v832_v17 = vor.u32 %v831_v25, %v827_v62 }
  0xe4   : > { %1010 = vrot.lane.b32.xlu1 %v2782_v31, %s2188_s17  ;;  %v1301_v63 = vsel %vm1291_vm9, %v1268_v23, %v1037_v51  ;;  %v571_v51 = vshll.u32 %v454_v21, 16 }
  0xe5   : > { %1008 = vrot.lane.b32.xlu0 %v2694_v49, %s2188_s17  ;;  %v1334_v24 = vsel %vm1324_vm10, %v1301_v63, %v1073_v26  ;;  %v949_v26 = vrot.slane %v643_v19, 1 }
  0xe6   : > { %v1139_v16 = vpop.permute.xlu1 %1138  ;;  %v1367_v33 = vsel %vm1357_vm11, %v1334_v24, %v1105_v7  ;;  %v644_v7 = vsel %vm2242_vm2, %v570_v4, 0 }
  0xe7   : > { %v1137_v54 = vpop.permute.xlu0 %1136  ;;  %v950_v50 = vsel %vm902_vm3, %v948_v13, %v949_v26  ;;  %v1024_v10 = vshll.u32 %v644_v7, 16  ;;  %v1062_v62 = vrot.slane %v644_v7, 1 }
  0xe8   : > { %1054 = vrot.lane.b32.xlu1 %v825_v8, %s2192_s27  ;;  %v1400_v14 = vsel %vm1390_vm13, %v1367_v33, %v1137_v54 }
  0xe9   : > { %1052 = vrot.lane.b32.xlu0 %v2768_v57, %s2192_s27  ;;  %v1336_v57 = vsel %vm1324_vm10, %v1303_v15, %v1075_v55  ;;  %v573_v55 = vor.u32 %v571_v51, %v570_v4  ;;  %v1026_v19 = vrot.slane %v1024_v10, 1 }
  0xea   : > { %v851_v36 = vpop.permute.xlu1 %850  ;;  %v1369_v46 = vsel %vm1357_vm11, %v1336_v57, %v1107_v6 }
  0xeb   : > { %v1169_v22 = vpop.permute.xlu0 %1168  ;;  %v1402_v58 = vsel %vm1390_vm13, %v1369_v46, %v1139_v16  ;;  %v627_v37 = vsel %vm2242_vm2, 0, %v573_v55  ;;  %v1206_v2 = vsel %vm1192_vm6, %v2434_v56, %v851_v36 }
  0xec   : > { %v1433_v43 = vsel %vm1423_vm12, %v1400_v14, %v1169_v22  ;;  %1090 = vrot.lane.b32.xlu1 %v947_v59, %s2190_s23  ;;  %v1019_v6 = vshll.u32 %v627_v37, 16  ;;  %v1017_v34 = vshrl.u32 %v627_v37, 16  ;;  %v1061_v63 = vrot.slane %v627_v37, 1 }
  0xed   : > { %1088 = vrot.lane.b32.xlu0 %v944_v0, %s2190_s23  ;;  %2117 = vmatprep.mubr.msk.bf16.mxu0 %vm1499_vm14, %v1433_v43  ;;  %v837_v0 = vsel %vm645_vm4, %v832_v17, %v836_v44 }
  0xee   : > { %v853_v30 = vpop.permute.xlu1 %852  ;;  %v1021_v39 = vrot.slane %v1019_v6, 1  ;;  %v1063_v33 = vsel %vm902_vm3, %v1061_v63, %v1062_v62 }
  0xef   : > { %v1171_v40 = vpop.permute.xlu0 %1170  ;;  %v1208_v56 = vsel %vm1192_vm6, %v2455_v20, %v853_v30 }
  0xf0   : > { %v1435_v48 = vsel %vm1423_vm12, %v1402_v58, %v1171_v40  ;;  %1122 = vrot.lane.b32.xlu1 %v2805_v9, %s2189_s20 }
  0xf1   : > { %1120 = vrot.lane.b32.xlu0 %v2782_v31, %s2189_s20  ;;  %2118 = vmatmul.mubr.msk.bf16.gmra.mrb[8].mxu0 %vm1499_vm14, %v1435_v48 }
  0xf2   : > { %v966_v52 = vpop.permute.xlu1 %965 }
  0xf3   : > { %v964_v61 = vpop.permute.xlu0 %963  ;;  %v1241_v36 = vsel %vm1225_vm7, %v1208_v56, %v966_v52 }
  0xf4   : > { %1154 = vrot.lane.b32.xlu1 %v837_v0, %s2193_s29  ;;  %v1239_v11 = vsel %vm1225_vm7, %v1206_v2, %v964_v61 }
  0xf5   : > { %1152 = vrot.lane.b32.xlu0 %v825_v8, %s2193_s29 }
  0xf6   : > { %v999_v42 = vpop.permute.xlu1 %998 }
  0xf7   : > { %v997_v5 = vpop.permute.xlu0 %996  ;;  %v1274_v14 = vsel %vm1258_vm8, %v1241_v36, %v999_v42 }
  0xf8   : > { %866 = vrot.lane.b32.xlu1 %v825_v8, %s2187_s12  ;;  %v1022_v8 = vor.u32 %v1021_v39, %v1017_v34 }
  0xf9   : > { %1184 = vrot.lane.b32.xlu0 %v947_v59, %s2191_s26 }
  0xfa   : > { %v1043_v29 = vpop.permute.xlu1 %1042  ;;  %v1027_v54 = vsel %vm645_vm4, %v1022_v8, %v1026_v19 }
  0xfb   : > { %v1041_v1 = vpop.permute.xlu0 %1040  ;;  %v1307_v43 = vsel %vm1291_vm9, %v1274_v14, %v1043_v29 }
  0xfc   : > { %868 = vrot.lane.b32.xlu1 %v837_v0, %s2187_s12 }
  0xfd   : > { %1186 = vrot.lane.b32.xlu0 %v950_v50, %s2191_s26 }
  0xfe   : > { %v1079_v47 = vpop.permute.xlu1 %1078 }
  0xff   : > { %v1077_v16 = vpop.permute.xlu0 %1076  ;;  %v1340_v57 = vsel %vm1324_vm10, %v1307_v43, %v1079_v47 }
 0x100   : > { %981 = vrot.lane.b32.xlu1 %v950_v50, %s2186_s11 }
 0x101   : > { %979 = vrot.lane.b32.xlu0 %v947_v59, %s2186_s11  ;;  %v1272_v59 = vsel %vm1258_vm8, %v1239_v11, %v997_v5 }
 0x102   : > { %v1111_v21 = vpop.permute.xlu1 %1110  ;;  %v1305_v27 = vsel %vm1291_vm9, %v1272_v59, %v1041_v1 }
 0x103   : > { %v1109_v23 = vpop.permute.xlu0 %1108  ;;  %v1338_v32 = vsel %vm1324_vm10, %v1305_v27, %v1077_v16  ;;  %v1373_v17 = vsel %vm1357_vm11, %v1340_v57, %v1111_v21 }
 0x104   : > { %1014 = vrot.lane.b32.xlu1 %v627_v37, %s2188_s17  ;;  %v1371_v38 = vsel %vm1357_vm11, %v1338_v32, %v1109_v23 }
 0x105   : > { %1012 = vrot.lane.b32.xlu0 %v2805_v9, %s2188_s17  ;;  %s2976_s17 = scalar_lea.vmem %s3361_s5, %s2076_s28 }
 0x106   : > { %v1143_v24 = vpop.permute.xlu1 %1142 }
 0x107   : > { %v1141_v25 = vpop.permute.xlu0 %1140  ;;  %v1406_v46 = vsel %vm1390_vm13, %v1373_v17, %v1143_v24 }
 0x108   : > { %1058 = vrot.lane.b32.xlu1 %v1027_v54, %s2192_s27  ;;  %v1404_v22 = vsel %vm1390_vm13, %v1371_v38, %v1141_v25 }
 0x109   : > { %1056 = vrot.lane.b32.xlu0 %v837_v0, %s2192_s27 }
 0x10a   : > { %v855_v41 = vpop.permute.xlu1 %854 }
 0x10b   : > { %v1173_v15 = vpop.permute.xlu0 %1172  ;;  %v1210_v13 = vsel %vm1192_vm6, %v2488_v53, %v855_v41 }
 0x10c   : > { %v1437_v20 = vsel %vm1423_vm12, %v1404_v22, %v1173_v15  ;;  %1094 = vrot.lane.b32.xlu1 %v1063_v33, %s2190_s23 }
 0x10d   : > { %1092 = vrot.lane.b32.xlu0 %v950_v50, %s2190_s23  ;;  %2121 = vmatprep.mubr.msk.bf16.mxu0 %vm1499_vm14, %v1437_v20 }
 0x10e   : > { %v857_v44 = vpop.permute.xlu1 %856 }
 0x10f   : > { %v1175_v30 = vpop.permute.xlu0 %1174 }
 0x110   : > { %v1439_v4 = vsel %vm1423_vm12, %v1406_v46, %v1175_v30  ;;  %1126 = vrot.lane.b32.xlu1 %v2248_v3, %s2189_s20 }
 0x111   : > { %1124 = vrot.lane.b32.xlu0 %v627_v37, %s2189_s20  ;;  %2122 = vmatmul.mubr.msk.bf16.gmra.mrb[12].mxu0 %vm1499_vm14, %v1439_v4 }
 0x112   : > { %v970_v51 = vpop.permute.xlu1 %969 }
 0x113   : > { %v968_v58 = vpop.permute.xlu0 %967 }
 0x114   : > { %1158 = vrot.lane.b32.xlu1 %v2293_v28, %s2193_s29  ;;  %v1243_v28 = vsel %vm1225_vm7, %v1210_v13, %v968_v58 }
 0x115   : > { %1156 = vrot.lane.b32.xlu0 %v1027_v54, %s2193_s29 }
 0x116   : > { %v1003_v40 = vpop.permute.xlu1 %1002 }
 0x117   : > { %v1001_v48 = vpop.permute.xlu0 %1000 }
 0x118   : > { %1190 = vrot.lane.b32.xlu1 %v2269_v12, %s2191_s26  ;;  %v1276_v37 = vsel %vm1258_vm8, %v1243_v28, %v1001_v48  ;;  %v1212_v12 = vsel %vm1192_vm6, %v2509_v18, %v857_v44 }
 0x119   : > { %1188 = vrot.lane.b32.xlu0 %v1063_v33, %s2191_s26  ;;  %v1245_v50 = vsel %vm1225_vm7, %v1212_v12, %v970_v51 }
 0x11a   : > { %v1047_v0 = vpop.permute.xlu1 %1046  ;;  %v1278_v53 = vsel %vm1258_vm8, %v1245_v50, %v1003_v40 }
 0x11b   : > { %v1045_v3 = vpop.permute.xlu0 %1044  ;;  %v1311_v10 = vsel %vm1291_vm9, %v1278_v53, %v1047_v0 }
 0x11c   : > { %v1309_v6 = vsel %vm1291_vm9, %v1276_v37, %v1045_v3 }
 0x11e   : > { %v1083_v52 = vpop.permute.xlu1 %1082 }
 0x11f   : > { %v1081_v55 = vpop.permute.xlu0 %1080  ;;  %v1344_v16 = vsel %vm1324_vm10, %v1311_v10, %v1083_v52 }
 0x120   : > { %v1342_v29 = vsel %vm1324_vm10, %v1309_v6, %v1081_v55 }
 0x122   : > { %v1115_v61 = vpop.permute.xlu1 %1114 }
 0x123   : > { %v1113_v42 = vpop.permute.xlu0 %1112  ;;  %v1377_v18 = vsel %vm1357_vm11, %v1344_v16, %v1115_v61 }
 0x124   : > { %v1375_v7 = vsel %vm1357_vm11, %v1342_v29, %v1113_v42 }
 0x126   : > { %v1147_v26 = vpop.permute.xlu1 %1146 }
 0x127   : > { %v1145_v5 = vpop.permute.xlu0 %1144  ;;  %v1410_v19 = vsel %vm1390_vm13, %v1377_v18, %v1147_v26 }
 0x128   : > { %v1408_v34 = vsel %vm1390_vm13, %v1375_v7, %v1145_v5 }
 0x12a   : > { %v859_v1 = vpop.permute.xlu1 %858 }
 0x12b   : > { %v1177_v39 = vpop.permute.xlu0 %1176  ;;  %v1214_v32 = vsel %vm1192_vm6, %v2553_v60, %v859_v1 }
 0x12c   : > { %v1441_v47 = vsel %vm1423_vm12, %v1408_v34, %v1177_v39 }
 0x12d   : > { %2125 = vmatprep.mubr.msk.bf16.mxu1 %vm1499_vm14, %v1441_v47 }
 0x12e   : > { %v861_v8 = vpop.permute.xlu1 %860 }
 0x12f   : > { %v1179_v21 = vpop.permute.xlu0 %1178  ;;  %v1216_v22 = vsel %vm1192_vm6, %v2582_v35, %v861_v8 }
 0x130   : > { %v1443_v23 = vsel %vm1423_vm12, %v1410_v19, %v1179_v21 }
 0x131   : > { %2126 = vmatmul.mubr.msk.bf16.vlgmr.msra.gmra.mrb[0].mxu1 %vm1499_vm14, %v1443_v23 }
 0x132   : > { %v974_v2 = vpop.permute.xlu1 %973 }
 0x133   : > { %v972_v54 = vpop.permute.xlu0 %971  ;;  %v1249_v43 = vsel %vm1225_vm7, %v1216_v22, %v974_v2 }
 0x134   : > { %v1247_v33 = vsel %vm1225_vm7, %v1214_v32, %v972_v54 }
 0x136   : > { %v1007_v63 = vpop.permute.xlu1 %1006 }
 0x137   : > { %v1005_v62 = vpop.permute.xlu0 %1004  ;;  %v1282_v60 = vsel %vm1258_vm8, %v1249_v43, %v1007_v63 }
 0x138   : > { %v1280_v38 = vsel %vm1258_vm8, %v1247_v33, %v1005_v62  ;;  %v2967_v33 = vld [vmem:[%s3360_s4] ss:$0 sm:$0xff] }
 0x13a   : > { %v1051_v11 = vpop.permute.xlu1 %1050 }
 0x13b   : > { %v1049_v24 = vpop.permute.xlu0 %1048  ;;  %v1315_v46 = vsel %vm1291_vm9, %v1282_v60, %v1051_v11 }
 0x13c   : > { %v1313_v14 = vsel %vm1291_vm9, %v1280_v38, %v1049_v24 }
 0x13e   : > { %v1087_v59 = vpop.permute.xlu1 %1086 }
 0x13f   : > { %v1085_v25 = vpop.permute.xlu0 %1084  ;;  %v1348_v4 = vsel %vm1324_vm10, %v1315_v46, %v1087_v59 }
 0x140   : > { %v1346_v15 = vsel %vm1324_vm10, %v1313_v14, %v1085_v25 }
 0x142   : > { %v1119_v27 = vpop.permute.xlu1 %1118 }
 0x143   : > { %v1117_v56 = vpop.permute.xlu0 %1116  ;;  %v1381_v35 = vsel %vm1357_vm11, %v1348_v4, %v1119_v27 }
 0x144   : > { %v1379_v20 = vsel %vm1357_vm11, %v1346_v15, %v1117_v56 }
 0x146   : > { %v1151_v36 = vpop.permute.xlu1 %1150 }
 0x147   : > { %v1149_v41 = vpop.permute.xlu0 %1148  ;;  %v1414_v58 = vsel %vm1390_vm13, %v1381_v35, %v1151_v36 }
 0x148   : > { %v1412_v17 = vsel %vm1390_vm13, %v1379_v20, %v1149_v41 }
 0x14a   : > { %v863_v57 = vpop.permute.xlu1 %862 }
 0x14b   : > { %v1181_v44 = vpop.permute.xlu0 %1180  ;;  %v1218_v5 = vsel %vm1192_vm6, %v2664_v45, %v863_v57 }
 0x14c   : > { %v1445_v30 = vsel %vm1423_vm12, %v1412_v17, %v1181_v44 }
 0x14d   : > { %2129 = vmatprep.mubr.msk.bf16.mxu1 %vm1499_vm14, %v1445_v30 }
 0x14e   : > { %v865_v51 = vpop.permute.xlu1 %864 }
 0x14f   : > { %v1183_v40 = vpop.permute.xlu0 %1182  ;;  %v1220_v1 = vsel %vm1192_vm6, %v2694_v49, %v865_v51 }
 0x150   : > { %v1447_v48 = vsel %vm1423_vm12, %v1414_v58, %v1183_v40 }
 0x151   : > { %2130 = vmatmul.mubr.msk.bf16.gmra.mrb[4].mxu1 %vm1499_vm14, %v1447_v48 }
 0x152   : > { %v978_v0 = vpop.permute.xlu1 %977 }
 0x153   : > { %v976_v3 = vpop.permute.xlu0 %975  ;;  %v1253_v34 = vsel %vm1225_vm7, %v1220_v1, %v978_v0 }
 0x154   : > { %v1251_v6 = vsel %vm1225_vm7, %v1218_v5, %v976_v3 }
 0x156   : > { %v1011_v52 = vpop.permute.xlu1 %1010 }
 0x157   : > { %v1009_v55 = vpop.permute.xlu0 %1008  ;;  %v1286_v45 = vsel %vm1258_vm8, %v1253_v34, %v1011_v52 }
 0x158   : > { %v1284_v29 = vsel %vm1258_vm8, %v1251_v6, %v1009_v55 }
 0x15a   : > { %v1055_v61 = vpop.permute.xlu1 %1054 }
 0x15b   : > { %v1053_v42 = vpop.permute.xlu0 %1052  ;;  %v1319_v18 = vsel %vm1291_vm9, %v1286_v45, %v1055_v61 }
 0x15c   : > { %v1317_v7 = vsel %vm1291_vm9, %v1284_v29, %v1053_v42 }
 0x15e   : > { %v1091_v13 = vpop.permute.xlu1 %1090 }
 0x15f   : > { %v1089_v28 = vpop.permute.xlu0 %1088  ;;  %v1352_v19 = vsel %vm1324_vm10, %v1319_v18, %v1091_v13 }
 0x160   : > { %v1350_v53 = vsel %vm1324_vm10, %v1317_v7, %v1089_v28 }
 0x162   : > { %v1123_v26 = vpop.permute.xlu1 %1122 }
 0x163   : > { %v1121_v37 = vpop.permute.xlu0 %1120  ;;  %v1385_v49 = vsel %vm1357_vm11, %v1352_v19, %v1123_v26 }
 0x164   : > { %v1383_v39 = vsel %vm1357_vm11, %v1350_v53, %v1121_v37 }
 0x166   : > { %v1155_v12 = vpop.permute.xlu1 %1154 }
 0x167   : > { %v1153_v50 = vpop.permute.xlu0 %1152  ;;  %v1418_v23 = vsel %vm1390_vm13, %v1385_v49, %v1155_v12 }
 0x168   : > { %v1416_v47 = vsel %vm1390_vm13, %v1383_v39, %v1153_v50 }
 0x16a   : > { %v867_v10 = vpop.permute.xlu1 %866 }
 0x16b   : > { %v1185_v16 = vpop.permute.xlu0 %1184  ;;  %v1222_v14 = vsel %vm1192_vm6, %v2782_v31, %v867_v10 }
 0x16c   : > { %v1449_v8 = vsel %vm1423_vm12, %v1416_v47, %v1185_v16 }
 0x16d   : > { %2133 = vmatprep.mubr.msk.bf16.mxu1 %vm1499_vm14, %v1449_v8 }
 0x16e   : > { %v869_v21 = vpop.permute.xlu1 %868 }
 0x16f   : > { %v1187_v2 = vpop.permute.xlu0 %1186  ;;  %v1224_v38 = vsel %vm1192_vm6, %v2805_v9, %v869_v21 }
 0x170   : > { %v1451_v54 = vsel %vm1423_vm12, %v1418_v23, %v1187_v2 }
 0x171   : > { %2134 = vmatmul.mubr.msk.bf16.gmra.mrb[8].mxu1 %vm1499_vm14, %v1451_v54 }
 0x172   : > { %v982_v63 = vpop.permute.xlu1 %981 }
 0x173   : > { %v980_v62 = vpop.permute.xlu0 %979  ;;  %v1257_v22 = vsel %vm1225_vm7, %v1224_v38, %v982_v63 }
 0x174   : > { %v1255_v9 = vsel %vm1225_vm7, %v1222_v14, %v980_v62 }
 0x176   : > { %v1015_v11 = vpop.permute.xlu1 %1014 }
 0x177   : > { %v1013_v24 = vpop.permute.xlu0 %1012  ;;  %v1290_v20 = vsel %vm1258_vm8, %v1257_v22, %v1015_v11 }
 0x178   : > { %v1288_v31 = vsel %vm1258_vm8, %v1255_v9, %v1013_v24 }
 0x17a   : > { %v1059_v59 = vpop.permute.xlu1 %1058 }
 0x17b   : > { %v1057_v25 = vpop.permute.xlu0 %1056  ;;  %v1323_v44 = vsel %vm1291_vm9, %v1290_v20, %v1059_v59 }
 0x17c   : > { %v1321_v35 = vsel %vm1291_vm9, %v1288_v31, %v1057_v25 }
 0x17e   : > { %v1095_v27 = vpop.permute.xlu1 %1094 }
 0x17f   : > { %v1093_v56 = vpop.permute.xlu0 %1092  ;;  %v1356_v51 = vsel %vm1324_vm10, %v1323_v44, %v1095_v27 }
 0x180   : > { %v1354_v40 = vsel %vm1324_vm10, %v1321_v35, %v1093_v56 }
 0x182   : > { %v1127_v32 = vpop.permute.xlu1 %1126 }
 0x183   : > { %v1125_v36 = vpop.permute.xlu0 %1124  ;;  %v1389_v48 = vsel %vm1357_vm11, %v1356_v51, %v1127_v32 }
 0x184   : > { %v2111_v41 = vpop.f32.mrb[0].mxu0  ;;  %v1387_v0 = vsel %vm1357_vm11, %v1354_v40, %v1125_v36 }
 0x185   : > { %v2982_v15 = vadd.f32 %v2111_v41, %v2967_v33  ;;  %v1570_v43 = vpop.f32.mrb[1].mxu0 }
 0x186   : > { %v2987_v57 = vadd.f32 %v2967_v33, %v1570_v43  ;;  %v2112_v60 = vpop.f32.mrb[2].mxu0  ;;  %v1159_v17 = vpop.permute.xlu1 %1158 }
 0x187   : > { %1903 = vst.msk [vmem:[%s2976_s17 + $0x10] sm:$0xff] %vm1192_vm6, %v2982_v15  ;;  %v2995_v46 = vadd.f32 %v2112_v60, %v2967_v33  ;;  %v1573_v30 = vpop.f32.mrb[3].mxu0  ;;  %v1157_v4 = vpop.permute.xlu0 %1156  ;;  %v1422_v3 = vsel %vm1390_vm13, %v1389_v48, %v1159_v17  ;;  %v1700_v11 = vsel %vm1192_vm6, %v2982_v15, 0.0 }
 0x188   : > { %1901 = vst.msk [vmem:[%s2976_s17] sm:$0xff] %vm1192_vm6, %v2987_v57  ;;  %v3003_v58 = vadd.f32 %v2967_v33, %v1573_v30  ;;  %v1420_v55 = vsel %vm1390_vm13, %v1387_v0, %v1157_v4  ;;  %v1697_v63 = vsel %vm1192_vm6, %v2987_v57, 0.0 }
 0x189   : > { %1904 = vst.msk [vmem:[%s2976_s17 + $0x18] sm:$0xff] %vm1192_vm6, %v2995_v46  ;;  %v1702_v59 = vsel %vm1192_vm6, %v2995_v46, 0.0 }
 0x18a   : > { %1902 = vst.msk [vmem:[%s2976_s17 + $0x8] sm:$0xff] %vm1192_vm6, %v3003_v58  ;;  %v1191_v52 = vpop.permute.xlu1 %1190  ;;  %v1698_v54 = vsel %vm1192_vm6, %v3003_v58, 0.0 }
 0x18b   : > { %v1455_v61 = vsel %vm1423_vm12, %v1422_v3, %v1191_v52  ;;  %v1189_v42 = vpop.permute.xlu0 %1188  ;;  %v1699_v62 = vadd.f32 %v1698_v54, %v1697_v63 }
 0x18c   : > { %v1453_v13 = vsel %vm1423_vm12, %v1420_v55, %v1189_v42 }
 0x18d   : > { %2137 = vmatprep.mubr.msk.bf16.mxu1 %vm1499_vm14, %v1453_v13  ;;  %v1701_v24 = vadd.f32 %v1700_v11, %v1699_v62 }
 0x18e   : > { %2138 = vmatmul.mubr.msk.bf16.gmra.mrb[12].mxu1 %vm1499_vm14, %v1455_v61 }
 0x18f   : > { %v1703_v27 = vadd.f32 %v1702_v59, %v1701_v24 }
 0x1a4   : > { %v2115_v28 = vpop.f32.mrb[4].mxu0 }
 0x1a5   : > { %v3021_v26 = vadd.f32 %v2115_v28, %v2967_v33  ;;  %v1586_v37 = vpop.f32.mrb[5].mxu0 }
 0x1a6   : > { %v3024_v5 = vadd.f32 %v2967_v33, %v1586_v37  ;;  %v2116_v6 = vpop.f32.mrb[6].mxu0 }
 0x1a7   : > { %1907 = vst.msk [vmem:[%s2976_s17 + $0x30] sm:$0xff] %vm1192_vm6, %v3021_v26  ;;  %v3030_v12 = vadd.f32 %v2116_v6, %v2967_v33  ;;  %v1589_v29 = vpop.f32.mrb[7].mxu0  ;;  %v1708_v17 = vsel %vm1192_vm6, %v3021_v26, 0.0 }
 0x1a8   : > { %1905 = vst.msk [vmem:[%s2976_s17 + $0x20] sm:$0xff] %vm1192_vm6, %v3024_v5  ;;  %v3036_v50 = vadd.f32 %v2967_v33, %v1589_v29  ;;  %v1704_v25 = vsel %vm1192_vm6, %v3024_v5, 0.0 }
 0x1a9   : > { %1908 = vst.msk [vmem:[%s2976_s17 + $0x38] sm:$0xff] %vm1192_vm6, %v3030_v12  ;;  %v1705_v56 = vadd.f32 %v1704_v25, %v1703_v27  ;;  %v1710_v44 = vsel %vm1192_vm6, %v3030_v12, 0.0 }
 0x1aa   : > { %1906 = vst.msk [vmem:[%s2976_s17 + $0x28] sm:$0xff] %vm1192_vm6, %v3036_v50  ;;  %v1706_v32 = vsel %vm1192_vm6, %v3036_v50, 0.0 }
 0x1ab   : > { %v1707_v43 = vadd.f32 %v1706_v32, %v1705_v56 }
 0x1ad   : > { %v1709_v31 = vadd.f32 %v1708_v17, %v1707_v43 }
 0x1af   : > { %v1711_v4 = vadd.f32 %v1710_v44, %v1709_v31 }
 0x1c4   : > { %v2119_v7 = vpop.f32.mrb[8].mxu0 }
 0x1c5   : > { %v3045_v1 = vadd.f32 %v2119_v7, %v2967_v33  ;;  %v1602_v53 = vpop.f32.mrb[9].mxu0 }
 0x1c6   : > { %v3048_v34 = vadd.f32 %v2967_v33, %v1602_v53  ;;  %v2120_v39 = vpop.f32.mrb[10].mxu0 }
 0x1c7   : > { %1911 = vst.msk [vmem:[%s2976_s17 + $0x50] sm:$0xff] %vm1192_vm6, %v3045_v1  ;;  %v3054_v10 = vadd.f32 %v2120_v39, %v2967_v33  ;;  %v1605_v45 = vpop.f32.mrb[11].mxu0  ;;  %v1716_v48 = vsel %vm1192_vm6, %v3045_v1, 0.0 }
 0x1c8   : > { %1909 = vst.msk [vmem:[%s2976_s17 + $0x40] sm:$0xff] %vm1192_vm6, %v3048_v34  ;;  %v3060_v47 = vadd.f32 %v2967_v33, %v1605_v45  ;;  %v1712_v30 = vsel %vm1192_vm6, %v3048_v34, 0.0 }
 0x1c9   : > { %1912 = vst.msk [vmem:[%s2976_s17 + $0x58] sm:$0xff] %vm1192_vm6, %v3054_v10  ;;  %v1713_v35 = vadd.f32 %v1712_v30, %v1711_v4  ;;  %v1718_v3 = vsel %vm1192_vm6, %v3054_v10, 0.0 }
 0x1ca   : > { %1910 = vst.msk [vmem:[%s2976_s17 + $0x48] sm:$0xff] %vm1192_vm6, %v3060_v47  ;;  %v1714_v51 = vsel %vm1192_vm6, %v3060_v47, 0.0 }
 0x1cb   : > { %v1715_v40 = vadd.f32 %v1714_v51, %v1713_v35 }
 0x1cd   : > { %v1717_v0 = vadd.f32 %v1716_v48, %v1715_v40 }
 0x1cf   : > { %v1719_v55 = vadd.f32 %v1718_v3, %v1717_v0 }
 0x1e4   : > { %v2123_v16 = vpop.f32.mrb[12].mxu0 }
 0x1e5   : > { %v3069_v18 = vadd.f32 %v2123_v16, %v2967_v33  ;;  %v1618_v8 = vpop.f32.mrb[13].mxu0 }
 0x1e6   : > { %v3072_v19 = vadd.f32 %v2967_v33, %v1618_v8  ;;  %v2124_v49 = vpop.f32.mrb[14].mxu0 }
 0x1e7   : > { %1915 = vst.msk [vmem:[%s2976_s17 + $0x70] sm:$0xff] %vm1192_vm6, %v3069_v18  ;;  %v3078_v21 = vadd.f32 %v2124_v49, %v2967_v33  ;;  %v1621_v23 = vpop.f32.mrb[15].mxu0  ;;  %v1724_v29 = vsel %vm1192_vm6, %v3069_v18, 0.0 }
 0x1e8   : > { %1913 = vst.msk [vmem:[%s2976_s17 + $0x60] sm:$0xff] %vm1192_vm6, %v3072_v19  ;;  %v3084_v2 = vadd.f32 %v2967_v33, %v1621_v23  ;;  %v1720_v52 = vsel %vm1192_vm6, %v3072_v19, 0.0 }
 0x1e9   : > { %1916 = vst.msk [vmem:[%s2976_s17 + $0x78] sm:$0xff] %vm1192_vm6, %v3078_v21  ;;  %v1721_v61 = vadd.f32 %v1720_v52, %v1719_v55  ;;  %v1726_v49 = vsel %vm1192_vm6, %v3078_v21, 0.0 }
 0x1ea   : > { %1914 = vst.msk [vmem:[%s2976_s17 + $0x68] sm:$0xff] %vm1192_vm6, %v3084_v2  ;;  %v1722_v42 = vsel %vm1192_vm6, %v3084_v2, 0.0 }
 0x1eb   : > { %v1723_v13 = vadd.f32 %v1722_v42, %v1721_v61 }
 0x1ed   : > { %v1725_v39 = vadd.f32 %v1724_v29, %v1723_v13 }
 0x1ef   : > { %v1727_v54 = vadd.f32 %v1726_v49, %v1725_v39 }
 0x204   : > { %v2127_v36 = vpop.f32.mrb[0].mxu1 }
 0x205   : > { %v3105_v38 = vadd.f32 %v2127_v36, %v2967_v33  ;;  %v1634_v41 = vpop.f32.mrb[1].mxu1 }
 0x206   : > { %v3108_v14 = vadd.f32 %v2967_v33, %v1634_v41  ;;  %v2128_v22 = vpop.f32.mrb[2].mxu1 }
 0x207   : > { %1919 = vst.msk [vmem:[%s2976_s17 + $0x90] sm:$0xff] %vm1192_vm6, %v3105_v38  ;;  %v3114_v9 = vadd.f32 %v2128_v22, %v2967_v33  ;;  %v1637_v20 = vpop.f32.mrb[3].mxu1  ;;  %v1732_v24 = vsel %vm1192_vm6, %v3105_v38, 0.0 }
 0x208   : > { %1917 = vst.msk [vmem:[%s2976_s17 + $0x80] sm:$0xff] %vm1192_vm6, %v3108_v14  ;;  %v3120_v60 = vadd.f32 %v2967_v33, %v1637_v20  ;;  %v1728_v23 = vsel %vm1192_vm6, %v3108_v14, 0.0 }
 0x209   : > { %1920 = vst.msk [vmem:[%s2976_s17 + $0x98] sm:$0xff] %vm1192_vm6, %v3114_v9  ;;  %v1729_v63 = vadd.f32 %v1728_v23, %v1727_v54  ;;  %v1734_v25 = vsel %vm1192_vm6, %v3114_v9, 0.0 }
 0x20a   : > { %1918 = vst.msk [vmem:[%s2976_s17 + $0x88] sm:$0xff] %vm1192_vm6, %v3120_v60  ;;  %v1730_v62 = vsel %vm1192_vm6, %v3120_v60, 0.0 }
 0x20b   : > { %v1731_v11 = vadd.f32 %v1730_v62, %v1729_v63 }
 0x20d   : > { %v1733_v59 = vadd.f32 %v1732_v24, %v1731_v11 }
 0x20f   : > { %v1735_v56 = vadd.f32 %v1734_v25, %v1733_v59 }
 0x224   : > { %v2131_v28 = vpop.f32.mrb[4].mxu1 }
 0x225   : > { %v3145_v37 = vadd.f32 %v2131_v28, %v2967_v33  ;;  %v1650_v6 = vpop.f32.mrb[5].mxu1 }
 0x226   : > { %v3150_v7 = vadd.f32 %v2967_v33, %v1650_v6  ;;  %v2132_v53 = vpop.f32.mrb[6].mxu1 }
 0x227   : > { %1923 = vst.msk [vmem:[%s2976_s17 + $0xb0] sm:$0xff] %vm1192_vm6, %v3145_v37  ;;  %v3156_v45 = vadd.f32 %v2132_v53, %v2967_v33  ;;  %v1653_v16 = vpop.f32.mrb[7].mxu1  ;;  %v1740_v22 = vsel %vm1192_vm6, %v3145_v37, 0.0 }
 0x228   : > { %1921 = vst.msk [vmem:[%s2976_s17 + $0xa0] sm:$0xff] %vm1192_vm6, %v3150_v7  ;;  %v3162_v8 = vadd.f32 %v2967_v33, %v1653_v16  ;;  %v1736_v27 = vsel %vm1192_vm6, %v3150_v7, 0.0 }
 0x229   : > { %1924 = vst.msk [vmem:[%s2976_s17 + $0xb8] sm:$0xff] %vm1192_vm6, %v3156_v45  ;;  %v1737_v32 = vadd.f32 %v1736_v27, %v1735_v56  ;;  %v1742_v44 = vsel %vm1192_vm6, %v3156_v45, 0.0 }
 0x22a   : > { %1922 = vst.msk [vmem:[%s2976_s17 + $0xa8] sm:$0xff] %vm1192_vm6, %v3162_v8  ;;  %v1738_v36 = vsel %vm1192_vm6, %v3162_v8, 0.0 }
 0x22b   : > { %v1739_v41 = vadd.f32 %v1738_v36, %v1737_v32 }
 0x22d   : > { %v1741_v43 = vadd.f32 %v1740_v22, %v1739_v41 }
 0x22f   : > { %v1743_v35 = vadd.f32 %v1742_v44, %v1741_v43 }
 0x244   : > { %v2135_v20 = vpop.f32.mrb[8].mxu1 }
 0x245   : > { %v1675_v17 = vadd.f32 %v2135_v20, %v2967_v33  ;;  %v1666_v31 = vpop.f32.mrb[9].mxu1 }
 0x246   : > { %v1667_v30 = vadd.f32 %v2967_v33, %v1666_v31  ;;  %v2136_v4 = vpop.f32.mrb[10].mxu1 }
 0x247   : > { %1927 = vst.msk [vmem:[%s2976_s17 + $0xd0] sm:$0xff] %vm1192_vm6, %v1675_v17  ;;  %v1678_v51 = vadd.f32 %v2136_v4, %v2967_v33  ;;  %v1669_v40 = vpop.f32.mrb[11].mxu1  ;;  %v1748_v61 = vsel %vm1192_vm6, %v1675_v17, 0.0 }
 0x248   : > { %v1744_v48 = vsel %vm1192_vm6, %v1667_v30, 0.0  ;;  %1925 = vst.msk [vmem:[%s2976_s17 + $0xc0] sm:$0xff] %vm1192_vm6, %v1667_v30  ;;  %v1670_v0 = vadd.f32 %v2967_v33, %v1669_v40 }
 0x249   : > { %v1745_v3 = vadd.f32 %v1744_v48, %v1743_v35  ;;  %1928 = vst.msk [vmem:[%s2976_s17 + $0xd8] sm:$0xff] %vm1192_vm6, %v1678_v51  ;;  %v1750_v13 = vsel %vm1192_vm6, %v1678_v51, 0.0 }
 0x24a   : > { %v1746_v52 = vsel %vm1192_vm6, %v1670_v0, 0.0  ;;  %1926 = vst.msk [vmem:[%s2976_s17 + $0xc8] sm:$0xff] %vm1192_vm6, %v1670_v0 }
 0x24b   : > { %v1747_v55 = vadd.f32 %v1746_v52, %v1745_v3 }
 0x24d   : > { %v1749_v42 = vadd.f32 %v1748_v61, %v1747_v55 }
 0x24f   : > { %v1751_v28 = vadd.f32 %v1750_v13, %v1749_v42 }
 0x261   : > { %v2139_v6 = vpop.f32.mrb[12].mxu1 }
 0x262   : > { %v1691_v29 = vadd.f32 %v2139_v6, %v2967_v33  ;;  %v1682_v53 = vpop.f32.mrb[13].mxu1 }
 0x263   : > { %v1683_v39 = vadd.f32 %v2967_v33, %v1682_v53  ;;  %v2140_v16 = vpop.f32.mrb[14].mxu1 }
 0x264   : > { %1931 = vst.msk [vmem:[%s2976_s17 + $0xf0] sm:$0xff] %vm1192_vm6, %v1691_v29  ;;  %v1694_v49 = vadd.f32 %v2140_v16, %v2967_v33  ;;  %v1685_v23 = vpop.f32.mrb[15].mxu1  ;;  %v1756_v59 = vsel %vm1192_vm6, %v1691_v29, 0.0 }
 0x265   : > { %v1752_v54 = vsel %vm1192_vm6, %v1683_v39, 0.0  ;;  %1929 = vst.msk [vmem:[%s2976_s17 + $0xe0] sm:$0xff] %vm1192_vm6, %v1683_v39  ;;  %v1686_v63 = vadd.f32 %v2967_v33, %v1685_v23 }
 0x266   : > { %v1753_v62 = vadd.f32 %v1752_v54, %v1751_v28  ;;  %1932 = vst.msk [vmem:[%s2976_s17 + $0xf8] sm:$0xff] %vm1192_vm6, %v1694_v49  ;;  %v1758_v27 = vsel %vm1192_vm6, %v1694_v49, 0.0 }
 0x267   : > { %v1754_v11 = vsel %vm1192_vm6, %v1686_v63, 0.0  ;;  %1930 = vst.msk [vmem:[%s2976_s17 + $0xe8] sm:$0xff] %vm1192_vm6, %v1686_v63 }
 0x268   : > { %v1755_v24 = vadd.f32 %v1754_v11, %v1753_v62 }
 0x26a   : > { %v1757_v25 = vadd.f32 %v1756_v59, %v1755_v24 }
 0x26c   : > { %v1759_v56 = vadd.f32 %v1758_v27, %v1757_v25 }
 0x26e   : > { %v1760_v32 = vrot.slane %v1759_v56, 4 }
 0x270   : > { %v1761_v36 = vadd.f32 %v1760_v32, %v1759_v56 }
 0x272   : > { %v1762_v41 = vrot.slane %v1761_v36, 2 }
 0x274   : > { %v1763_v22 = vadd.f32 %v1762_v41, %v1761_v36 }
 0x276   : > { %v1764_v33 = vrot.slane %v1763_v22, 1 }
 0x278   : > { %v1765_v43 = vadd.f32 %v1764_v33, %v1763_v22 }
 0x27a   : > { %v3224_v20 = vmul.f32 0.00390625, %v1765_v43 }
 0x27c   : > { %1934 = vst.msk [vmem:[%s292_s19] sm:$0x1] %vm1933_vm15, %v3224_v20  ;;  %v3229_v31 = vsub.f32 %v1667_v30, %v3224_v20  ;;  %v3232_v44 = vsub.f32 %v1670_v0, %v3224_v20  ;;  %v3235_v4 = vsub.f32 %v1675_v17, %v3224_v20  ;;  %v3238_v35 = vsub.f32 %v1678_v51, %v3224_v20 }
 0x27d   : > { %v3241_v40 = vsub.f32 %v1683_v39, %v3224_v20  ;;  %v3244_v48 = vsub.f32 %v1686_v63, %v3224_v20  ;;  %v3247_v3 = vsub.f32 %v1691_v29, %v3224_v20  ;;  %v3250_v30 = vsub.f32 %v1694_v49, %v3224_v20 }
 0x27e   : > { %v1768_v0 = vsub.f32 %v2987_v57, %v3224_v20  ;;  %v1769_v17 = vsub.f32 %v3003_v58, %v3224_v20  ;;  %v1770_v51 = vsub.f32 %v2982_v15, %v3224_v20  ;;  %v1771_v52 = vsub.f32 %v2995_v46, %v3224_v20 }
 0x27f   : > { %v1772_v42 = vsub.f32 %v3024_v5, %v3224_v20  ;;  %v1773_v28 = vsub.f32 %v3036_v50, %v3224_v20  ;;  %v1774_v15 = vsub.f32 %v3021_v26, %v3224_v20  ;;  %v1775_v5 = vsub.f32 %v3030_v12, %v3224_v20 }
 0x280   : > { %v1800_v55 = vmul.f32 %v1768_v0, %v1768_v0  ;;  %v1801_v61 = vmul.f32 %v1769_v17, %v1769_v17  ;;  %v1802_v13 = vmul.f32 %v1770_v51, %v1770_v51  ;;  %v1803_v6 = vmul.f32 %v1771_v52, %v1771_v52 }
 0x281   : > { %v1804_v53 = vmul.f32 %v1772_v42, %v1772_v42  ;;  %v1805_v16 = vmul.f32 %v1773_v28, %v1773_v28  ;;  %v1776_v23 = vsub.f32 %v3048_v34, %v3224_v20  ;;  %v1806_v54 = vmul.f32 %v1774_v15, %v1774_v15 }
 0x282   : > { %v1832_v57 = vsel %vm1192_vm6, %v1800_v55, 0.0  ;;  %v1833_v58 = vsel %vm1192_vm6, %v1801_v61, 0.0  ;;  %v1835_v46 = vsel %vm1192_vm6, %v1802_v13, 0.0  ;;  %v1837_v49 = vsel %vm1192_vm6, %v1803_v6, 0.0 }
 0x283   : > { %v1834_v29 = vadd.f32 %v1833_v58, %v1832_v57  ;;  %v1839_v63 = vsel %vm1192_vm6, %v1804_v53, 0.0  ;;  %v1777_v26 = vsub.f32 %v3060_v47, %v3224_v20  ;;  %v1807_v11 = vmul.f32 %v1775_v5, %v1775_v5 }
 0x284   : > { %v1841_v24 = vsel %vm1192_vm6, %v1805_v16, 0.0  ;;  %v1778_v12 = vsub.f32 %v3045_v1, %v3224_v20  ;;  %v1808_v25 = vmul.f32 %v1776_v23, %v1776_v23  ;;  %v1843_v27 = vsel %vm1192_vm6, %v1806_v54, 0.0 }
 0x285   : > { %v1836_v39 = vadd.f32 %v1835_v46, %v1834_v29  ;;  %v1779_v34 = vsub.f32 %v3054_v10, %v3224_v20  ;;  %v1809_v32 = vmul.f32 %v1777_v26, %v1777_v26  ;;  %v1845_v36 = vsel %vm1192_vm6, %v1807_v11, 0.0 }
 0x286   : > { %v1780_v47 = vsub.f32 %v3072_v19, %v3224_v20  ;;  %v1810_v22 = vmul.f32 %v1778_v12, %v1778_v12  ;;  %v1847_v33 = vsel %vm1192_vm6, %v1808_v25, 0.0  ;;  %v1781_v1 = vsub.f32 %v3084_v2, %v3224_v20 }
 0x287   : > { %v1838_v50 = vadd.f32 %v1837_v49, %v1836_v39  ;;  %v1811_v0 = vmul.f32 %v1779_v34, %v1779_v34  ;;  %v1849_v17 = vsel %vm1192_vm6, %v1809_v32, 0.0  ;;  %v1782_v10 = vsub.f32 %v3069_v18, %v3224_v20 }
 0x288   : > { %v1812_v52 = vmul.f32 %v1780_v47, %v1780_v47  ;;  %v1851_v55 = vsel %vm1192_vm6, %v1810_v22, 0.0  ;;  %v1783_v19 = vsub.f32 %v3078_v21, %v3224_v20  ;;  %v1813_v42 = vmul.f32 %v1781_v1, %v1781_v1 }
 0x289   : > { %v1840_v62 = vadd.f32 %v1839_v63, %v1838_v50  ;;  %v1853_v13 = vsel %vm1192_vm6, %v1811_v0, 0.0  ;;  %v1784_v2 = vsub.f32 %v3108_v14, %v3224_v20  ;;  %v1814_v6 = vmul.f32 %v1782_v10, %v1782_v10 }
 0x28a   : > { %v1855_v57 = vsel %vm1192_vm6, %v1812_v52, 0.0  ;;  %v1785_v18 = vsub.f32 %v3120_v60, %v3224_v20  ;;  %v1815_v29 = vmul.f32 %v1783_v19, %v1783_v19  ;;  %v1857_v15 = vsel %vm1192_vm6, %v1813_v42, 0.0 }
 0x28b   : > { %v1842_v59 = vadd.f32 %v1841_v24, %v1840_v62  ;;  %v1786_v21 = vsub.f32 %v3105_v38, %v3224_v20  ;;  %v1816_v46 = vmul.f32 %v1784_v2, %v1784_v2  ;;  %v1859_v39 = vsel %vm1192_vm6, %v1814_v6, 0.0 }
 0x28c   : > { %v1787_v14 = vsub.f32 %v3114_v9, %v3224_v20  ;;  %v1817_v16 = vmul.f32 %v1785_v18, %v1785_v18  ;;  %v1861_v49 = vsel %vm1192_vm6, %v1815_v29, 0.0  ;;  %v1788_v60 = vsub.f32 %v3150_v7, %v3224_v20 }
 0x28d   : > { %v1844_v56 = vadd.f32 %v1843_v27, %v1842_v59  ;;  %v1818_v23 = vmul.f32 %v1786_v21, %v1786_v21  ;;  %v1863_v54 = vsel %vm1192_vm6, %v1816_v46, 0.0  ;;  %v1789_v38 = vsub.f32 %v3162_v8, %v3224_v20 }
 0x28e   : > { %v1819_v62 = vmul.f32 %v1787_v14, %v1787_v14  ;;  %v1865_v26 = vsel %vm1192_vm6, %v1817_v16, 0.0  ;;  %v1790_v9 = vsub.f32 %v3145_v37, %v3224_v20  ;;  %v1820_v24 = vmul.f32 %v1788_v60, %v1788_v60 }
 0x28f   : > { %v1846_v41 = vadd.f32 %v1845_v36, %v1844_v56  ;;  %v1867_v59 = vsel %vm1192_vm6, %v1818_v23, 0.0  ;;  %v1791_v7 = vsub.f32 %v3156_v45, %v3224_v20  ;;  %v1821_v25 = vmul.f32 %v1789_v38, %v1789_v38 }
 0x290   : > { %v1869_v27 = vsel %vm1192_vm6, %v1819_v62, 0.0  ;;  %v1822_v34 = vmul.f32 %v1790_v9, %v1790_v9  ;;  %v1871_v8 = vsel %vm1192_vm6, %v1820_v24, 0.0  ;;  %v1824_v37 = vmul.f32 %v3229_v31, %v3229_v31 }
 0x291   : > { %v1848_v43 = vadd.f32 %v1847_v33, %v1846_v41  ;;  %v1823_v36 = vmul.f32 %v1791_v7, %v1791_v7  ;;  %v1873_v41 = vsel %vm1192_vm6, %v1821_v25, 0.0  ;;  %v1825_v45 = vmul.f32 %v3232_v44, %v3232_v44 }
 0x292   : > { %v1875_v22 = vsel %vm1192_vm6, %v1822_v34, 0.0  ;;  %v1826_v1 = vmul.f32 %v3235_v4, %v3235_v4  ;;  %v1879_v0 = vsel %vm1192_vm6, %v1824_v37, 0.0  ;;  %v1828_v52 = vmul.f32 %v3241_v40, %v3241_v40 }
 0x293   : > { %v1850_v51 = vadd.f32 %v1849_v17, %v1848_v43  ;;  %v1877_v20 = vsel %vm1192_vm6, %v1823_v36, 0.0  ;;  %v1881_v31 = vsel %vm1192_vm6, %v1825_v45, 0.0  ;;  %v1830_v42 = vmul.f32 %v3247_v3, %v3247_v3 }
 0x294   : > { %v1883_v44 = vsel %vm1192_vm6, %v1826_v1, 0.0 }
 0x295   : > { %v1852_v61 = vadd.f32 %v1851_v55, %v1850_v51  ;;  %v1827_v51 = vmul.f32 %v3238_v35, %v3238_v35  ;;  %v1887_v35 = vsel %vm1192_vm6, %v1828_v52, 0.0  ;;  %v1891_v6 = vsel %vm1192_vm6, %v1830_v42, 0.0 }
 0x297   : > { %v1854_v28 = vadd.f32 %v1853_v13, %v1852_v61  ;;  %v1829_v61 = vmul.f32 %v3244_v48, %v3244_v48  ;;  %v1885_v4 = vsel %vm1192_vm6, %v1827_v51, 0.0 }
 0x299   : > { %v1856_v58 = vadd.f32 %v1855_v57, %v1854_v28  ;;  %v1831_v28 = vmul.f32 %v3250_v30, %v3250_v30  ;;  %v1889_v40 = vsel %vm1192_vm6, %v1829_v61, 0.0 }
 0x29b   : > { %v1858_v53 = vadd.f32 %v1857_v15, %v1856_v58  ;;  %v1893_v48 = vsel %vm1192_vm6, %v1831_v28, 0.0 }
 0x29d   : > { %v1860_v5 = vadd.f32 %v1859_v39, %v1858_v53 }
 0x29f   : > { %v1862_v50 = vadd.f32 %v1861_v49, %v1860_v5 }
 0x2a1   : > { %v1864_v63 = vadd.f32 %v1863_v54, %v1862_v50 }
 0x2a3   : > { %v1866_v11 = vadd.f32 %v1865_v26, %v1864_v63 }
 0x2a5   : > { %v1868_v12 = vadd.f32 %v1867_v59, %v1866_v11 }
 0x2a7   : > { %v1870_v56 = vadd.f32 %v1869_v27, %v1868_v12 }
 0x2a9   : > { %v1872_v32 = vadd.f32 %v1871_v8, %v1870_v56 }
 0x2ab   : > { %v1874_v47 = vadd.f32 %v1873_v41, %v1872_v32 }
 0x2ad   : > { %v1876_v33 = vadd.f32 %v1875_v22, %v1874_v47 }
 0x2af   : > { %v1878_v43 = vadd.f32 %v1877_v20, %v1876_v33 }
 0x2b1   : > { %v1880_v17 = vadd.f32 %v1879_v0, %v1878_v43 }
 0x2b3   : > { %v1882_v10 = vadd.f32 %v1881_v31, %v1880_v17 }
 0x2b5   : > { %v1884_v55 = vadd.f32 %v1883_v44, %v1882_v10 }
 0x2b7   : > { %v1886_v19 = vadd.f32 %v1885_v4, %v1884_v55 }
 0x2b9   : > { %v1888_v13 = vadd.f32 %v1887_v35, %v1886_v19 }
 0x2bb   : > { %v1890_v2 = vadd.f32 %v1889_v40, %v1888_v13 }
 0x2bd   : > { %v1892_v57 = vadd.f32 %v1891_v6, %v1890_v2 }
 0x2bf   : > { %v1894_v58 = vadd.f32 %v1893_v48, %v1892_v57 }
 0x2c1   : > { %v1895_v18 = vrot.slane %v1894_v58, 4 }
 0x2c3   : > { %v1896_v29 = vadd.f32 %v1895_v18, %v1894_v58 }
 0x2c5   : > { %v1897_v15 = vrot.slane %v1896_v29, 2 }
 0x2c7   : > { %v1898_v53 = vadd.f32 %v1897_v15, %v1896_v29 }
 0x2c9   : > { %v1899_v3 = vrot.slane %v1898_v53, 1 }
 0x2cb   : > { %v1900_v21 = vadd.f32 %v1899_v3, %v1898_v53 }
 0x2cd   : > { %1935 = vst.msk [vmem:[%s295_s22] sm:$0x1] %vm1933_vm15, %v1900_v21 }
 0x2ce PF: > { %s18_s24 = sadd.s32 1, %s2183_s24  }
 0x2cf   : > { %p15_p4 = scmp.ge.s32.totalorder %s18_s24, 4  }
 0x2d1   :  { %17 = sbr.rel (!%p15_p4) target bundleno = 1 (0x1), region = 94 }

</bundles_post_ra>
